<compile_context>
chip_gen: v5e
topology: v5e:2x2
jax: 0.10.0
libtpu: 0.0.40
codegen_flags: <defaults>
</compile_context>

<pallas_src>
import math
from functools import partial

import jax
import jax.numpy as jnp
from jax.experimental import pallas as pl
from jax.experimental.pallas import tpu as pltpu


LANE = 128                       # lane width for "wide" channel padding
BN_EPS = 1e-3                    # MobileNetV3 uses BatchNorm2d(eps=0.001)


# ----------------------------- small helpers --------------------------------

def _round_up(n, m):
    return ((n + m - 1) // m) * m


def _pad_c(c):
    """Channel padding policy: exact below one lane tile, 128-aligned above."""
    return c if c <= LANE else _round_up(c, LANE)


def _vmem_limit_bytes():
    """Chip-aware scoped-VMEM budget (v5e/v6e: 128 MiB phys, v7x: 64 MiB)."""
    cap = 64 * 1024 * 1024
    try:
        info_fn = getattr(pltpu, "get_tpu_info", None)
        if info_fn is not None:
            info = info_fn()
            cap = int(getattr(info, "vmem_capacity_bytes", cap) or cap)
    except Exception:
        pass
    return int(min(cap * 0.7, 100 * 1024 * 1024))


VMEM_LIMIT = _vmem_limit_bytes()


def _make_divisible(ch, divisor=8, min_ch=None):
    if min_ch is None:
        min_ch = divisor
    new_ch = max(min_ch, int(ch + divisor / 2) // divisor * divisor)
    if new_ch < 0.9 * ch:
        new_ch += divisor
    return new_ch


class IRConfig:
    """Mirror of InvertedResidualConfig (no torch)."""

    def __init__(self, input_c, kernel, expanded_c, out_c, use_se, activation,
                 stride, width_multi=1.0):
        adj = lambda c: _make_divisible(c * width_multi, 8)
        self.input_c = adj(input_c)
        self.kernel = kernel
        self.expanded_c = adj(expanded_c)
        self.out_c = adj(out_c)
        self.use_se = use_se
        self.use_hs = activation == 'HS'
        self.stride = stride


def _apply_act(y, act):
    if act == 'relu':
        return jnp.maximum(y, 0.0)
    if act == 'hardswish':
        return y * (jnp.clip(y + 3.0, 0.0, 6.0) * (1.0 / 6.0))
    if act == 'hardsigmoid':
        return jnp.clip(y + 3.0, 0.0, 6.0) * (1.0 / 6.0)
    return y  # identity


def _cparams(*sems):
    return pltpu.CompilerParams(dimension_semantics=sems,
                                vmem_limit_bytes=VMEM_LIMIT)


def _pick_tn(N):
    if N % 256 == 0:
        return 256
    if N % 128 == 0:
        return 128
    return N  # full-dim (narrow) output block


# ----------------------------- fused matmul kernels --------------------------

def _mm_kernel(x_ref, w_ref, sb_ref, o_ref, *, act):
    # conv-as-matmul: bf16 operands into the MXU, f32 accumulation,
    # folded-BN affine + activation on the VPU (f32), bf16 store.
    y = jnp.dot(x_ref[...].astype(jnp.bfloat16), w_ref[...],
                preferred_element_type=jnp.float32)
    y = y * sb_ref[0:1, :] + sb_ref[1:2, :]
    o_ref[...] = _apply_act(y, act).astype(o_ref.dtype)


def _mm_res_kernel(x_ref, w_ref, sb_ref, r_ref, o_ref, *, act):
    # same as above, plus the fused residual add (project conv of a BNeck).
    y = jnp.dot(x_ref[...].astype(jnp.bfloat16), w_ref[...],
                preferred_element_type=jnp.float32)
    y = y * sb_ref[0:1, :] + sb_ref[1:2, :]
    o_ref[...] = (_apply_act(y, act) +
                  r_ref[...].astype(jnp.float32)).astype(o_ref.dtype)


def matmul_affine_act(x, w, sb, act, residual=None):
    """x:(M,K) bf16, w:(K,N) bf16, sb:(2,N) f32 packed (scale,bias), res:(M,N)."""
    M, K = x.shape
    N = w.shape[1]

    # M tiling (rows); K kept whole and resident, N tiled lane-dense when wide.
    if M <= 1024:
        tm = _round_up(M, 16)
        Mp = tm
    else:
        tm = 1024 if VMEM_LIMIT >= 64 * 1024 * 1024 else 512
        Mp = _round_up(M, tm)
    tn = _pick_tn(N)
    grid = (N // tn, Mp // tm)   # N-tile outer -> weight block reused over M

    if Mp != M:
        x = jnp.pad(x, ((0, Mp - M), (0, 0)))
        if residual is not None:
            residual = jnp.pad(residual, ((0, Mp - M), (0, 0)))

    in_specs = [
        pl.BlockSpec((tm, K), lambda j, i: (i, 0)),    # activation tile
        pl.BlockSpec((K, tn), lambda j, i: (0, j)),    # weight: invariant in M
        pl.BlockSpec((2, tn), lambda j, i: (0, j)),    # packed scale/bias
    ]
    args = [x, w, sb]
    if residual is None:
        kern = partial(_mm_kernel, act=act)
    else:
        kern = partial(_mm_res_kernel, act=act)
        in_specs.append(pl.BlockSpec((tm, tn), lambda j, i: (i, j)))
        args.append(residual)

    out = pl.pallas_call(
        kern,
        out_shape=jax.ShapeDtypeStruct((Mp, N), jnp.bfloat16),
        grid=grid,
        in_specs=in_specs,
        out_specs=pl.BlockSpec((tm, tn), lambda j, i: (i, j)),
        compiler_params=_cparams("parallel", "parallel"),
    )(*args)
    return out[:M] if Mp != M else out


def conv1x1_bn_act(x, w, sb, act, residual=None):
    B, H, W, C = x.shape
    N = w.shape[1]
    M = B * H * W
    r2 = residual.reshape(M, N) if residual is not None else None
    y = matmul_affine_act(x.reshape(M, C), w, sb, act, residual=r2)
    return y.reshape(B, H, W, N)


def conv_kxk_bn_act(x, w, sb, *, kernel, stride, act):
    # dense (groups=1) conv via im2col; only used for the 3-channel stem conv,
    # where the k*k patch blow-up is negligible (patches already bf16).
    B, H, W, C = x.shape
    N = w.shape[1]
    p = (kernel - 1) // 2
    Ho = (H + 2 * p - kernel) // stride + 1
    Wo = (W + 2 * p - kernel) // stride + 1
    xp = jnp.pad(x, ((0, 0), (p, p), (p, p), (0, 0)))
    cols = []
    for kh in range(kernel):
        for kw in range(kernel):
            cols.append(xp[:, kh:kh + (Ho - 1) * stride + 1:stride,
                           kw:kw + (Wo - 1) * stride + 1:stride, :])
    patches = jnp.stack(cols, axis=3).reshape(B * Ho * Wo, kernel * kernel * C)
    y = matmul_affine_act(patches, w, sb, act)
    return y.reshape(B, Ho, Wo, N)


# -------------------- project 1x1 conv with fused SE scale -------------------

def _mm_scaled_kernel(x_ref, s_ref, w_ref, sb_ref, o_ref, *, act):
    # x_ref:(1,HW,K) bf16 ; s_ref:(1,1,K) f32 per-image SE scale.
    xs = x_ref[0].astype(jnp.float32) * s_ref[0]
    y = jnp.dot(xs.astype(jnp.bfloat16), w_ref[...],
                preferred_element_type=jnp.float32)
    y = y * sb_ref[0:1, :] + sb_ref[1:2, :]
    o_ref[0] = _apply_act(y, act).astype(o_ref.dtype)


def _mm_scaled_res_kernel(x_ref, s_ref, w_ref, sb_ref, r_ref, o_ref, *, act):
    xs = x_ref[0].astype(jnp.float32) * s_ref[0]
    y = jnp.dot(xs.astype(jnp.bfloat16), w_ref[...],
                preferred_element_type=jnp.float32)
    y = y * sb_ref[0:1, :] + sb_ref[1:2, :]
    o_ref[0] = (_apply_act(y, act) +
                r_ref[0].astype(jnp.float32)).astype(o_ref.dtype)


def conv1x1_proj_se(x, scale, w, sb, residual=None):
    """Project conv with fused SE rescale.  x:(B,H,W,C) bf16, scale:(B,1,C) f32,
    w:(C,N) bf16, sb:(2,N) f32, residual:(B,H,W,N) bf16 or None."""
    B, H, W, C = x.shape
    N = w.shape[1]
    HW = H * W
    tn = _pick_tn(N)
    xr = x.reshape(B, HW, C)

    in_specs = [
        pl.BlockSpec((1, HW, C), lambda b, j: (b, 0, 0)),   # invariant in j
        pl.BlockSpec((1, 1, C), lambda b, j: (b, 0, 0)),
        pl.BlockSpec((C, tn), lambda b, j: (0, j)),
        pl.BlockSpec((2, tn), lambda b, j: (0, j)),
    ]
    args = [xr, scale, w, sb]
    if residual is None:
        kern = partial(_mm_scaled_kernel, act='identity')
    else:
        kern = partial(_mm_scaled_res_kernel, act='identity')
        in_specs.append(pl.BlockSpec((1, HW, tn), lambda b, j: (b, 0, j)))
        args.append(residual.reshape(B, HW, N))

    # TODO(synk): add an HW row-tiling axis for very large spatial extents.
    y = pl.pallas_call(
        kern,
        out_shape=jax.ShapeDtypeStruct((B, HW, N), jnp.bfloat16),
        grid=(B, N // tn),
        in_specs=in_specs,
        out_specs=pl.BlockSpec((1, HW, tn), lambda b, j: (b, 0, j)),
        compiler_params=_cparams("parallel", "parallel"),
    )(*args)
    return y.reshape(B, H, W, N)


# ----------------------------- depthwise conv kernel -------------------------

def _dw_kernel(ph_ref, w_ref, sb_ref, o_ref, *, k, stride, A, Ho, Wo, act):
    # ph_ref: (P, 1, HA, WA, C) stride-phases of the zero-padded image (bf16).
    # Shifted multiply-accumulate over the k*k taps entirely in VMEM.  The
    # expensive sublane (W) offset is applied once per (phase, kw) column slab;
    # the per-tap kh offset only varies the free row axis of the slab.
    C = o_ref.shape[-1]
    wk = w_ref[...].astype(jnp.float32)                     # (k*k, C)
    acc = jnp.zeros((Ho, Wo, C), jnp.float32)
    for rh in range(stride):
        for rw in range(stride):
            pidx = rh * stride + rw
            for b in range(A):
                kw = stride * b + rw
                if kw >= k:
                    continue
                cols = ph_ref[pidx, 0, :, b:b + Wo, :].astype(jnp.float32)
                for a in range(A):
                    kh = stride * a + rh
                    if kh >= k:
                        continue
                    t = kh * k + kw
                    acc = acc + cols[a:a + Ho] * wk[t]
    y = acc * sb_ref[0:1, :] + sb_ref[1:2, :]
    o_ref[0] = _apply_act(y, act).astype(o_ref.dtype)


def dwconv_bn_act(x, w, sb, *, kernel, stride, act):
    """Depthwise conv; x:(B,H,W,C) bf16, w:(k*k,C) bf16, sb:(2,C) f32."""
    B, H, W, C = x.shape
    p = (kernel - 1) // 2
    Ho = (H + 2 * p - kernel) // stride + 1
    Wo = (W + 2 * p - kernel) // stride + 1
    A = -(-kernel // stride)            # ceil(k / stride) taps per phase axis
    HA, WA = Ho + A - 1, Wo + A - 1
    Hp = max(H + 2 * p, stride * HA)
    Wp = max(W + 2 * p, stride * WA)
    xpad = jnp.pad(x, ((0, 0), (p, Hp - H - p), (p, Wp - W - p), (0, 0)))
    if stride == 1:
        phases = xpad[None]             # no extra HBM copy for stride-1 layers
    else:
        phases = jnp.stack(
            [xpad[:, rh::stride, rw::stride, :][:, :HA, :WA, :]
             for rh in range(stride) for rw in range(stride)], axis=0)
    P = phases.shape[0]

    # TODO(synk): grid is per-image only; add output-row tiling for very large
    # spatial extents (not needed for MobileNetV3 resolutions).
    return pl.pallas_call(
        partial(_dw_kernel, k=kernel, stride=stride, A=A, Ho=Ho, Wo=Wo, act=act),
        out_shape=jax.ShapeDtypeStruct((B, Ho, Wo, C), jnp.bfloat16),
        grid=(B,),
        in_specs=[
            pl.BlockSpec((P, 1, HA, WA, C), lambda b: (0, b, 0, 0, 0)),
            pl.BlockSpec((kernel * kernel, C), lambda b: (0, 0)),
            pl.BlockSpec((2, C), lambda b: (0, 0)),
        ],
        out_specs=pl.BlockSpec((1, Ho, Wo, C), lambda b: (b, 0, 0, 0)),
        compiler_params=_cparams("parallel"),
    )(phases, w, sb)


# ----------------------------- squeeze-excitation scale ----------------------

def _se_scale_kernel(x_ref, w1_ref, b1_ref, w2_ref, b2_ref, o_ref, *, inv_hw):
    xb = x_ref[0].astype(jnp.float32)                        # (HW, C)
    pooled = jnp.sum(xb, axis=0, keepdims=True) * inv_hw     # (1, C)
    s = jnp.dot(pooled.astype(jnp.bfloat16), w1_ref[...],
                preferred_element_type=jnp.float32)
    s = jnp.maximum(s + b1_ref[...], 0.0)                    # fc1 + ReLU
    s = jnp.dot(s.astype(jnp.bfloat16), w2_ref[...],
                preferred_element_type=jnp.float32)
    o_ref[0] = jnp.clip(s + b2_ref[...] + 3.0, 0.0, 6.0) * (1.0 / 6.0)  # h-sig


def se_scale(x, w1, b1, w2, b2):
    """Only the (B,1,C) SE scale; the rescale is fused into the project conv."""
    B, H, W, C = x.shape
    HW = H * W
    Sq = w1.shape[1]
    return pl.pallas_call(
        partial(_se_scale_kernel, inv_hw=1.0 / HW),
        out_shape=jax.ShapeDtypeStruct((B, 1, C), jnp.float32),
        grid=(B,),
        in_specs=[
            pl.BlockSpec((1, HW, C), lambda b: (b, 0, 0)),
            pl.BlockSpec((C, Sq), lambda b: (0, 0)),
            pl.BlockSpec((1, Sq), lambda b: (0, 0)),
            pl.BlockSpec((Sq, C), lambda b: (0, 0)),
            pl.BlockSpec((1, C), lambda b: (0, 0)),
        ],
        out_specs=pl.BlockSpec((1, 1, C), lambda b: (b, 0, 0)),
        compiler_params=_cparams("parallel"),
    )(x.reshape(B, HW, C), w1, b1, w2, b2)


# ----------------------------- fused avg-pool + classifier -------------------

def _pool_classifier_kernel(x_ref, w1_ref, b1_ref, w2_ref, b2_ref, o_ref, *,
                            inv_hw):
    pooled = jnp.sum(x_ref[0].astype(jnp.float32), axis=0,
                     keepdims=True) * inv_hw                         # (1, C)
    h = jnp.dot(pooled.astype(jnp.bfloat16), w1_ref[...],
                preferred_element_type=jnp.float32) + b1_ref[...]
    h = h * (jnp.clip(h + 3.0, 0.0, 6.0) * (1.0 / 6.0))              # hardswish
    # TODO(synk): nn.Dropout(p=0.2) is stochastic in train mode; identity here
    # (inference semantics).
    o_ref[0] = jnp.dot(h.astype(jnp.bfloat16), w2_ref[...],
                       preferred_element_type=jnp.float32) + b2_ref[...]


def pool_and_classify(x, w1, b1, w2, b2):
    B, H, W, C = x.shape
    HW = H * W
    Lc = w1.shape[1]
    NC = w2.shape[1]
    y = pl.pallas_call(
        partial(_pool_classifier_kernel, inv_hw=1.0 / HW),
        out_shape=jax.ShapeDtypeStruct((B, 1, NC), jnp.float32),
        grid=(B,),
        in_specs=[
            pl.BlockSpec((1, HW, C), lambda b: (b, 0, 0)),
            pl.BlockSpec((C, Lc), lambda b: (0, 0)),
            pl.BlockSpec((1, Lc), lambda b: (0, 0)),
            pl.BlockSpec((Lc, NC), lambda b: (0, 0)),
            pl.BlockSpec((1, NC), lambda b: (0, 0)),
        ],
        out_specs=pl.BlockSpec((1, 1, NC), lambda b: (b, 0, 0)),
        compiler_params=_cparams("parallel"),
    )(x.reshape(B, HW, C), w1, b1, w2, b2)
    return y.reshape(B, NC)


# ----------------------------- parameters ------------------------------------

def _embed(arr, shape):
    """Zero-pad `arr` up to `shape` (weights for padded channels are zero)."""
    return jnp.pad(arr, [(0, t - s) for s, t in zip(arr.shape, shape)])


def init_params(key, configs, lastconv_output_c, last_channel, num_classes):
    keys = iter(jax.random.split(key, 128))
    bn_s = 1.0 / math.sqrt(1.0 + BN_EPS)   # folded eval-mode BN (fresh stats)

    def sb_pair(c_pad):
        return jnp.stack([jnp.full((c_pad,), bn_s, jnp.float32),
                          jnp.zeros((c_pad,), jnp.float32)])

    def kaiming(shape, fan_out):
        return jax.random.normal(next(keys), shape, jnp.float32) * \
            math.sqrt(2.0 / fan_out)

    params = {}
    c1 = configs[0].input_c
    c1p = _pad_c(c1)
    w = kaiming((27, c1), 9 * c1)                      # stem 3x3, fan_out=k*k*Cout
    params['stem_w'] = _embed(w, (27, c1p)).astype(jnp.bfloat16)
    params['stem_sb'] = sb_pair(c1p)

    blocks = []
    for cnf in configs:
        cin_p = _pad_c(cnf.input_c)
        ce_p = _pad_c(cnf.expanded_c)
        co_p = _pad_c(cnf.out_c)
        k = cnf.kernel
        p = {}
        if cnf.expanded_c != cnf.input_c:
            w = kaiming((cnf.input_c, cnf.expanded_c), cnf.expanded_c)
            p['expand_w'] = _embed(w, (cin_p, ce_p)).astype(jnp.bfloat16)
            p['expand_sb'] = sb_pair(ce_p)
        w = kaiming((k * k, cnf.expanded_c), k * k * cnf.expanded_c)
        p['dw_w'] = _embed(w, (k * k, ce_p)).astype(jnp.bfloat16)
        p['dw_sb'] = sb_pair(ce_p)
        if cnf.use_se:
            sq = _make_divisible(cnf.expanded_c // 4, 8)
            sq_p = _pad_c(sq)
            w1 = kaiming((cnf.expanded_c, sq), sq)
            p['se_w1'] = _embed(w1, (ce_p, sq_p)).astype(jnp.bfloat16)
            p['se_b1'] = jnp.zeros((1, sq_p), jnp.float32)
            w2 = kaiming((sq, cnf.expanded_c), cnf.expanded_c)
            p['se_w2'] = _embed(w2, (sq_p, ce_p)).astype(jnp.bfloat16)
            p['se_b2'] = jnp.zeros((1, ce_p), jnp.float32)
        w = kaiming((cnf.expanded_c, cnf.out_c), cnf.out_c)
        p['proj_w'] = _embed(w, (ce_p, co_p)).astype(jnp.bfloat16)
        p['proj_sb'] = sb_pair(co_p)
        blocks.append(p)
    params['blocks'] = blocks

    cin = configs[-1].out_c
    cin_p = _pad_c(cin)
    ch_p = _pad_c(lastconv_output_c)
    w = kaiming((cin, lastconv_output_c), lastconv_output_c)
    params['head_w'] = _embed(w, (cin_p, ch_p)).astype(jnp.bfloat16)
    params['head_sb'] = sb_pair(ch_p)

    lc_p = _pad_c(last_channel)
    nc_p = _pad_c(num_classes)
    w = jax.random.normal(next(keys), (lastconv_output_c, last_channel),
                          jnp.float32) * 0.01
    params['fc1_w'] = _embed(w, (ch_p, lc_p)).astype(jnp.bfloat16)
    params['fc1_b'] = jnp.zeros((1, lc_p), jnp.float32)
    w = jax.random.normal(next(keys), (last_channel, num_classes),
                          jnp.float32) * 0.01
    params['fc2_w'] = _embed(w, (lc_p, nc_p)).astype(jnp.bfloat16)
    params['fc2_b'] = jnp.zeros((1, nc_p), jnp.float32)
    return params


# ----------------------------- forward ---------------------------------------

def mobilenet_v3_forward(params, configs, x_nchw, num_classes):
    # NCHW (PyTorch) -> NHWC once; activations travel as bf16 through HBM,
    # per-kernel math (accumulate / affine / activation) stays in f32.
    x = jnp.transpose(x_nchw, (0, 2, 3, 1)).astype(jnp.bfloat16)

    # features[0]: ConvBNActivation(3 -> first_c, k=3, s=2, Hardswish)
    x = conv_kxk_bn_act(x, params['stem_w'], params['stem_sb'],
                        kernel=3, stride=2, act='hardswish')

    # InvertedResidual blocks
    # TODO(synk): optionally fuse whole blocks into one pallas_call when the
    # expanded feature map fits the chip's VMEM budget.
    for cnf, p in zip(configs, params['blocks']):
        act = 'hardswish' if cnf.use_hs else 'relu'
        inp = x
        y = x
        if cnf.expanded_c != cnf.input_c:
            y = conv1x1_bn_act(y, p['expand_w'], p['expand_sb'], act)
        y = dwconv_bn_act(y, p['dw_w'], p['dw_sb'],
                          kernel=cnf.kernel, stride=cnf.stride, act=act)
        use_res = cnf.stride == 1 and cnf.input_c == cnf.out_c
        res = inp if use_res else None
        if cnf.use_se:
            s = se_scale(y, p['se_w1'], p['se_b1'], p['se_w2'], p['se_b2'])
            x = conv1x1_proj_se(y, s, p['proj_w'], p['proj_sb'], residual=res)
        else:
            x = conv1x1_bn_act(y, p['proj_w'], p['proj_sb'], 'identity',
                               residual=res)

    # last ConvBNActivation(last_in -> 6*last_in, k=1, Hardswish)
    x = conv1x1_bn_act(x, params['head_w'], params['head_sb'], 'hardswish')

    # AdaptiveAvgPool2d(1) + flatten + classifier (fused into one kernel)
    logits = pool_and_classify(x, params['fc1_w'], params['fc1_b'],
                               params['fc2_w'], params['fc2_b'])
    return logits[:, :num_classes]


# ----------------------------- main ------------------------------------------

if __name__ == "__main__":
    width_multi = 1.0
    configs = [
        # input_c, kernel, expanded_c, out_c, use_se, act, stride
        IRConfig(16, 3, 16, 16, True, 'RE', 2, width_multi),
        IRConfig(16, 3, 72, 24, False, 'RE', 2, width_multi),
        IRConfig(24, 5, 96, 40, True, 'HS', 1, width_multi),
        IRConfig(40, 5, 120, 40, True, 'HS', 1, width_multi),  # residual block
    ]
    lastconv_output_c = 6 * configs[-1].out_c   # 240
    last_channel = 64
    num_classes = 10

    key = jax.random.PRNGKey(0)
    pkey, xkey = jax.random.split(key)
    params = init_params(pkey, configs, lastconv_output_c, last_channel,
                         num_classes)

    # small input consistent with the module: NCHW, 3 channels
    x = jax.random.normal(xkey, (2, 3, 16, 16), jnp.float32)

    fwd = jax.jit(lambda p, xin: mobilenet_v3_forward(p, configs, xin,
                                                      num_classes))
    out = jax.block_until_ready(fwd(params, x))
    assert out.shape == (2, num_classes)
    assert bool(jnp.all(jnp.isfinite(out)))
    print("KERNEL_OK")
</pallas_src>

<mosaic_0001>
module attributes {stable_mosaic.version = 11 : i64} {
  func.func @_mm_kernel(%arg0: i32, %arg1: i32, %arg2: memref<128x27xbf16, #tpu.memory_space<vmem>>, %arg3: memref<27x16xbf16, #tpu.memory_space<vmem>>, %arg4: memref<2x16xf32, #tpu.memory_space<vmem>>, %arg5: memref<128x16xbf16, #tpu.memory_space<vmem>>) attributes {dimension_semantics = [#tpu.dimension_semantics<parallel>, #tpu.dimension_semantics<parallel>], iteration_bounds = array<i64: 1, 1>, scalar_prefetch = 0 : i64, scratch_operands = 0 : i64, tpu.core_type = #tpu.core_type<tc>, window_params = [{transform_indices = @transform_0, window_bounds = array<i64: 128, 27>}, {transform_indices = @transform_1, window_bounds = array<i64: 27, 16>}, {transform_indices = @transform_2, window_bounds = array<i64: 2, 16>}, {transform_indices = @transform_3, window_bounds = array<i64: 128, 16>}]} {
    %c0 = arith.constant 0 : index
    %c0_0 = arith.constant 0 : index
    %0 = vector.load %arg2[%c0, %c0_0] : memref<128x27xbf16, #tpu.memory_space<vmem>>, vector<128x27xbf16>
    %c0_1 = arith.constant 0 : index
    %c0_2 = arith.constant 0 : index
    %1 = vector.load %arg3[%c0_1, %c0_2] : memref<27x16xbf16, #tpu.memory_space<vmem>>, vector<27x16xbf16>
    %cst = arith.constant dense<0.000000e+00> : vector<128x16xf32>
    %2 = tpu.matmul %0, %1, %cst {dimension_numbers = #tpu.dot_dimension_numbers<[1], [0], [0], [1], [0, 0, 1, 1], [], []>} : vector<128x27xbf16>, vector<27x16xbf16>, vector<128x16xf32> -> vector<128x16xf32>
    %c0_3 = arith.constant 0 : index
    %c0_4 = arith.constant 0 : index
    %3 = vector.load %arg4[%c0_3, %c0_4] : memref<2x16xf32, #tpu.memory_space<vmem>>, vector<1x16xf32>
    %4 = vector.broadcast %3 : vector<1x16xf32> to vector<128x16xf32>
    %5 = arith.mulf %2, %4 : vector<128x16xf32>
    %c1 = arith.constant 1 : index
    %c0_5 = arith.constant 0 : index
    %6 = vector.load %arg4[%c1, %c0_5] : memref<2x16xf32, #tpu.memory_space<vmem>>, vector<1x16xf32>
    %7 = vector.broadcast %6 : vector<1x16xf32> to vector<128x16xf32>
    %8 = arith.addf %5, %7 : vector<128x16xf32>
    %cst_6 = arith.constant 3.000000e+00 : f32
    %9 = vector.broadcast %cst_6 : f32 to vector<128x16xf32>
    %10 = arith.addf %8, %9 : vector<128x16xf32>
    %cst_7 = arith.constant 0.000000e+00 : f32
    %cst_8 = arith.constant 6.000000e+00 : f32
    %11 = vector.broadcast %cst_7 : f32 to vector<128x16xf32>
    %12 = arith.maximumf %11, %10 : vector<128x16xf32>
    %13 = vector.broadcast %cst_8 : f32 to vector<128x16xf32>
    %14 = arith.minimumf %13, %12 : vector<128x16xf32>
    %cst_9 = arith.constant 0.166666672 : f32
    %15 = vector.broadcast %cst_9 : f32 to vector<128x16xf32>
    %16 = arith.mulf %14, %15 : vector<128x16xf32>
    %17 = arith.mulf %8, %16 : vector<128x16xf32>
    %18 = arith.truncf %17 : vector<128x16xf32> to vector<128x16xbf16>
    %c0_10 = arith.constant 0 : index
    %c0_11 = arith.constant 0 : index
    %19 = vector.load %arg5[%c0_10, %c0_11] : memref<128x16xbf16, #tpu.memory_space<vmem>>, vector<128x16xbf16>
    tpu.vector_store %arg5[%c0_10, %c0_11], %18 {strides = array<i32>} : memref<128x16xbf16, #tpu.memory_space<vmem>>, vector<128x16xbf16>,
    return
  }
  func.func @transform_0(%arg0: i32, %arg1: i32) -> (i32, i32) {
    %c0_i32 = arith.constant 0 : i32
    %c0_i32_0 = arith.constant 0 : i32
    return %arg1, %c0_i32 : i32, i32
  }
  func.func @transform_1(%arg0: i32, %arg1: i32) -> (i32, i32) {
    %c0_i32 = arith.constant 0 : i32
    %c0_i32_0 = arith.constant 0 : i32
    return %c0_i32, %arg0 : i32, i32
  }
  func.func @transform_2(%arg0: i32, %arg1: i32) -> (i32, i32) {
    %c0_i32 = arith.constant 0 : i32
    %c0_i32_0 = arith.constant 0 : i32
    return %c0_i32, %arg0 : i32, i32
  }
  func.func @transform_3(%arg0: i32, %arg1: i32) -> (i32, i32) {
    %c0_i32 = arith.constant 0 : i32
    return %arg1, %arg0 : i32, i32
  }
}

module attributes {stable_mosaic.version = 11 : i64} {
  func.func @_dw_kernel(%arg0: i32, %arg1: memref<4x1x5x5x16xbf16, #tpu.memory_space<vmem>>, %arg2: memref<9x16xbf16, #tpu.memory_space<vmem>>, %arg3: memref<2x16xf32, #tpu.memory_space<vmem>>, %arg4: memref<1x4x4x16xbf16, #tpu.memory_space<vmem>>) attributes {dimension_semantics = [#tpu.dimension_semantics<parallel>], iteration_bounds = array<i64: 2>, scalar_prefetch = 0 : i64, scratch_operands = 0 : i64, tpu.core_type = #tpu.core_type<tc>, window_params = [{transform_indices = @transform_0, window_bounds = array<i64: 4, 1, 5, 5, 16>}, {pipeline_mode = #tpu.pipeline_mode<synchronous>, transform_indices = @transform_1, window_bounds = array<i64: 9, 16>}, {pipeline_mode = #tpu.pipeline_mode<synchronous>, transform_indices = @transform_2, window_bounds = array<i64: 2, 16>}, {transform_indices = @transform_3, window_bounds = array<i64: 1, 4, 4, 16>}]} {
    %c0 = arith.constant 0 : index
    %c0_0 = arith.constant 0 : index
    %0 = vector.load %arg2[%c0, %c0_0] : memref<9x16xbf16, #tpu.memory_space<vmem>>, vector<9x16xbf16>
    %1 = arith.extf %0 : vector<9x16xbf16> to vector<9x16xf32>
    %cst = arith.constant 0.000000e+00 : f32
    %2 = vector.broadcast %cst : f32 to vector<4x4x16xf32>
    %c0_1 = arith.constant 0 : index
    %c0_2 = arith.constant 0 : index
    %c0_3 = arith.constant 0 : index
    %c0_4 = arith.constant 0 : index
    %c0_5 = arith.constant 0 : index
    %3 = vector.load %arg1[%c0_1, %c0_2, %c0_3, %c0_4, %c0_5] : memref<4x1x5x5x16xbf16, #tpu.memory_space<vmem>>, vector<1x1x5x4x16xbf16>
    %4 = vector.shape_cast %3 : vector<1x1x5x4x16xbf16> to vector<5x4x16xbf16>
    %5 = arith.extf %4 : vector<5x4x16xbf16> to vector<5x4x16xf32>
    %6 = vector.extract_strided_slice %5 {offsets = [0, 0, 0], sizes = [4, 4, 16], strides = [1, 1, 1]} : vector<5x4x16xf32> to vector<4x4x16xf32>
    %7 = vector.extract_strided_slice %1 {offsets = [0, 0], sizes = [1, 16], strides = [1, 1]} : vector<9x16xf32> to vector<1x16xf32>
    %8 = vector.shape_cast %7 : vector<1x16xf32> to vector<16xf32>
    %9 = vector.shape_cast %8 : vector<16xf32> to vector<1x1x16xf32>
    %10 = vector.broadcast %9 : vector<1x1x16xf32> to vector<4x4x16xf32>
    %11 = arith.mulf %6, %10 : vector<4x4x16xf32>
    %12 = arith.addf %2, %11 : vector<4x4x16xf32>
    %13 = vector.extract_strided_slice %5 {offsets = [1, 0, 0], sizes = [4, 4, 16], strides = [1, 1, 1]} : vector<5x4x16xf32> to vector<4x4x16xf32>
    %14 = vector.extract_strided_slice %1 {offsets = [6, 0], sizes = [1, 16], strides = [1, 1]} : vector<9x16xf32> to vector<1x16xf32>
    %15 = vector.shape_cast %14 : vector<1x16xf32> to vector<16xf32>
    %16 = vector.shape_cast %15 : vector<16xf32> to vector<1x1x16xf32>
    %17 = vector.broadcast %16 : vector<1x1x16xf32> to vector<4x4x16xf32>
    %18 = arith.mulf %13, %17 : vector<4x4x16xf32>
    %19 = arith.addf %12, %18 : vector<4x4x16xf32>
    %c0_6 = arith.constant 0 : index
    %c0_7 = arith.constant 0 : index
    %c0_8 = arith.constant 0 : index
    %c1 = arith.constant 1 : index
    %c0_9 = arith.constant 0 : index
    %20 = vector.load %arg1[%c0_6, %c0_7, %c0_8, %c1, %c0_9] : memref<4x1x5x5x16xbf16, #tpu.memory_space<vmem>>, vector<1x1x5x4x16xbf16>
    %21 = vector.shape_cast %20 : vector<1x1x5x4x16xbf16> to vector<5x4x16xbf16>
    %22 = arith.extf %21 : vector<5x4x16xbf16> to vector<5x4x16xf32>
    %23 = vector.extract_strided_slice %22 {offsets = [0, 0, 0], sizes = [4, 4, 16], strides = [1, 1, 1]} : vector<5x4x16xf32> to vector<4x4x16xf32>
    %24 = vector.extract_strided_slice %1 {offsets = [2, 0], sizes = [1, 16], strides = [1, 1]} : vector<9x16xf32> to vector<1x16xf32>
    %25 = vector.shape_cast %24 : vector<1x16xf32> to vector<16xf32>
    %26 = vector.shape_cast %25 : vector<16xf32> to vector<1x1x16xf32>
    %27 = vector.broadcast %26 : vector<1x1x16xf32> to vector<4x4x16xf32>
    %28 = arith.mulf %23, %27 : vector<4x4x16xf32>
    %29 = arith.addf %19, %28 : vector<4x4x16xf32>
    %30 = vector.extract_strided_slice %22 {offsets = [1, 0, 0], sizes = [4, 4, 16], strides = [1, 1, 1]} : vector<5x4x16xf32> to vector<4x4x16xf32>
    %31 = vector.extract_strided_slice %1 {offsets = [8, 0], sizes = [1, 16], strides = [1, 1]} : vector<9x16xf32> to vector<1x16xf32>
    %32 = vector.shape_cast %31 : vector<1x16xf32> to vector<16xf32>
    %33 = vector.shape_cast %32 : vector<16xf32> to vector<1x1x16xf32>
    %34 = vector.broadcast %33 : vector<1x1x16xf32> to vector<4x4x16xf32>
    %35 = arith.mulf %30, %34 : vector<4x4x16xf32>
    %36 = arith.addf %29, %35 : vector<4x4x16xf32>
    %c1_10 = arith.constant 1 : index
    %c0_11 = arith.constant 0 : index
    %c0_12 = arith.constant 0 : index
    %c0_13 = arith.constant 0 : index
    %c0_14 = arith.constant 0 : index
    %37 = vector.load %arg1[%c1_10, %c0_11, %c0_12, %c0_13, %c0_14] : memref<4x1x5x5x16xbf16, #tpu.memory_space<vmem>>, vector<1x1x5x4x16xbf16>
    %38 = vector.shape_cast %37 : vector<1x1x5x4x16xbf16> to vector<5x4x16xbf16>
    %39 = arith.extf %38 : vector<5x4x16xbf16> to vector<5x4x16xf32>
    %40 = vector.extract_strided_slice %39 {offsets = [0, 0, 0], sizes = [4, 4, 16], strides = [1, 1, 1]} : vector<5x4x16xf32> to vector<4x4x16xf32>
    %41 = vector.extract_strided_slice %1 {offsets = [1, 0], sizes = [1, 16], strides = [1, 1]} : vector<9x16xf32> to vector<1x16xf32>
    %42 = vector.shape_cast %41 : vector<1x16xf32> to vector<16xf32>
    %43 = vector.shape_cast %42 : vector<16xf32> to vector<1x1x16xf32>
    %44 = vector.broadcast %43 : vector<1x1x16xf32> to vector<4x4x16xf32>
    %45 = arith.mulf %40, %44 : vector<4x4x16xf32>
    %46 = arith.addf %36, %45 : vector<4x4x16xf32>
    %47 = vector.extract_strided_slice %39 {offsets = [1, 0, 0], sizes = [4, 4, 16], strides = [1, 1, 1]} : vector<5x4x16xf32> to vector<4x4x16xf32>
    %48 = vector.extract_strided_slice %1 {offsets = [7, 0], sizes = [1, 16], strides = [1, 1]} : vector<9x16xf32> to vector<1x16xf32>
    %49 = vector.shape_cast %48 : vector<1x16xf32> to vector<16xf32>
    %50 = vector.shape_cast %49 : vector<16xf32> to vector<1x1x16xf32>
    %51 = vector.broadcast %50 : vector<1x1x16xf32> to vector<4x4x16xf32>
    %52 = arith.mulf %47, %51 : vector<4x4x16xf32>
    %53 = arith.addf %46, %52 : vector<4x4x16xf32>
    %c2 = arith.constant 2 : index
    %c0_15 = arith.constant 0 : index
    %c0_16 = arith.constant 0 : index
    %c0_17 = arith.constant 0 : index
    %c0_18 = arith.constant 0 : index
    %54 = vector.load %arg1[%c2, %c0_15, %c0_16, %c0_17, %c0_18] : memref<4x1x5x5x16xbf16, #tpu.memory_space<vmem>>, vector<1x1x5x4x16xbf16>
    %55 = vector.shape_cast %54 : vector<1x1x5x4x16xbf16> to vector<5x4x16xbf16>
    %56 = arith.extf %55 : vector<5x4x16xbf16> to vector<5x4x16xf32>
    %57 = vector.extract_strided_slice %56 {offsets = [0, 0, 0], sizes = [4, 4, 16], strides = [1, 1, 1]} : vector<5x4x16xf32> to vector<4x4x16xf32>
    %58 = vector.extract_strided_slice %1 {offsets = [3, 0], sizes = [1, 16], strides = [1, 1]} : vector<9x16xf32> to vector<1x16xf32>
    %59 = vector.shape_cast %58 : vector<1x16xf32> to vector<16xf32>
    %60 = vector.shape_cast %59 : vector<16xf32> to vector<1x1x16xf32>
    %61 = vector.broadcast %60 : vector<1x1x16xf32> to vector<4x4x16xf32>
    %62 = arith.mulf %57, %61 : vector<4x4x16xf32>
    %63 = arith.addf %53, %62 : vector<4x4x16xf32>
    %c2_19 = arith.constant 2 : index
    %c0_20 = arith.constant 0 : index
    %c0_21 = arith.constant 0 : index
    %c1_22 = arith.constant 1 : index
    %c0_23 = arith.constant 0 : index
    %64 = vector.load %arg1[%c2_19, %c0_20, %c0_21, %c1_22, %c0_23] : memref<4x1x5x5x16xbf16, #tpu.memory_space<vmem>>, vector<1x1x5x4x16xbf16>
    %65 = vector.shape_cast %64 : vector<1x1x5x4x16xbf16> to vector<5x4x16xbf16>
    %66 = arith.extf %65 : vector<5x4x16xbf16> to vector<5x4x16xf32>
    %67 = vector.extract_strided_slice %66 {offsets = [0, 0, 0], sizes = [4, 4, 16], strides = [1, 1, 1]} : vector<5x4x16xf32> to vector<4x4x16xf32>
    %68 = vector.extract_strided_slice %1 {offsets = [5, 0], sizes = [1, 16], strides = [1, 1]} : vector<9x16xf32> to vector<1x16xf32>
    %69 = vector.shape_cast %68 : vector<1x16xf32> to vector<16xf32>
    %70 = vector.shape_cast %69 : vector<16xf32> to vector<1x1x16xf32>
    %71 = vector.broadcast %70 : vector<1x1x16xf32> to vector<4x4x16xf32>
    %72 = arith.mulf %67, %71 : vector<4x4x16xf32>
    %73 = arith.addf %63, %72 : vector<4x4x16xf32>
    %c3 = arith.constant 3 : index
    %c0_24 = arith.constant 0 : index
    %c0_25 = arith.constant 0 : index
    %c0_26 = arith.constant 0 : index
    %c0_27 = arith.constant 0 : index
    %74 = vector.load %arg1[%c3, %c0_24, %c0_25, %c0_26, %c0_27] : memref<4x1x5x5x16xbf16, #tpu.memory_space<vmem>>, vector<1x1x5x4x16xbf16>
    %75 = vector.shape_cast %74 : vector<1x1x5x4x16xbf16> to vector<5x4x16xbf16>
    %76 = arith.extf %75 : vector<5x4x16xbf16> to vector<5x4x16xf32>
    %77 = vector.extract_strided_slice %76 {offsets = [0, 0, 0], sizes = [4, 4, 16], strides = [1, 1, 1]} : vector<5x4x16xf32> to vector<4x4x16xf32>
    %78 = vector.extract_strided_slice %1 {offsets = [4, 0], sizes = [1, 16], strides = [1, 1]} : vector<9x16xf32> to vector<1x16xf32>
    %79 = vector.shape_cast %78 : vector<1x16xf32> to vector<16xf32>
    %80 = vector.shape_cast %79 : vector<16xf32> to vector<1x1x16xf32>
    %81 = vector.broadcast %80 : vector<1x1x16xf32> to vector<4x4x16xf32>
    %82 = arith.mulf %77, %81 : vector<4x4x16xf32>
    %83 = arith.addf %73, %82 : vector<4x4x16xf32>
    %c0_28 = arith.constant 0 : index
    %c0_29 = arith.constant 0 : index
    %84 = vector.load %arg3[%c0_28, %c0_29] : memref<2x16xf32, #tpu.memory_space<vmem>>, vector<1x16xf32>
    %85 = vector.shape_cast %84 : vector<1x16xf32> to vector<1x1x16xf32>
    %86 = vector.broadcast %85 : vector<1x1x16xf32> to vector<4x4x16xf32>
    %87 = arith.mulf %83, %86 : vector<4x4x16xf32>
    %c1_30 = arith.constant 1 : index
    %c0_31 = arith.constant 0 : index
    %88 = vector.load %arg3[%c1_30, %c0_31] : memref<2x16xf32, #tpu.memory_space<vmem>>, vector<1x16xf32>
    %89 = vector.shape_cast %88 : vector<1x16xf32> to vector<1x1x16xf32>
    %90 = vector.broadcast %89 : vector<1x1x16xf32> to vector<4x4x16xf32>
    %91 = arith.addf %87, %90 : vector<4x4x16xf32>
    %cst_32 = arith.constant 0.000000e+00 : f32
    %92 = vector.broadcast %cst_32 : f32 to vector<4x4x16xf32>
    %93 = arith.maximumf %91, %92 : vector<4x4x16xf32>
    %94 = arith.truncf %93 : vector<4x4x16xf32> to vector<4x4x16xbf16>
    %c0_33 = arith.constant 0 : index
    %c0_34 = arith.constant 0 : index
    %c0_35 = arith.constant 0 : index
    %c0_36 = arith.constant 0 : index
    %95 = vector.load %arg4[%c0_33, %c0_34, %c0_35, %c0_36] : memref<1x4x4x16xbf16, #tpu.memory_space<vmem>>, vector<1x4x4x16xbf16>
    %96 = vector.shape_cast %95 : vector<1x4x4x16xbf16> to vector<4x4x16xbf16>
    %97 = vector.shape_cast %94 : vector<4x4x16xbf16> to vector<1x4x4x16xbf16>
    tpu.vector_store %arg4[%c0_33, %c0_34, %c0_35, %c0_36], %97 {strides = array<i32>} : memref<1x4x4x16xbf16, #tpu.memory_space<vmem>>, vector<1x4x4x16xbf16>,
    return
  }
  func.func @transform_0(%arg0: i32) -> (i32, i32, i32, i32, i32) {
    %c0_i32 = arith.constant 0 : i32
    %c0_i32_0 = arith.constant 0 : i32
    %c0_i32_1 = arith.constant 0 : i32
    %c0_i32_2 = arith.constant 0 : i32
    %c0_i32_3 = arith.constant 0 : i32
    return %c0_i32, %arg0, %c0_i32_0, %c0_i32_1, %c0_i32_2 : i32, i32, i32, i32, i32
  }
  func.func @transform_1(%arg0: i32) -> (i32, i32) {
    %c0_i32 = arith.constant 0 : i32
    %c0_i32_0 = arith.constant 0 : i32
    %c0_i32_1 = arith.constant 0 : i32
    return %c0_i32, %c0_i32_0 : i32, i32
  }
  func.func @transform_2(%arg0: i32) -> (i32, i32) {
    %c0_i32 = arith.constant 0 : i32
    %c0_i32_0 = arith.constant 0 : i32
    %c0_i32_1 = arith.constant 0 : i32
    return %c0_i32, %c0_i32_0 : i32, i32
  }
  func.func @transform_3(%arg0: i32) -> (i32, i32, i32, i32) {
    %c0_i32 = arith.constant 0 : i32
    %c0_i32_0 = arith.constant 0 : i32
    %c0_i32_1 = arith.constant 0 : i32
    %c0_i32_2 = arith.constant 0 : i32
    return %arg0, %c0_i32, %c0_i32_0, %c0_i32_1 : i32, i32, i32, i32
  }
}

module attributes {stable_mosaic.version = 11 : i64} {
  func.func @_se_scale_kernel(%arg0: i32, %arg1: memref<1x16x16xbf16, #tpu.memory_space<vmem>>, %arg2: memref<16x8xbf16, #tpu.memory_space<vmem>>, %arg3: memref<1x8xf32, #tpu.memory_space<vmem>>, %arg4: memref<8x16xbf16, #tpu.memory_space<vmem>>, %arg5: memref<1x16xf32, #tpu.memory_space<vmem>>, %arg6: memref<1x1x16xf32, #tpu.memory_space<vmem>>) attributes {dimension_semantics = [#tpu.dimension_semantics<parallel>], iteration_bounds = array<i64: 2>, scalar_prefetch = 0 : i64, scratch_operands = 0 : i64, tpu.core_type = #tpu.core_type<tc>, window_params = [{transform_indices = @transform_0, window_bounds = array<i64: 1, 16, 16>}, {pipeline_mode = #tpu.pipeline_mode<synchronous>, transform_indices = @transform_1, window_bounds = array<i64: 16, 8>}, {pipeline_mode = #tpu.pipeline_mode<synchronous>, transform_indices = @transform_2, window_bounds = array<i64: 1, 8>}, {pipeline_mode = #tpu.pipeline_mode<synchronous>, transform_indices = @transform_3, window_bounds = array<i64: 8, 16>}, {pipeline_mode = #tpu.pipeline_mode<synchronous>, transform_indices = @transform_4, window_bounds = array<i64: 1, 16>}, {transform_indices = @transform_5, window_bounds = array<i64: 1, 1, 16>}]} {
    %c0 = arith.constant 0 : index
    %c0_0 = arith.constant 0 : index
    %c0_1 = arith.constant 0 : index
    %0 = vector.load %arg1[%c0, %c0_0, %c0_1] : memref<1x16x16xbf16, #tpu.memory_space<vmem>>, vector<1x16x16xbf16>
    %1 = vector.shape_cast %0 : vector<1x16x16xbf16> to vector<16x16xbf16>
    %2 = arith.extf %1 : vector<16x16xbf16> to vector<16x16xf32>
    %cst = arith.constant dense<0.000000e+00> : vector<16xf32>
    %3 = vector.multi_reduction <add>, %2, %cst [0] : vector<16x16xf32> to vector<16xf32>
    %4 = vector.shape_cast %3 : vector<16xf32> to vector<1x16xf32>
    %cst_2 = arith.constant 6.250000e-02 : f32
    %5 = vector.broadcast %cst_2 : f32 to vector<1x16xf32>
    %6 = arith.mulf %4, %5 : vector<1x16xf32>
    %7 = arith.truncf %6 : vector<1x16xf32> to vector<1x16xbf16>
    %c0_3 = arith.constant 0 : index
    %c0_4 = arith.constant 0 : index
    %8 = vector.load %arg2[%c0_3, %c0_4] : memref<16x8xbf16, #tpu.memory_space<vmem>>, vector<16x8xbf16>
    %cst_5 = arith.constant dense<0.000000e+00> : vector<1x8xf32>
    %9 = tpu.matmul %7, %8, %cst_5 {dimension_numbers = #tpu.dot_dimension_numbers<[1], [0], [0], [1], [0, 0, 1, 1], [], []>} : vector<1x16xbf16>, vector<16x8xbf16>, vector<1x8xf32> -> vector<1x8xf32>
    %c0_6 = arith.constant 0 : index
    %c0_7 = arith.constant 0 : index
    %10 = vector.load %arg3[%c0_6, %c0_7] : memref<1x8xf32, #tpu.memory_space<vmem>>, vector<1x8xf32>
    %11 = arith.addf %9, %10 : vector<1x8xf32>
    %cst_8 = arith.constant 0.000000e+00 : f32
    %12 = vector.broadcast %cst_8 : f32 to vector<1x8xf32>
    %13 = arith.maximumf %11, %12 : vector<1x8xf32>
    %14 = arith.truncf %13 : vector<1x8xf32> to vector<1x8xbf16>
    %c0_9 = arith.constant 0 : index
    %c0_10 = arith.constant 0 : index
    %15 = vector.load %arg4[%c0_9, %c0_10] : memref<8x16xbf16, #tpu.memory_space<vmem>>, vector<8x16xbf16>
    %cst_11 = arith.constant dense<0.000000e+00> : vector<1x16xf32>
    %16 = tpu.matmul %14, %15, %cst_11 {dimension_numbers = #tpu.dot_dimension_numbers<[1], [0], [0], [1], [0, 0, 1, 1], [], []>} : vector<1x8xbf16>, vector<8x16xbf16>, vector<1x16xf32> -> vector<1x16xf32>
    %c0_12 = arith.constant 0 : index
    %c0_13 = arith.constant 0 : index
    %17 = vector.load %arg5[%c0_12, %c0_13] : memref<1x16xf32, #tpu.memory_space<vmem>>, vector<1x16xf32>
    %18 = arith.addf %16, %17 : vector<1x16xf32>
    %cst_14 = arith.constant 3.000000e+00 : f32
    %19 = vector.broadcast %cst_14 : f32 to vector<1x16xf32>
    %20 = arith.addf %18, %19 : vector<1x16xf32>
    %cst_15 = arith.constant 0.000000e+00 : f32
    %cst_16 = arith.constant 6.000000e+00 : f32
    %21 = vector.broadcast %cst_15 : f32 to vector<1x16xf32>
    %22 = arith.maximumf %21, %20 : vector<1x16xf32>
    %23 = vector.broadcast %cst_16 : f32 to vector<1x16xf32>
    %24 = arith.minimumf %23, %22 : vector<1x16xf32>
    %cst_17 = arith.constant 0.166666672 : f32
    %25 = vector.broadcast %cst_17 : f32 to vector<1x16xf32>
    %26 = arith.mulf %24, %25 : vector<1x16xf32>
    %c0_18 = arith.constant 0 : index
    %c0_19 = arith.constant 0 : index
    %c0_20 = arith.constant 0 : index
    %27 = vector.load %arg6[%c0_18, %c0_19, %c0_20] : memref<1x1x16xf32, #tpu.memory_space<vmem>>, vector<1x1x16xf32>
    %28 = vector.shape_cast %27 : vector<1x1x16xf32> to vector<1x16xf32>
    %29 = vector.shape_cast %26 : vector<1x16xf32> to vector<1x1x16xf32>
    tpu.vector_store %arg6[%c0_18, %c0_19, %c0_20], %29 {strides = array<i32>} : memref<1x1x16xf32, #tpu.memory_space<vmem>>, vector<1x1x16xf32>,
    return
  }
  func.func @transform_0(%arg0: i32) -> (i32, i32, i32) {
    %c0_i32 = arith.constant 0 : i32
    %c0_i32_0 = arith.constant 0 : i32
    %c0_i32_1 = arith.constant 0 : i32
    return %arg0, %c0_i32, %c0_i32_0 : i32, i32, i32
  }
  func.func @transform_1(%arg0: i32) -> (i32, i32) {
    %c0_i32 = arith.constant 0 : i32
    %c0_i32_0 = arith.constant 0 : i32
    %c0_i32_1 = arith.constant 0 : i32
    return %c0_i32, %c0_i32_0 : i32, i32
  }
  func.func @transform_2(%arg0: i32) -> (i32, i32) {
    %c0_i32 = arith.constant 0 : i32
    %c0_i32_0 = arith.constant 0 : i32
    %c0_i32_1 = arith.constant 0 : i32
    return %c0_i32, %c0_i32_0 : i32, i32
  }
  func.func @transform_3(%arg0: i32) -> (i32, i32) {
    %c0_i32 = arith.constant 0 : i32
    %c0_i32_0 = arith.constant 0 : i32
    %c0_i32_1 = arith.constant 0 : i32
    return %c0_i32, %c0_i32_0 : i32, i32
  }
  func.func @transform_4(%arg0: i32) -> (i32, i32) {
    %c0_i32 = arith.constant 0 : i32
    %c0_i32_0 = arith.constant 0 : i32
    %c0_i32_1 = arith.constant 0 : i32
    return %c0_i32, %c0_i32_0 : i32, i32
  }
  func.func @transform_5(%arg0: i32) -> (i32, i32, i32) {
    %c0_i32 = arith.constant 0 : i32
    %c0_i32_0 = arith.constant 0 : i32
    %c0_i32_1 = arith.constant 0 : i32
    return %arg0, %c0_i32, %c0_i32_0 : i32, i32, i32
  }
}

module attributes {stable_mosaic.version = 11 : i64} {
  func.func @_mm_scaled_kernel(%arg0: i32, %arg1: i32, %arg2: memref<1x16x16xbf16, #tpu.memory_space<vmem>>, %arg3: memref<1x1x16xf32, #tpu.memory_space<vmem>>, %arg4: memref<16x16xbf16, #tpu.memory_space<vmem>>, %arg5: memref<2x16xf32, #tpu.memory_space<vmem>>, %arg6: memref<1x16x16xbf16, #tpu.memory_space<vmem>>) attributes {dimension_semantics = [#tpu.dimension_semantics<parallel>, #tpu.dimension_semantics<parallel>], iteration_bounds = array<i64: 2, 1>, scalar_prefetch = 0 : i64, scratch_operands = 0 : i64, tpu.core_type = #tpu.core_type<tc>, window_params = [{transform_indices = @transform_0, window_bounds = array<i64: 1, 16, 16>}, {transform_indices = @transform_1, window_bounds = array<i64: 1, 1, 16>}, {transform_indices = @transform_2, window_bounds = array<i64: 16, 16>}, {transform_indices = @transform_3, window_bounds = array<i64: 2, 16>}, {transform_indices = @transform_4, window_bounds = array<i64: 1, 16, 16>}]} {
    %c0 = arith.constant 0 : index
    %c0_0 = arith.constant 0 : index
    %c0_1 = arith.constant 0 : index
    %0 = vector.load %arg2[%c0, %c0_0, %c0_1] : memref<1x16x16xbf16, #tpu.memory_space<vmem>>, vector<1x16x16xbf16>
    %1 = vector.shape_cast %0 : vector<1x16x16xbf16> to vector<16x16xbf16>
    %2 = arith.extf %1 : vector<16x16xbf16> to vector<16x16xf32>
    %c0_2 = arith.constant 0 : index
    %c0_3 = arith.constant 0 : index
    %c0_4 = arith.constant 0 : index
    %3 = vector.load %arg3[%c0_2, %c0_3, %c0_4] : memref<1x1x16xf32, #tpu.memory_space<vmem>>, vector<1x1x16xf32>
    %4 = vector.shape_cast %3 : vector<1x1x16xf32> to vector<1x16xf32>
    %5 = vector.broadcast %4 : vector<1x16xf32> to vector<16x16xf32>
    %6 = arith.mulf %2, %5 : vector<16x16xf32>
    %7 = arith.truncf %6 : vector<16x16xf32> to vector<16x16xbf16>
    %c0_5 = arith.constant 0 : index
    %c0_6 = arith.constant 0 : index
    %8 = vector.load %arg4[%c0_5, %c0_6] : memref<16x16xbf16, #tpu.memory_space<vmem>>, vector<16x16xbf16>
    %cst = arith.constant dense<0.000000e+00> : vector<16x16xf32>
    %9 = tpu.matmul %7, %8, %cst {dimension_numbers = #tpu.dot_dimension_numbers<[1], [0], [0], [1], [0, 0, 1, 1], [], []>} : vector<16x16xbf16>, vector<16x16xbf16>, vector<16x16xf32> -> vector<16x16xf32>
    %c0_7 = arith.constant 0 : index
    %c0_8 = arith.constant 0 : index
    %10 = vector.load %arg5[%c0_7, %c0_8] : memref<2x16xf32, #tpu.memory_space<vmem>>, vector<1x16xf32>
    %11 = vector.broadcast %10 : vector<1x16xf32> to vector<16x16xf32>
    %12 = arith.mulf %9, %11 : vector<16x16xf32>
    %c1 = arith.constant 1 : index
    %c0_9 = arith.constant 0 : index
    %13 = vector.load %arg5[%c1, %c0_9] : memref<2x16xf32, #tpu.memory_space<vmem>>, vector<1x16xf32>
    %14 = vector.broadcast %13 : vector<1x16xf32> to vector<16x16xf32>
    %15 = arith.addf %12, %14 : vector<16x16xf32>
    %16 = arith.truncf %15 : vector<16x16xf32> to vector<16x16xbf16>
    %c0_10 = arith.constant 0 : index
    %c0_11 = arith.constant 0 : index
    %c0_12 = arith.constant 0 : index
    %17 = vector.load %arg6[%c0_10, %c0_11, %c0_12] : memref<1x16x16xbf16, #tpu.memory_space<vmem>>, vector<1x16x16xbf16>
    %18 = vector.shape_cast %17 : vector<1x16x16xbf16> to vector<16x16xbf16>
    %19 = vector.shape_cast %16 : vector<16x16xbf16> to vector<1x16x16xbf16>
    tpu.vector_store %arg6[%c0_10, %c0_11, %c0_12], %19 {strides = array<i32>} : memref<1x16x16xbf16, #tpu.memory_space<vmem>>, vector<1x16x16xbf16>,
    return
  }
  func.func @transform_0(%arg0: i32, %arg1: i32) -> (i32, i32, i32) {
    %c0_i32 = arith.constant 0 : i32
    %c0_i32_0 = arith.constant 0 : i32
    %c0_i32_1 = arith.constant 0 : i32
    return %arg0, %c0_i32, %c0_i32_0 : i32, i32, i32
  }
  func.func @transform_1(%arg0: i32, %arg1: i32) -> (i32, i32, i32) {
    %c0_i32 = arith.constant 0 : i32
    %c0_i32_0 = arith.constant 0 : i32
    %c0_i32_1 = arith.constant 0 : i32
    return %arg0, %c0_i32, %c0_i32_0 : i32, i32, i32
  }
  func.func @transform_2(%arg0: i32, %arg1: i32) -> (i32, i32) {
    %c0_i32 = arith.constant 0 : i32
    %c0_i32_0 = arith.constant 0 : i32
    return %c0_i32, %arg1 : i32, i32
  }
  func.func @transform_3(%arg0: i32, %arg1: i32) -> (i32, i32) {
    %c0_i32 = arith.constant 0 : i32
    %c0_i32_0 = arith.constant 0 : i32
    return %c0_i32, %arg1 : i32, i32
  }
  func.func @transform_4(%arg0: i32, %arg1: i32) -> (i32, i32, i32) {
    %c0_i32 = arith.constant 0 : i32
    %c0_i32_0 = arith.constant 0 : i32
    return %arg0, %c0_i32, %arg1 : i32, i32, i32
  }
}

module attributes {stable_mosaic.version = 11 : i64} {
  func.func @_mm_kernel(%arg0: i32, %arg1: i32, %arg2: memref<32x16xbf16, #tpu.memory_space<vmem>>, %arg3: memref<16x72xbf16, #tpu.memory_space<vmem>>, %arg4: memref<2x72xf32, #tpu.memory_space<vmem>>, %arg5: memref<32x72xbf16, #tpu.memory_space<vmem>>) attributes {dimension_semantics = [#tpu.dimension_semantics<parallel>, #tpu.dimension_semantics<parallel>], iteration_bounds = array<i64: 1, 1>, scalar_prefetch = 0 : i64, scratch_operands = 0 : i64, tpu.core_type = #tpu.core_type<tc>, window_params = [{transform_indices = @transform_0, window_bounds = array<i64: 32, 16>}, {transform_indices = @transform_1, window_bounds = array<i64: 16, 72>}, {transform_indices = @transform_2, window_bounds = array<i64: 2, 72>}, {transform_indices = @transform_3, window_bounds = array<i64: 32, 72>}]} {
    %c0 = arith.constant 0 : index
    %c0_0 = arith.constant 0 : index
    %0 = vector.load %arg2[%c0, %c0_0] : memref<32x16xbf16, #tpu.memory_space<vmem>>, vector<32x16xbf16>
    %c0_1 = arith.constant 0 : index
    %c0_2 = arith.constant 0 : index
    %1 = vector.load %arg3[%c0_1, %c0_2] : memref<16x72xbf16, #tpu.memory_space<vmem>>, vector<16x72xbf16>
    %cst = arith.constant dense<0.000000e+00> : vector<32x72xf32>
    %2 = tpu.matmul %0, %1, %cst {dimension_numbers = #tpu.dot_dimension_numbers<[1], [0], [0], [1], [0, 0, 1, 1], [], []>} : vector<32x16xbf16>, vector<16x72xbf16>, vector<32x72xf32> -> vector<32x72xf32>
    %c0_3 = arith.constant 0 : index
    %c0_4 = arith.constant 0 : index
    %3 = vector.load %arg4[%c0_3, %c0_4] : memref<2x72xf32, #tpu.memory_space<vmem>>, vector<1x72xf32>
    %4 = vector.broadcast %3 : vector<1x72xf32> to vector<32x72xf32>
    %5 = arith.mulf %2, %4 : vector<32x72xf32>
    %c1 = arith.constant 1 : index
    %c0_5 = arith.constant 0 : index
    %6 = vector.load %arg4[%c1, %c0_5] : memref<2x72xf32, #tpu.memory_space<vmem>>, vector<1x72xf32>
    %7 = vector.broadcast %6 : vector<1x72xf32> to vector<32x72xf32>
    %8 = arith.addf %5, %7 : vector<32x72xf32>
    %cst_6 = arith.constant 0.000000e+00 : f32
    %9 = vector.broadcast %cst_6 : f32 to vector<32x72xf32>
    %10 = arith.maximumf %8, %9 : vector<32x72xf32>
    %11 = arith.truncf %10 : vector<32x72xf32> to vector<32x72xbf16>
    %c0_7 = arith.constant 0 : index
    %c0_8 = arith.constant 0 : index
    %12 = vector.load %arg5[%c0_7, %c0_8] : memref<32x72xbf16, #tpu.memory_space<vmem>>, vector<32x72xbf16>
    tpu.vector_store %arg5[%c0_7, %c0_8], %11 {strides = array<i32>} : memref<32x72xbf16, #tpu.memory_space<vmem>>, vector<32x72xbf16>,
    return
  }
  func.func @transform_0(%arg0: i32, %arg1: i32) -> (i32, i32) {
    %c0_i32 = arith.constant 0 : i32
    %c0_i32_0 = arith.constant 0 : i32
    return %arg1, %c0_i32 : i32, i32
  }
  func.func @transform_1(%arg0: i32, %arg1: i32) -> (i32, i32) {
    %c0_i32 = arith.constant 0 : i32
    %c0_i32_0 = arith.constant 0 : i32
    return %c0_i32, %arg0 : i32, i32
  }
  func.func @transform_2(%arg0: i32, %arg1: i32) -> (i32, i32) {
    %c0_i32 = arith.constant 0 : i32
    %c0_i32_0 = arith.constant 0 : i32
    return %c0_i32, %arg0 : i32, i32
  }
  func.func @transform_3(%arg0: i32, %arg1: i32) -> (i32, i32) {
    %c0_i32 = arith.constant 0 : i32
    return %arg1, %arg0 : i32, i32
  }
}

module attributes {stable_mosaic.version = 11 : i64} {
  func.func @_dw_kernel(%arg0: i32, %arg1: memref<4x1x3x3x72xbf16, #tpu.memory_space<vmem>>, %arg2: memref<9x72xbf16, #tpu.memory_space<vmem>>, %arg3: memref<2x72xf32, #tpu.memory_space<vmem>>, %arg4: memref<1x2x2x72xbf16, #tpu.memory_space<vmem>>) attributes {dimension_semantics = [#tpu.dimension_semantics<parallel>], iteration_bounds = array<i64: 2>, scalar_prefetch = 0 : i64, scratch_operands = 0 : i64, tpu.core_type = #tpu.core_type<tc>, window_params = [{transform_indices = @transform_0, window_bounds = array<i64: 4, 1, 3, 3, 72>}, {pipeline_mode = #tpu.pipeline_mode<synchronous>, transform_indices = @transform_1, window_bounds = array<i64: 9, 72>}, {pipeline_mode = #tpu.pipeline_mode<synchronous>, transform_indices = @transform_2, window_bounds = array<i64: 2, 72>}, {transform_indices = @transform_3, window_bounds = array<i64: 1, 2, 2, 72>}]} {
    %c0 = arith.constant 0 : index
    %c0_0 = arith.constant 0 : index
    %0 = vector.load %arg2[%c0, %c0_0] : memref<9x72xbf16, #tpu.memory_space<vmem>>, vector<9x72xbf16>
    %1 = arith.extf %0 : vector<9x72xbf16> to vector<9x72xf32>
    %cst = arith.constant 0.000000e+00 : f32
    %2 = vector.broadcast %cst : f32 to vector<2x2x72xf32>
    %c0_1 = arith.constant 0 : index
    %c0_2 = arith.constant 0 : index
    %c0_3 = arith.constant 0 : index
    %c0_4 = arith.constant 0 : index
    %c0_5 = arith.constant 0 : index
    %3 = vector.load %arg1[%c0_1, %c0_2, %c0_3, %c0_4, %c0_5] : memref<4x1x3x3x72xbf16, #tpu.memory_space<vmem>>, vector<1x1x3x2x72xbf16>
    %4 = vector.shape_cast %3 : vector<1x1x3x2x72xbf16> to vector<3x2x72xbf16>
    %5 = arith.extf %4 : vector<3x2x72xbf16> to vector<3x2x72xf32>
    %6 = vector.extract_strided_slice %5 {offsets = [0, 0, 0], sizes = [2, 2, 72], strides = [1, 1, 1]} : vector<3x2x72xf32> to vector<2x2x72xf32>
    %7 = vector.extract_strided_slice %1 {offsets = [0, 0], sizes = [1, 72], strides = [1, 1]} : vector<9x72xf32> to vector<1x72xf32>
    %8 = vector.shape_cast %7 : vector<1x72xf32> to vector<72xf32>
    %9 = vector.shape_cast %8 : vector<72xf32> to vector<1x1x72xf32>
    %10 = vector.broadcast %9 : vector<1x1x72xf32> to vector<2x2x72xf32>
    %11 = arith.mulf %6, %10 : vector<2x2x72xf32>
    %12 = arith.addf %2, %11 : vector<2x2x72xf32>
    %13 = vector.extract_strided_slice %5 {offsets = [1, 0, 0], sizes = [2, 2, 72], strides = [1, 1, 1]} : vector<3x2x72xf32> to vector<2x2x72xf32>
    %14 = vector.extract_strided_slice %1 {offsets = [6, 0], sizes = [1, 72], strides = [1, 1]} : vector<9x72xf32> to vector<1x72xf32>
    %15 = vector.shape_cast %14 : vector<1x72xf32> to vector<72xf32>
    %16 = vector.shape_cast %15 : vector<72xf32> to vector<1x1x72xf32>
    %17 = vector.broadcast %16 : vector<1x1x72xf32> to vector<2x2x72xf32>
    %18 = arith.mulf %13, %17 : vector<2x2x72xf32>
    %19 = arith.addf %12, %18 : vector<2x2x72xf32>
    %c0_6 = arith.constant 0 : index
    %c0_7 = arith.constant 0 : index
    %c0_8 = arith.constant 0 : index
    %c1 = arith.constant 1 : index
    %c0_9 = arith.constant 0 : index
    %20 = vector.load %arg1[%c0_6, %c0_7, %c0_8, %c1, %c0_9] : memref<4x1x3x3x72xbf16, #tpu.memory_space<vmem>>, vector<1x1x3x2x72xbf16>
    %21 = vector.shape_cast %20 : vector<1x1x3x2x72xbf16> to vector<3x2x72xbf16>
    %22 = arith.extf %21 : vector<3x2x72xbf16> to vector<3x2x72xf32>
    %23 = vector.extract_strided_slice %22 {offsets = [0, 0, 0], sizes = [2, 2, 72], strides = [1, 1, 1]} : vector<3x2x72xf32> to vector<2x2x72xf32>
    %24 = vector.extract_strided_slice %1 {offsets = [2, 0], sizes = [1, 72], strides = [1, 1]} : vector<9x72xf32> to vector<1x72xf32>
    %25 = vector.shape_cast %24 : vector<1x72xf32> to vector<72xf32>
    %26 = vector.shape_cast %25 : vector<72xf32> to vector<1x1x72xf32>
    %27 = vector.broadcast %26 : vector<1x1x72xf32> to vector<2x2x72xf32>
    %28 = arith.mulf %23, %27 : vector<2x2x72xf32>
    %29 = arith.addf %19, %28 : vector<2x2x72xf32>
    %30 = vector.extract_strided_slice %22 {offsets = [1, 0, 0], sizes = [2, 2, 72], strides = [1, 1, 1]} : vector<3x2x72xf32> to vector<2x2x72xf32>
    %31 = vector.extract_strided_slice %1 {offsets = [8, 0], sizes = [1, 72], strides = [1, 1]} : vector<9x72xf32> to vector<1x72xf32>
    %32 = vector.shape_cast %31 : vector<1x72xf32> to vector<72xf32>
    %33 = vector.shape_cast %32 : vector<72xf32> to vector<1x1x72xf32>
    %34 = vector.broadcast %33 : vector<1x1x72xf32> to vector<2x2x72xf32>
    %35 = arith.mulf %30, %34 : vector<2x2x72xf32>
    %36 = arith.addf %29, %35 : vector<2x2x72xf32>
    %c1_10 = arith.constant 1 : index
    %c0_11 = arith.constant 0 : index
    %c0_12 = arith.constant 0 : index
    %c0_13 = arith.constant 0 : index
    %c0_14 = arith.constant 0 : index
    %37 = vector.load %arg1[%c1_10, %c0_11, %c0_12, %c0_13, %c0_14] : memref<4x1x3x3x72xbf16, #tpu.memory_space<vmem>>, vector<1x1x3x2x72xbf16>
    %38 = vector.shape_cast %37 : vector<1x1x3x2x72xbf16> to vector<3x2x72xbf16>
    %39 = arith.extf %38 : vector<3x2x72xbf16> to vector<3x2x72xf32>
    %40 = vector.extract_strided_slice %39 {offsets = [0, 0, 0], sizes = [2, 2, 72], strides = [1, 1, 1]} : vector<3x2x72xf32> to vector<2x2x72xf32>
    %41 = vector.extract_strided_slice %1 {offsets = [1, 0], sizes = [1, 72], strides = [1, 1]} : vector<9x72xf32> to vector<1x72xf32>
    %42 = vector.shape_cast %41 : vector<1x72xf32> to vector<72xf32>
    %43 = vector.shape_cast %42 : vector<72xf32> to vector<1x1x72xf32>
    %44 = vector.broadcast %43 : vector<1x1x72xf32> to vector<2x2x72xf32>
    %45 = arith.mulf %40, %44 : vector<2x2x72xf32>
    %46 = arith.addf %36, %45 : vector<2x2x72xf32>
    %47 = vector.extract_strided_slice %39 {offsets = [1, 0, 0], sizes = [2, 2, 72], strides = [1, 1, 1]} : vector<3x2x72xf32> to vector<2x2x72xf32>
    %48 = vector.extract_strided_slice %1 {offsets = [7, 0], sizes = [1, 72], strides = [1, 1]} : vector<9x72xf32> to vector<1x72xf32>
    %49 = vector.shape_cast %48 : vector<1x72xf32> to vector<72xf32>
    %50 = vector.shape_cast %49 : vector<72xf32> to vector<1x1x72xf32>
    %51 = vector.broadcast %50 : vector<1x1x72xf32> to vector<2x2x72xf32>
    %52 = arith.mulf %47, %51 : vector<2x2x72xf32>
    %53 = arith.addf %46, %52 : vector<2x2x72xf32>
    %c2 = arith.constant 2 : index
    %c0_15 = arith.constant 0 : index
    %c0_16 = arith.constant 0 : index
    %c0_17 = arith.constant 0 : index
    %c0_18 = arith.constant 0 : index
    %54 = vector.load %arg1[%c2, %c0_15, %c0_16, %c0_17, %c0_18] : memref<4x1x3x3x72xbf16, #tpu.memory_space<vmem>>, vector<1x1x3x2x72xbf16>
    %55 = vector.shape_cast %54 : vector<1x1x3x2x72xbf16> to vector<3x2x72xbf16>
    %56 = arith.extf %55 : vector<3x2x72xbf16> to vector<3x2x72xf32>
    %57 = vector.extract_strided_slice %56 {offsets = [0, 0, 0], sizes = [2, 2, 72], strides = [1, 1, 1]} : vector<3x2x72xf32> to vector<2x2x72xf32>
    %58 = vector.extract_strided_slice %1 {offsets = [3, 0], sizes = [1, 72], strides = [1, 1]} : vector<9x72xf32> to vector<1x72xf32>
    %59 = vector.shape_cast %58 : vector<1x72xf32> to vector<72xf32>
    %60 = vector.shape_cast %59 : vector<72xf32> to vector<1x1x72xf32>
    %61 = vector.broadcast %60 : vector<1x1x72xf32> to vector<2x2x72xf32>
    %62 = arith.mulf %57, %61 : vector<2x2x72xf32>
    %63 = arith.addf %53, %62 : vector<2x2x72xf32>
    %c2_19 = arith.constant 2 : index
    %c0_20 = arith.constant 0 : index
    %c0_21 = arith.constant 0 : index
    %c1_22 = arith.constant 1 : index
    %c0_23 = arith.constant 0 : index
    %64 = vector.load %arg1[%c2_19, %c0_20, %c0_21, %c1_22, %c0_23] : memref<4x1x3x3x72xbf16, #tpu.memory_space<vmem>>, vector<1x1x3x2x72xbf16>
    %65 = vector.shape_cast %64 : vector<1x1x3x2x72xbf16> to vector<3x2x72xbf16>
    %66 = arith.extf %65 : vector<3x2x72xbf16> to vector<3x2x72xf32>
    %67 = vector.extract_strided_slice %66 {offsets = [0, 0, 0], sizes = [2, 2, 72], strides = [1, 1, 1]} : vector<3x2x72xf32> to vector<2x2x72xf32>
    %68 = vector.extract_strided_slice %1 {offsets = [5, 0], sizes = [1, 72], strides = [1, 1]} : vector<9x72xf32> to vector<1x72xf32>
    %69 = vector.shape_cast %68 : vector<1x72xf32> to vector<72xf32>
    %70 = vector.shape_cast %69 : vector<72xf32> to vector<1x1x72xf32>
    %71 = vector.broadcast %70 : vector<1x1x72xf32> to vector<2x2x72xf32>
    %72 = arith.mulf %67, %71 : vector<2x2x72xf32>
    %73 = arith.addf %63, %72 : vector<2x2x72xf32>
    %c3 = arith.constant 3 : index
    %c0_24 = arith.constant 0 : index
    %c0_25 = arith.constant 0 : index
    %c0_26 = arith.constant 0 : index
    %c0_27 = arith.constant 0 : index
    %74 = vector.load %arg1[%c3, %c0_24, %c0_25, %c0_26, %c0_27] : memref<4x1x3x3x72xbf16, #tpu.memory_space<vmem>>, vector<1x1x3x2x72xbf16>
    %75 = vector.shape_cast %74 : vector<1x1x3x2x72xbf16> to vector<3x2x72xbf16>
    %76 = arith.extf %75 : vector<3x2x72xbf16> to vector<3x2x72xf32>
    %77 = vector.extract_strided_slice %76 {offsets = [0, 0, 0], sizes = [2, 2, 72], strides = [1, 1, 1]} : vector<3x2x72xf32> to vector<2x2x72xf32>
    %78 = vector.extract_strided_slice %1 {offsets = [4, 0], sizes = [1, 72], strides = [1, 1]} : vector<9x72xf32> to vector<1x72xf32>
    %79 = vector.shape_cast %78 : vector<1x72xf32> to vector<72xf32>
    %80 = vector.shape_cast %79 : vector<72xf32> to vector<1x1x72xf32>
    %81 = vector.broadcast %80 : vector<1x1x72xf32> to vector<2x2x72xf32>
    %82 = arith.mulf %77, %81 : vector<2x2x72xf32>
    %83 = arith.addf %73, %82 : vector<2x2x72xf32>
    %c0_28 = arith.constant 0 : index
    %c0_29 = arith.constant 0 : index
    %84 = vector.load %arg3[%c0_28, %c0_29] : memref<2x72xf32, #tpu.memory_space<vmem>>, vector<1x72xf32>
    %85 = vector.shape_cast %84 : vector<1x72xf32> to vector<1x1x72xf32>
    %86 = vector.broadcast %85 : vector<1x1x72xf32> to vector<2x2x72xf32>
    %87 = arith.mulf %83, %86 : vector<2x2x72xf32>
    %c1_30 = arith.constant 1 : index
    %c0_31 = arith.constant 0 : index
    %88 = vector.load %arg3[%c1_30, %c0_31] : memref<2x72xf32, #tpu.memory_space<vmem>>, vector<1x72xf32>
    %89 = vector.shape_cast %88 : vector<1x72xf32> to vector<1x1x72xf32>
    %90 = vector.broadcast %89 : vector<1x1x72xf32> to vector<2x2x72xf32>
    %91 = arith.addf %87, %90 : vector<2x2x72xf32>
    %cst_32 = arith.constant 0.000000e+00 : f32
    %92 = vector.broadcast %cst_32 : f32 to vector<2x2x72xf32>
    %93 = arith.maximumf %91, %92 : vector<2x2x72xf32>
    %94 = arith.truncf %93 : vector<2x2x72xf32> to vector<2x2x72xbf16>
    %c0_33 = arith.constant 0 : index
    %c0_34 = arith.constant 0 : index
    %c0_35 = arith.constant 0 : index
    %c0_36 = arith.constant 0 : index
    %95 = vector.load %arg4[%c0_33, %c0_34, %c0_35, %c0_36] : memref<1x2x2x72xbf16, #tpu.memory_space<vmem>>, vector<1x2x2x72xbf16>
    %96 = vector.shape_cast %95 : vector<1x2x2x72xbf16> to vector<2x2x72xbf16>
    %97 = vector.shape_cast %94 : vector<2x2x72xbf16> to vector<1x2x2x72xbf16>
    tpu.vector_store %arg4[%c0_33, %c0_34, %c0_35, %c0_36], %97 {strides = array<i32>} : memref<1x2x2x72xbf16, #tpu.memory_space<vmem>>, vector<1x2x2x72xbf16>,
    return
  }
  func.func @transform_0(%arg0: i32) -> (i32, i32, i32, i32, i32) {
    %c0_i32 = arith.constant 0 : i32
    %c0_i32_0 = arith.constant 0 : i32
    %c0_i32_1 = arith.constant 0 : i32
    %c0_i32_2 = arith.constant 0 : i32
    %c0_i32_3 = arith.constant 0 : i32
    return %c0_i32, %arg0, %c0_i32_0, %c0_i32_1, %c0_i32_2 : i32, i32, i32, i32, i32
  }
  func.func @transform_1(%arg0: i32) -> (i32, i32) {
    %c0_i32 = arith.constant 0 : i32
    %c0_i32_0 = arith.constant 0 : i32
    %c0_i32_1 = arith.constant 0 : i32
    return %c0_i32, %c0_i32_0 : i32, i32
  }
  func.func @transform_2(%arg0: i32) -> (i32, i32) {
    %c0_i32 = arith.constant 0 : i32
    %c0_i32_0 = arith.constant 0 : i32
    %c0_i32_1 = arith.constant 0 : i32
    return %c0_i32, %c0_i32_0 : i32, i32
  }
  func.func @transform_3(%arg0: i32) -> (i32, i32, i32, i32) {
    %c0_i32 = arith.constant 0 : i32
    %c0_i32_0 = arith.constant 0 : i32
    %c0_i32_1 = arith.constant 0 : i32
    %c0_i32_2 = arith.constant 0 : i32
    return %arg0, %c0_i32, %c0_i32_0, %c0_i32_1 : i32, i32, i32, i32
  }
}

module attributes {stable_mosaic.version = 11 : i64} {
  func.func @_mm_kernel(%arg0: i32, %arg1: i32, %arg2: memref<16x24xbf16, #tpu.memory_space<vmem>>, %arg3: memref<24x96xbf16, #tpu.memory_space<vmem>>, %arg4: memref<2x96xf32, #tpu.memory_space<vmem>>, %arg5: memref<16x96xbf16, #tpu.memory_space<vmem>>) attributes {dimension_semantics = [#tpu.dimension_semantics<parallel>, #tpu.dimension_semantics<parallel>], iteration_bounds = array<i64: 1, 1>, scalar_prefetch = 0 : i64, scratch_operands = 0 : i64, tpu.core_type = #tpu.core_type<tc>, window_params = [{transform_indices = @transform_0, window_bounds = array<i64: 16, 24>}, {transform_indices = @transform_1, window_bounds = array<i64: 24, 96>}, {transform_indices = @transform_2, window_bounds = array<i64: 2, 96>}, {transform_indices = @transform_3, window_bounds = array<i64: 16, 96>}]} {
    %c0 = arith.constant 0 : index
    %c0_0 = arith.constant 0 : index
    %0 = vector.load %arg2[%c0, %c0_0] : memref<16x24xbf16, #tpu.memory_space<vmem>>, vector<16x24xbf16>
    %c0_1 = arith.constant 0 : index
    %c0_2 = arith.constant 0 : index
    %1 = vector.load %arg3[%c0_1, %c0_2] : memref<24x96xbf16, #tpu.memory_space<vmem>>, vector<24x96xbf16>
    %cst = arith.constant dense<0.000000e+00> : vector<16x96xf32>
    %2 = tpu.matmul %0, %1, %cst {dimension_numbers = #tpu.dot_dimension_numbers<[1], [0], [0], [1], [0, 0, 1, 1], [], []>} : vector<16x24xbf16>, vector<24x96xbf16>, vector<16x96xf32> -> vector<16x96xf32>
    %c0_3 = arith.constant 0 : index
    %c0_4 = arith.constant 0 : index
    %3 = vector.load %arg4[%c0_3, %c0_4] : memref<2x96xf32, #tpu.memory_space<vmem>>, vector<1x96xf32>
    %4 = vector.broadcast %3 : vector<1x96xf32> to vector<16x96xf32>
    %5 = arith.mulf %2, %4 : vector<16x96xf32>
    %c1 = arith.constant 1 : index
    %c0_5 = arith.constant 0 : index
    %6 = vector.load %arg4[%c1, %c0_5] : memref<2x96xf32, #tpu.memory_space<vmem>>, vector<1x96xf32>
    %7 = vector.broadcast %6 : vector<1x96xf32> to vector<16x96xf32>
    %8 = arith.addf %5, %7 : vector<16x96xf32>
    %cst_6 = arith.constant 3.000000e+00 : f32
    %9 = vector.broadcast %cst_6 : f32 to vector<16x96xf32>
    %10 = arith.addf %8, %9 : vector<16x96xf32>
    %cst_7 = arith.constant 0.000000e+00 : f32
    %cst_8 = arith.constant 6.000000e+00 : f32
    %11 = vector.broadcast %cst_7 : f32 to vector<16x96xf32>
    %12 = arith.maximumf %11, %10 : vector<16x96xf32>
    %13 = vector.broadcast %cst_8 : f32 to vector<16x96xf32>
    %14 = arith.minimumf %13, %12 : vector<16x96xf32>
    %cst_9 = arith.constant 0.166666672 : f32
    %15 = vector.broadcast %cst_9 : f32 to vector<16x96xf32>
    %16 = arith.mulf %14, %15 : vector<16x96xf32>
    %17 = arith.mulf %8, %16 : vector<16x96xf32>
    %18 = arith.truncf %17 : vector<16x96xf32> to vector<16x96xbf16>
    %c0_10 = arith.constant 0 : index
    %c0_11 = arith.constant 0 : index
    %19 = vector.load %arg5[%c0_10, %c0_11] : memref<16x96xbf16, #tpu.memory_space<vmem>>, vector<16x96xbf16>
    tpu.vector_store %arg5[%c0_10, %c0_11], %18 {strides = array<i32>} : memref<16x96xbf16, #tpu.memory_space<vmem>>, vector<16x96xbf16>,
    return
  }
  func.func @transform_0(%arg0: i32, %arg1: i32) -> (i32, i32) {
    %c0_i32 = arith.constant 0 : i32
    %c0_i32_0 = arith.constant 0 : i32
    return %arg1, %c0_i32 : i32, i32
  }
  func.func @transform_1(%arg0: i32, %arg1: i32) -> (i32, i32) {
    %c0_i32 = arith.constant 0 : i32
    %c0_i32_0 = arith.constant 0 : i32
    return %c0_i32, %arg0 : i32, i32
  }
  func.func @transform_2(%arg0: i32, %arg1: i32) -> (i32, i32) {
    %c0_i32 = arith.constant 0 : i32
    %c0_i32_0 = arith.constant 0 : i32
    return %c0_i32, %arg0 : i32, i32
  }
  func.func @transform_3(%arg0: i32, %arg1: i32) -> (i32, i32) {
    %c0_i32 = arith.constant 0 : i32
    return %arg1, %arg0 : i32, i32
  }
}

module attributes {stable_mosaic.version = 11 : i64} {
  func.func @_mm_kernel(%arg0: i32, %arg1: i32, %arg2: memref<16x72xbf16, #tpu.memory_space<vmem>>, %arg3: memref<72x24xbf16, #tpu.memory_space<vmem>>, %arg4: memref<2x24xf32, #tpu.memory_space<vmem>>, %arg5: memref<16x24xbf16, #tpu.memory_space<vmem>>) attributes {dimension_semantics = [#tpu.dimension_semantics<parallel>, #tpu.dimension_semantics<parallel>], iteration_bounds = array<i64: 1, 1>, scalar_prefetch = 0 : i64, scratch_operands = 0 : i64, tpu.core_type = #tpu.core_type<tc>, window_params = [{transform_indices = @transform_0, window_bounds = array<i64: 16, 72>}, {transform_indices = @transform_1, window_bounds = array<i64: 72, 24>}, {transform_indices = @transform_2, window_bounds = array<i64: 2, 24>}, {transform_indices = @transform_3, window_bounds = array<i64: 16, 24>}]} {
    %c0 = arith.constant 0 : index
    %c0_0 = arith.constant 0 : index
    %0 = vector.load %arg2[%c0, %c0_0] : memref<16x72xbf16, #tpu.memory_space<vmem>>, vector<16x72xbf16>
    %c0_1 = arith.constant 0 : index
    %c0_2 = arith.constant 0 : index
    %1 = vector.load %arg3[%c0_1, %c0_2] : memref<72x24xbf16, #tpu.memory_space<vmem>>, vector<72x24xbf16>
    %cst = arith.constant dense<0.000000e+00> : vector<16x24xf32>
    %2 = tpu.matmul %0, %1, %cst {dimension_numbers = #tpu.dot_dimension_numbers<[1], [0], [0], [1], [0, 0, 1, 1], [], []>} : vector<16x72xbf16>, vector<72x24xbf16>, vector<16x24xf32> -> vector<16x24xf32>
    %c0_3 = arith.constant 0 : index
    %c0_4 = arith.constant 0 : index
    %3 = vector.load %arg4[%c0_3, %c0_4] : memref<2x24xf32, #tpu.memory_space<vmem>>, vector<1x24xf32>
    %4 = vector.broadcast %3 : vector<1x24xf32> to vector<16x24xf32>
    %5 = arith.mulf %2, %4 : vector<16x24xf32>
    %c1 = arith.constant 1 : index
    %c0_5 = arith.constant 0 : index
    %6 = vector.load %arg4[%c1, %c0_5] : memref<2x24xf32, #tpu.memory_space<vmem>>, vector<1x24xf32>
    %7 = vector.broadcast %6 : vector<1x24xf32> to vector<16x24xf32>
    %8 = arith.addf %5, %7 : vector<16x24xf32>
    %9 = arith.truncf %8 : vector<16x24xf32> to vector<16x24xbf16>
    %c0_6 = arith.constant 0 : index
    %c0_7 = arith.constant 0 : index
    %10 = vector.load %arg5[%c0_6, %c0_7] : memref<16x24xbf16, #tpu.memory_space<vmem>>, vector<16x24xbf16>
    tpu.vector_store %arg5[%c0_6, %c0_7], %9 {strides = array<i32>} : memref<16x24xbf16, #tpu.memory_space<vmem>>, vector<16x24xbf16>,
    return
  }
  func.func @transform_0(%arg0: i32, %arg1: i32) -> (i32, i32) {
    %c0_i32 = arith.constant 0 : i32
    %c0_i32_0 = arith.constant 0 : i32
    return %arg1, %c0_i32 : i32, i32
  }
  func.func @transform_1(%arg0: i32, %arg1: i32) -> (i32, i32) {
    %c0_i32 = arith.constant 0 : i32
    %c0_i32_0 = arith.constant 0 : i32
    return %c0_i32, %arg0 : i32, i32
  }
  func.func @transform_2(%arg0: i32, %arg1: i32) -> (i32, i32) {
    %c0_i32 = arith.constant 0 : i32
    %c0_i32_0 = arith.constant 0 : i32
    return %c0_i32, %arg0 : i32, i32
  }
  func.func @transform_3(%arg0: i32, %arg1: i32) -> (i32, i32) {
    %c0_i32 = arith.constant 0 : i32
    return %arg1, %arg0 : i32, i32
  }
}

module attributes {stable_mosaic.version = 11 : i64} {
  func.func @_dw_kernel(%arg0: i32, %arg1: memref<1x1x6x6x96xbf16, #tpu.memory_space<vmem>>, %arg2: memref<25x96xbf16, #tpu.memory_space<vmem>>, %arg3: memref<2x96xf32, #tpu.memory_space<vmem>>, %arg4: memref<1x2x2x96xbf16, #tpu.memory_space<vmem>>) attributes {dimension_semantics = [#tpu.dimension_semantics<parallel>], iteration_bounds = array<i64: 2>, scalar_prefetch = 0 : i64, scratch_operands = 0 : i64, tpu.core_type = #tpu.core_type<tc>, window_params = [{transform_indices = @transform_0, window_bounds = array<i64: 1, 1, 6, 6, 96>}, {pipeline_mode = #tpu.pipeline_mode<synchronous>, transform_indices = @transform_1, window_bounds = array<i64: 25, 96>}, {pipeline_mode = #tpu.pipeline_mode<synchronous>, transform_indices = @transform_2, window_bounds = array<i64: 2, 96>}, {transform_indices = @transform_3, window_bounds = array<i64: 1, 2, 2, 96>}]} {
    %c0 = arith.constant 0 : index
    %c0_0 = arith.constant 0 : index
    %0 = vector.load %arg2[%c0, %c0_0] : memref<25x96xbf16, #tpu.memory_space<vmem>>, vector<25x96xbf16>
    %1 = arith.extf %0 : vector<25x96xbf16> to vector<25x96xf32>
    %cst = arith.constant 0.000000e+00 : f32
    %2 = vector.broadcast %cst : f32 to vector<2x2x96xf32>
    %c0_1 = arith.constant 0 : index
    %c0_2 = arith.constant 0 : index
    %c0_3 = arith.constant 0 : index
    %c0_4 = arith.constant 0 : index
    %c0_5 = arith.constant 0 : index
    %3 = vector.load %arg1[%c0_1, %c0_2, %c0_3, %c0_4, %c0_5] : memref<1x1x6x6x96xbf16, #tpu.memory_space<vmem>>, vector<1x1x6x2x96xbf16>
    %4 = vector.shape_cast %3 : vector<1x1x6x2x96xbf16> to vector<6x2x96xbf16>
    %5 = arith.extf %4 : vector<6x2x96xbf16> to vector<6x2x96xf32>
    %6 = vector.extract_strided_slice %5 {offsets = [0, 0, 0], sizes = [2, 2, 96], strides = [1, 1, 1]} : vector<6x2x96xf32> to vector<2x2x96xf32>
    %7 = vector.extract_strided_slice %1 {offsets = [0, 0], sizes = [1, 96], strides = [1, 1]} : vector<25x96xf32> to vector<1x96xf32>
    %8 = vector.shape_cast %7 : vector<1x96xf32> to vector<96xf32>
    %9 = vector.shape_cast %8 : vector<96xf32> to vector<1x1x96xf32>
    %10 = vector.broadcast %9 : vector<1x1x96xf32> to vector<2x2x96xf32>
    %11 = arith.mulf %6, %10 : vector<2x2x96xf32>
    %12 = arith.addf %2, %11 : vector<2x2x96xf32>
    %13 = vector.extract_strided_slice %5 {offsets = [1, 0, 0], sizes = [2, 2, 96], strides = [1, 1, 1]} : vector<6x2x96xf32> to vector<2x2x96xf32>
    %14 = vector.extract_strided_slice %1 {offsets = [5, 0], sizes = [1, 96], strides = [1, 1]} : vector<25x96xf32> to vector<1x96xf32>
    %15 = vector.shape_cast %14 : vector<1x96xf32> to vector<96xf32>
    %16 = vector.shape_cast %15 : vector<96xf32> to vector<1x1x96xf32>
    %17 = vector.broadcast %16 : vector<1x1x96xf32> to vector<2x2x96xf32>
    %18 = arith.mulf %13, %17 : vector<2x2x96xf32>
    %19 = arith.addf %12, %18 : vector<2x2x96xf32>
    %20 = vector.extract_strided_slice %5 {offsets = [2, 0, 0], sizes = [2, 2, 96], strides = [1, 1, 1]} : vector<6x2x96xf32> to vector<2x2x96xf32>
    %21 = vector.extract_strided_slice %1 {offsets = [10, 0], sizes = [1, 96], strides = [1, 1]} : vector<25x96xf32> to vector<1x96xf32>
    %22 = vector.shape_cast %21 : vector<1x96xf32> to vector<96xf32>
    %23 = vector.shape_cast %22 : vector<96xf32> to vector<1x1x96xf32>
    %24 = vector.broadcast %23 : vector<1x1x96xf32> to vector<2x2x96xf32>
    %25 = arith.mulf %20, %24 : vector<2x2x96xf32>
    %26 = arith.addf %19, %25 : vector<2x2x96xf32>
    %27 = vector.extract_strided_slice %5 {offsets = [3, 0, 0], sizes = [2, 2, 96], strides = [1, 1, 1]} : vector<6x2x96xf32> to vector<2x2x96xf32>
    %28 = vector.extract_strided_slice %1 {offsets = [15, 0], sizes = [1, 96], strides = [1, 1]} : vector<25x96xf32> to vector<1x96xf32>
    %29 = vector.shape_cast %28 : vector<1x96xf32> to vector<96xf32>
    %30 = vector.shape_cast %29 : vector<96xf32> to vector<1x1x96xf32>
    %31 = vector.broadcast %30 : vector<1x1x96xf32> to vector<2x2x96xf32>
    %32 = arith.mulf %27, %31 : vector<2x2x96xf32>
    %33 = arith.addf %26, %32 : vector<2x2x96xf32>
    %34 = vector.extract_strided_slice %5 {offsets = [4, 0, 0], sizes = [2, 2, 96], strides = [1, 1, 1]} : vector<6x2x96xf32> to vector<2x2x96xf32>
    %35 = vector.extract_strided_slice %1 {offsets = [20, 0], sizes = [1, 96], strides = [1, 1]} : vector<25x96xf32> to vector<1x96xf32>
    %36 = vector.shape_cast %35 : vector<1x96xf32> to vector<96xf32>
    %37 = vector.shape_cast %36 : vector<96xf32> to vector<1x1x96xf32>
    %38 = vector.broadcast %37 : vector<1x1x96xf32> to vector<2x2x96xf32>
    %39 = arith.mulf %34, %38 : vector<2x2x96xf32>
    %40 = arith.addf %33, %39 : vector<2x2x96xf32>
    %c0_6 = arith.constant 0 : index
    %c0_7 = arith.constant 0 : index
    %c0_8 = arith.constant 0 : index
    %c1 = arith.constant 1 : index
    %c0_9 = arith.constant 0 : index
    %41 = vector.load %arg1[%c0_6, %c0_7, %c0_8, %c1, %c0_9] : memref<1x1x6x6x96xbf16, #tpu.memory_space<vmem>>, vector<1x1x6x2x96xbf16>
    %42 = vector.shape_cast %41 : vector<1x1x6x2x96xbf16> to vector<6x2x96xbf16>
    %43 = arith.extf %42 : vector<6x2x96xbf16> to vector<6x2x96xf32>
    %44 = vector.extract_strided_slice %43 {offsets = [0, 0, 0], sizes = [2, 2, 96], strides = [1, 1, 1]} : vector<6x2x96xf32> to vector<2x2x96xf32>
    %45 = vector.extract_strided_slice %1 {offsets = [1, 0], sizes = [1, 96], strides = [1, 1]} : vector<25x96xf32> to vector<1x96xf32>
    %46 = vector.shape_cast %45 : vector<1x96xf32> to vector<96xf32>
    %47 = vector.shape_cast %46 : vector<96xf32> to vector<1x1x96xf32>
    %48 = vector.broadcast %47 : vector<1x1x96xf32> to vector<2x2x96xf32>
    %49 = arith.mulf %44, %48 : vector<2x2x96xf32>
    %50 = arith.addf %40, %49 : vector<2x2x96xf32>
    %51 = vector.extract_strided_slice %43 {offsets = [1, 0, 0], sizes = [2, 2, 96], strides = [1, 1, 1]} : vector<6x2x96xf32> to vector<2x2x96xf32>
    %52 = vector.extract_strided_slice %1 {offsets = [6, 0], sizes = [1, 96], strides = [1, 1]} : vector<25x96xf32> to vector<1x96xf32>
    %53 = vector.shape_cast %52 : vector<1x96xf32> to vector<96xf32>
    %54 = vector.shape_cast %53 : vector<96xf32> to vector<1x1x96xf32>
    %55 = vector.broadcast %54 : vector<1x1x96xf32> to vector<2x2x96xf32>
    %56 = arith.mulf %51, %55 : vector<2x2x96xf32>
    %57 = arith.addf %50, %56 : vector<2x2x96xf32>
    %58 = vector.extract_strided_slice %43 {offsets = [2, 0, 0], sizes = [2, 2, 96], strides = [1, 1, 1]} : vector<6x2x96xf32> to vector<2x2x96xf32>
    %59 = vector.extract_strided_slice %1 {offsets = [11, 0], sizes = [1, 96], strides = [1, 1]} : vector<25x96xf32> to vector<1x96xf32>
    %60 = vector.shape_cast %59 : vector<1x96xf32> to vector<96xf32>
    %61 = vector.shape_cast %60 : vector<96xf32> to vector<1x1x96xf32>
    %62 = vector.broadcast %61 : vector<1x1x96xf32> to vector<2x2x96xf32>
    %63 = arith.mulf %58, %62 : vector<2x2x96xf32>
    %64 = arith.addf %57, %63 : vector<2x2x96xf32>
    %65 = vector.extract_strided_slice %43 {offsets = [3, 0, 0], sizes = [2, 2, 96], strides = [1, 1, 1]} : vector<6x2x96xf32> to vector<2x2x96xf32>
    %66 = vector.extract_strided_slice %1 {offsets = [16, 0], sizes = [1, 96], strides = [1, 1]} : vector<25x96xf32> to vector<1x96xf32>
    %67 = vector.shape_cast %66 : vector<1x96xf32> to vector<96xf32>
    %68 = vector.shape_cast %67 : vector<96xf32> to vector<1x1x96xf32>
    %69 = vector.broadcast %68 : vector<1x1x96xf32> to vector<2x2x96xf32>
    %70 = arith.mulf %65, %69 : vector<2x2x96xf32>
    %71 = arith.addf %64, %70 : vector<2x2x96xf32>
    %72 = vector.extract_strided_slice %43 {offsets = [4, 0, 0], sizes = [2, 2, 96], strides = [1, 1, 1]} : vector<6x2x96xf32> to vector<2x2x96xf32>
    %73 = vector.extract_strided_slice %1 {offsets = [21, 0], sizes = [1, 96], strides = [1, 1]} : vector<25x96xf32> to vector<1x96xf32>
    %74 = vector.shape_cast %73 : vector<1x96xf32> to vector<96xf32>
    %75 = vector.shape_cast %74 : vector<96xf32> to vector<1x1x96xf32>
    %76 = vector.broadcast %75 : vector<1x1x96xf32> to vector<2x2x96xf32>
    %77 = arith.mulf %72, %76 : vector<2x2x96xf32>
    %78 = arith.addf %71, %77 : vector<2x2x96xf32>
    %c0_10 = arith.constant 0 : index
    %c0_11 = arith.constant 0 : index
    %c0_12 = arith.constant 0 : index
    %c2 = arith.constant 2 : index
    %c0_13 = arith.constant 0 : index
    %79 = vector.load %arg1[%c0_10, %c0_11, %c0_12, %c2, %c0_13] : memref<1x1x6x6x96xbf16, #tpu.memory_space<vmem>>, vector<1x1x6x2x96xbf16>
    %80 = vector.shape_cast %79 : vector<1x1x6x2x96xbf16> to vector<6x2x96xbf16>
    %81 = arith.extf %80 : vector<6x2x96xbf16> to vector<6x2x96xf32>
    %82 = vector.extract_strided_slice %81 {offsets = [0, 0, 0], sizes = [2, 2, 96], strides = [1, 1, 1]} : vector<6x2x96xf32> to vector<2x2x96xf32>
    %83 = vector.extract_strided_slice %1 {offsets = [2, 0], sizes = [1, 96], strides = [1, 1]} : vector<25x96xf32> to vector<1x96xf32>
    %84 = vector.shape_cast %83 : vector<1x96xf32> to vector<96xf32>
    %85 = vector.shape_cast %84 : vector<96xf32> to vector<1x1x96xf32>
    %86 = vector.broadcast %85 : vector<1x1x96xf32> to vector<2x2x96xf32>
    %87 = arith.mulf %82, %86 : vector<2x2x96xf32>
    %88 = arith.addf %78, %87 : vector<2x2x96xf32>
    %89 = vector.extract_strided_slice %81 {offsets = [1, 0, 0], sizes = [2, 2, 96], strides = [1, 1, 1]} : vector<6x2x96xf32> to vector<2x2x96xf32>
    %90 = vector.extract_strided_slice %1 {offsets = [7, 0], sizes = [1, 96], strides = [1, 1]} : vector<25x96xf32> to vector<1x96xf32>
    %91 = vector.shape_cast %90 : vector<1x96xf32> to vector<96xf32>
    %92 = vector.shape_cast %91 : vector<96xf32> to vector<1x1x96xf32>
    %93 = vector.broadcast %92 : vector<1x1x96xf32> to vector<2x2x96xf32>
    %94 = arith.mulf %89, %93 : vector<2x2x96xf32>
    %95 = arith.addf %88, %94 : vector<2x2x96xf32>
    %96 = vector.extract_strided_slice %81 {offsets = [2, 0, 0], sizes = [2, 2, 96], strides = [1, 1, 1]} : vector<6x2x96xf32> to vector<2x2x96xf32>
    %97 = vector.extract_strided_slice %1 {offsets = [12, 0], sizes = [1, 96], strides = [1, 1]} : vector<25x96xf32> to vector<1x96xf32>
    %98 = vector.shape_cast %97 : vector<1x96xf32> to vector<96xf32>
    %99 = vector.shape_cast %98 : vector<96xf32> to vector<1x1x96xf32>
    %100 = vector.broadcast %99 : vector<1x1x96xf32> to vector<2x2x96xf32>
    %101 = arith.mulf %96, %100 : vector<2x2x96xf32>
    %102 = arith.addf %95, %101 : vector<2x2x96xf32>
    %103 = vector.extract_strided_slice %81 {offsets = [3, 0, 0], sizes = [2, 2, 96], strides = [1, 1, 1]} : vector<6x2x96xf32> to vector<2x2x96xf32>
    %104 = vector.extract_strided_slice %1 {offsets = [17, 0], sizes = [1, 96], strides = [1, 1]} : vector<25x96xf32> to vector<1x96xf32>
    %105 = vector.shape_cast %104 : vector<1x96xf32> to vector<96xf32>
    %106 = vector.shape_cast %105 : vector<96xf32> to vector<1x1x96xf32>
    %107 = vector.broadcast %106 : vector<1x1x96xf32> to vector<2x2x96xf32>
    %108 = arith.mulf %103, %107 : vector<2x2x96xf32>
    %109 = arith.addf %102, %108 : vector<2x2x96xf32>
    %110 = vector.extract_strided_slice %81 {offsets = [4, 0, 0], sizes = [2, 2, 96], strides = [1, 1, 1]} : vector<6x2x96xf32> to vector<2x2x96xf32>
    %111 = vector.extract_strided_slice %1 {offsets = [22, 0], sizes = [1, 96], strides = [1, 1]} : vector<25x96xf32> to vector<1x96xf32>
    %112 = vector.shape_cast %111 : vector<1x96xf32> to vector<96xf32>
    %113 = vector.shape_cast %112 : vector<96xf32> to vector<1x1x96xf32>
    %114 = vector.broadcast %113 : vector<1x1x96xf32> to vector<2x2x96xf32>
    %115 = arith.mulf %110, %114 : vector<2x2x96xf32>
    %116 = arith.addf %109, %115 : vector<2x2x96xf32>
    %c0_14 = arith.constant 0 : index
    %c0_15 = arith.constant 0 : index
    %c0_16 = arith.constant 0 : index
    %c3 = arith.constant 3 : index
    %c0_17 = arith.constant 0 : index
    %117 = vector.load %arg1[%c0_14, %c0_15, %c0_16, %c3, %c0_17] : memref<1x1x6x6x96xbf16, #tpu.memory_space<vmem>>, vector<1x1x6x2x96xbf16>
    %118 = vector.shape_cast %117 : vector<1x1x6x2x96xbf16> to vector<6x2x96xbf16>
    %119 = arith.extf %118 : vector<6x2x96xbf16> to vector<6x2x96xf32>
    %120 = vector.extract_strided_slice %119 {offsets = [0, 0, 0], sizes = [2, 2, 96], strides = [1, 1, 1]} : vector<6x2x96xf32> to vector<2x2x96xf32>
    %121 = vector.extract_strided_slice %1 {offsets = [3, 0], sizes = [1, 96], strides = [1, 1]} : vector<25x96xf32> to vector<1x96xf32>
    %122 = vector.shape_cast %121 : vector<1x96xf32> to vector<96xf32>
    %123 = vector.shape_cast %122 : vector<96xf32> to vector<1x1x96xf32>
    %124 = vector.broadcast %123 : vector<1x1x96xf32> to vector<2x2x96xf32>
    %125 = arith.mulf %120, %124 : vector<2x2x96xf32>
    %126 = arith.addf %116, %125 : vector<2x2x96xf32>
    %127 = vector.extract_strided_slice %119 {offsets = [1, 0, 0], sizes = [2, 2, 96], strides = [1, 1, 1]} : vector<6x2x96xf32> to vector<2x2x96xf32>
    %128 = vector.extract_strided_slice %1 {offsets = [8, 0], sizes = [1, 96], strides = [1, 1]} : vector<25x96xf32> to vector<1x96xf32>
    %129 = vector.shape_cast %128 : vector<1x96xf32> to vector<96xf32>
    %130 = vector.shape_cast %129 : vector<96xf32> to vector<1x1x96xf32>
    %131 = vector.broadcast %130 : vector<1x1x96xf32> to vector<2x2x96xf32>
    %132 = arith.mulf %127, %131 : vector<2x2x96xf32>
    %133 = arith.addf %126, %132 : vector<2x2x96xf32>
    %134 = vector.extract_strided_slice %119 {offsets = [2, 0, 0], sizes = [2, 2, 96], strides = [1, 1, 1]} : vector<6x2x96xf32> to vector<2x2x96xf32>
    %135 = vector.extract_strided_slice %1 {offsets = [13, 0], sizes = [1, 96], strides = [1, 1]} : vector<25x96xf32> to vector<1x96xf32>
    %136 = vector.shape_cast %135 : vector<1x96xf32> to vector<96xf32>
    %137 = vector.shape_cast %136 : vector<96xf32> to vector<1x1x96xf32>
    %138 = vector.broadcast %137 : vector<1x1x96xf32> to vector<2x2x96xf32>
    %139 = arith.mulf %134, %138 : vector<2x2x96xf32>
    %140 = arith.addf %133, %139 : vector<2x2x96xf32>
    %141 = vector.extract_strided_slice %119 {offsets = [3, 0, 0], sizes = [2, 2, 96], strides = [1, 1, 1]} : vector<6x2x96xf32> to vector<2x2x96xf32>
    %142 = vector.extract_strided_slice %1 {offsets = [18, 0], sizes = [1, 96], strides = [1, 1]} : vector<25x96xf32> to vector<1x96xf32>
    %143 = vector.shape_cast %142 : vector<1x96xf32> to vector<96xf32>
    %144 = vector.shape_cast %143 : vector<96xf32> to vector<1x1x96xf32>
    %145 = vector.broadcast %144 : vector<1x1x96xf32> to vector<2x2x96xf32>
    %146 = arith.mulf %141, %145 : vector<2x2x96xf32>
    %147 = arith.addf %140, %146 : vector<2x2x96xf32>
    %148 = vector.extract_strided_slice %119 {offsets = [4, 0, 0], sizes = [2, 2, 96], strides = [1, 1, 1]} : vector<6x2x96xf32> to vector<2x2x96xf32>
    %149 = vector.extract_strided_slice %1 {offsets = [23, 0], sizes = [1, 96], strides = [1, 1]} : vector<25x96xf32> to vector<1x96xf32>
    %150 = vector.shape_cast %149 : vector<1x96xf32> to vector<96xf32>
    %151 = vector.shape_cast %150 : vector<96xf32> to vector<1x1x96xf32>
    %152 = vector.broadcast %151 : vector<1x1x96xf32> to vector<2x2x96xf32>
    %153 = arith.mulf %148, %152 : vector<2x2x96xf32>
    %154 = arith.addf %147, %153 : vector<2x2x96xf32>
    %c0_18 = arith.constant 0 : index
    %c0_19 = arith.constant 0 : index
    %c0_20 = arith.constant 0 : index
    %c4 = arith.constant 4 : index
    %c0_21 = arith.constant 0 : index
    %155 = vector.load %arg1[%c0_18, %c0_19, %c0_20, %c4, %c0_21] : memref<1x1x6x6x96xbf16, #tpu.memory_space<vmem>>, vector<1x1x6x2x96xbf16>
    %156 = vector.shape_cast %155 : vector<1x1x6x2x96xbf16> to vector<6x2x96xbf16>
    %157 = arith.extf %156 : vector<6x2x96xbf16> to vector<6x2x96xf32>
    %158 = vector.extract_strided_slice %157 {offsets = [0, 0, 0], sizes = [2, 2, 96], strides = [1, 1, 1]} : vector<6x2x96xf32> to vector<2x2x96xf32>
    %159 = vector.extract_strided_slice %1 {offsets = [4, 0], sizes = [1, 96], strides = [1, 1]} : vector<25x96xf32> to vector<1x96xf32>
    %160 = vector.shape_cast %159 : vector<1x96xf32> to vector<96xf32>
    %161 = vector.shape_cast %160 : vector<96xf32> to vector<1x1x96xf32>
    %162 = vector.broadcast %161 : vector<1x1x96xf32> to vector<2x2x96xf32>
    %163 = arith.mulf %158, %162 : vector<2x2x96xf32>
    %164 = arith.addf %154, %163 : vector<2x2x96xf32>
    %165 = vector.extract_strided_slice %157 {offsets = [1, 0, 0], sizes = [2, 2, 96], strides = [1, 1, 1]} : vector<6x2x96xf32> to vector<2x2x96xf32>
    %166 = vector.extract_strided_slice %1 {offsets = [9, 0], sizes = [1, 96], strides = [1, 1]} : vector<25x96xf32> to vector<1x96xf32>
    %167 = vector.shape_cast %166 : vector<1x96xf32> to vector<96xf32>
    %168 = vector.shape_cast %167 : vector<96xf32> to vector<1x1x96xf32>
    %169 = vector.broadcast %168 : vector<1x1x96xf32> to vector<2x2x96xf32>
    %170 = arith.mulf %165, %169 : vector<2x2x96xf32>
    %171 = arith.addf %164, %170 : vector<2x2x96xf32>
    %172 = vector.extract_strided_slice %157 {offsets = [2, 0, 0], sizes = [2, 2, 96], strides = [1, 1, 1]} : vector<6x2x96xf32> to vector<2x2x96xf32>
    %173 = vector.extract_strided_slice %1 {offsets = [14, 0], sizes = [1, 96], strides = [1, 1]} : vector<25x96xf32> to vector<1x96xf32>
    %174 = vector.shape_cast %173 : vector<1x96xf32> to vector<96xf32>
    %175 = vector.shape_cast %174 : vector<96xf32> to vector<1x1x96xf32>
    %176 = vector.broadcast %175 : vector<1x1x96xf32> to vector<2x2x96xf32>
    %177 = arith.mulf %172, %176 : vector<2x2x96xf32>
    %178 = arith.addf %171, %177 : vector<2x2x96xf32>
    %179 = vector.extract_strided_slice %157 {offsets = [3, 0, 0], sizes = [2, 2, 96], strides = [1, 1, 1]} : vector<6x2x96xf32> to vector<2x2x96xf32>
    %180 = vector.extract_strided_slice %1 {offsets = [19, 0], sizes = [1, 96], strides = [1, 1]} : vector<25x96xf32> to vector<1x96xf32>
    %181 = vector.shape_cast %180 : vector<1x96xf32> to vector<96xf32>
    %182 = vector.shape_cast %181 : vector<96xf32> to vector<1x1x96xf32>
    %183 = vector.broadcast %182 : vector<1x1x96xf32> to vector<2x2x96xf32>
    %184 = arith.mulf %179, %183 : vector<2x2x96xf32>
    %185 = arith.addf %178, %184 : vector<2x2x96xf32>
    %186 = vector.extract_strided_slice %157 {offsets = [4, 0, 0], sizes = [2, 2, 96], strides = [1, 1, 1]} : vector<6x2x96xf32> to vector<2x2x96xf32>
    %187 = vector.extract_strided_slice %1 {offsets = [24, 0], sizes = [1, 96], strides = [1, 1]} : vector<25x96xf32> to vector<1x96xf32>
    %188 = vector.shape_cast %187 : vector<1x96xf32> to vector<96xf32>
    %189 = vector.shape_cast %188 : vector<96xf32> to vector<1x1x96xf32>
    %190 = vector.broadcast %189 : vector<1x1x96xf32> to vector<2x2x96xf32>
    %191 = arith.mulf %186, %190 : vector<2x2x96xf32>
    %192 = arith.addf %185, %191 : vector<2x2x96xf32>
    %c0_22 = arith.constant 0 : index
    %c0_23 = arith.constant 0 : index
    %193 = vector.load %arg3[%c0_22, %c0_23] : memref<2x96xf32, #tpu.memory_space<vmem>>, vector<1x96xf32>
    %194 = vector.shape_cast %193 : vector<1x96xf32> to vector<1x1x96xf32>
    %195 = vector.broadcast %194 : vector<1x1x96xf32> to vector<2x2x96xf32>
    %196 = arith.mulf %192, %195 : vector<2x2x96xf32>
    %c1_24 = arith.constant 1 : index
    %c0_25 = arith.constant 0 : index
    %197 = vector.load %arg3[%c1_24, %c0_25] : memref<2x96xf32, #tpu.memory_space<vmem>>, vector<1x96xf32>
    %198 = vector.shape_cast %197 : vector<1x96xf32> to vector<1x1x96xf32>
    %199 = vector.broadcast %198 : vector<1x1x96xf32> to vector<2x2x96xf32>
    %200 = arith.addf %196, %199 : vector<2x2x96xf32>
    %cst_26 = arith.constant 3.000000e+00 : f32
    %201 = vector.broadcast %cst_26 : f32 to vector<2x2x96xf32>
    %202 = arith.addf %200, %201 : vector<2x2x96xf32>
    %cst_27 = arith.constant 0.000000e+00 : f32
    %cst_28 = arith.constant 6.000000e+00 : f32
    %203 = vector.broadcast %cst_27 : f32 to vector<2x2x96xf32>
    %204 = arith.maximumf %203, %202 : vector<2x2x96xf32>
    %205 = vector.broadcast %cst_28 : f32 to vector<2x2x96xf32>
    %206 = arith.minimumf %205, %204 : vector<2x2x96xf32>
    %cst_29 = arith.constant 0.166666672 : f32
    %207 = vector.broadcast %cst_29 : f32 to vector<2x2x96xf32>
    %208 = arith.mulf %206, %207 : vector<2x2x96xf32>
    %209 = arith.mulf %200, %208 : vector<2x2x96xf32>
    %210 = arith.truncf %209 : vector<2x2x96xf32> to vector<2x2x96xbf16>
    %c0_30 = arith.constant 0 : index
    %c0_31 = arith.constant 0 : index
    %c0_32 = arith.constant 0 : index
    %c0_33 = arith.constant 0 : index
    %211 = vector.load %arg4[%c0_30, %c0_31, %c0_32, %c0_33] : memref<1x2x2x96xbf16, #tpu.memory_space<vmem>>, vector<1x2x2x96xbf16>
    %212 = vector.shape_cast %211 : vector<1x2x2x96xbf16> to vector<2x2x96xbf16>
    %213 = vector.shape_cast %210 : vector<2x2x96xbf16> to vector<1x2x2x96xbf16>
    tpu.vector_store %arg4[%c0_30, %c0_31, %c0_32, %c0_33], %213 {strides = array<i32>} : memref<1x2x2x96xbf16, #tpu.memory_space<vmem>>, vector<1x2x2x96xbf16>,
    return
  }
  func.func @transform_0(%arg0: i32) -> (i32, i32, i32, i32, i32) {
    %c0_i32 = arith.constant 0 : i32
    %c0_i32_0 = arith.constant 0 : i32
    %c0_i32_1 = arith.constant 0 : i32
    %c0_i32_2 = arith.constant 0 : i32
    %c0_i32_3 = arith.constant 0 : i32
    return %c0_i32, %arg0, %c0_i32_0, %c0_i32_1, %c0_i32_2 : i32, i32, i32, i32, i32
  }
  func.func @transform_1(%arg0: i32) -> (i32, i32) {
    %c0_i32 = arith.constant 0 : i32
    %c0_i32_0 = arith.constant 0 : i32
    %c0_i32_1 = arith.constant 0 : i32
    return %c0_i32, %c0_i32_0 : i32, i32
  }
  func.func @transform_2(%arg0: i32) -> (i32, i32) {
    %c0_i32 = arith.constant 0 : i32
    %c0_i32_0 = arith.constant 0 : i32
    %c0_i32_1 = arith.constant 0 : i32
    return %c0_i32, %c0_i32_0 : i32, i32
  }
  func.func @transform_3(%arg0: i32) -> (i32, i32, i32, i32) {
    %c0_i32 = arith.constant 0 : i32
    %c0_i32_0 = arith.constant 0 : i32
    %c0_i32_1 = arith.constant 0 : i32
    %c0_i32_2 = arith.constant 0 : i32
    return %arg0, %c0_i32, %c0_i32_0, %c0_i32_1 : i32, i32, i32, i32
  }
}

module attributes {stable_mosaic.version = 11 : i64} {
  func.func @_se_scale_kernel(%arg0: i32, %arg1: memref<1x4x96xbf16, #tpu.memory_space<vmem>>, %arg2: memref<96x24xbf16, #tpu.memory_space<vmem>>, %arg3: memref<1x24xf32, #tpu.memory_space<vmem>>, %arg4: memref<24x96xbf16, #tpu.memory_space<vmem>>, %arg5: memref<1x96xf32, #tpu.memory_space<vmem>>, %arg6: memref<1x1x96xf32, #tpu.memory_space<vmem>>) attributes {dimension_semantics = [#tpu.dimension_semantics<parallel>], iteration_bounds = array<i64: 2>, scalar_prefetch = 0 : i64, scratch_operands = 0 : i64, tpu.core_type = #tpu.core_type<tc>, window_params = [{transform_indices = @transform_0, window_bounds = array<i64: 1, 4, 96>}, {pipeline_mode = #tpu.pipeline_mode<synchronous>, transform_indices = @transform_1, window_bounds = array<i64: 96, 24>}, {pipeline_mode = #tpu.pipeline_mode<synchronous>, transform_indices = @transform_2, window_bounds = array<i64: 1, 24>}, {pipeline_mode = #tpu.pipeline_mode<synchronous>, transform_indices = @transform_3, window_bounds = array<i64: 24, 96>}, {pipeline_mode = #tpu.pipeline_mode<synchronous>, transform_indices = @transform_4, window_bounds = array<i64: 1, 96>}, {transform_indices = @transform_5, window_bounds = array<i64: 1, 1, 96>}]} {
    %c0 = arith.constant 0 : index
    %c0_0 = arith.constant 0 : index
    %c0_1 = arith.constant 0 : index
    %0 = vector.load %arg1[%c0, %c0_0, %c0_1] : memref<1x4x96xbf16, #tpu.memory_space<vmem>>, vector<1x4x96xbf16>
    %1 = vector.shape_cast %0 : vector<1x4x96xbf16> to vector<4x96xbf16>
    %2 = arith.extf %1 : vector<4x96xbf16> to vector<4x96xf32>
    %cst = arith.constant dense<0.000000e+00> : vector<96xf32>
    %3 = vector.multi_reduction <add>, %2, %cst [0] : vector<4x96xf32> to vector<96xf32>
    %4 = vector.shape_cast %3 : vector<96xf32> to vector<1x96xf32>
    %cst_2 = arith.constant 2.500000e-01 : f32
    %5 = vector.broadcast %cst_2 : f32 to vector<1x96xf32>
    %6 = arith.mulf %4, %5 : vector<1x96xf32>
    %7 = arith.truncf %6 : vector<1x96xf32> to vector<1x96xbf16>
    %c0_3 = arith.constant 0 : index
    %c0_4 = arith.constant 0 : index
    %8 = vector.load %arg2[%c0_3, %c0_4] : memref<96x24xbf16, #tpu.memory_space<vmem>>, vector<96x24xbf16>
    %cst_5 = arith.constant dense<0.000000e+00> : vector<1x24xf32>
    %9 = tpu.matmul %7, %8, %cst_5 {dimension_numbers = #tpu.dot_dimension_numbers<[1], [0], [0], [1], [0, 0, 1, 1], [], []>} : vector<1x96xbf16>, vector<96x24xbf16>, vector<1x24xf32> -> vector<1x24xf32>
    %c0_6 = arith.constant 0 : index
    %c0_7 = arith.constant 0 : index
    %10 = vector.load %arg3[%c0_6, %c0_7] : memref<1x24xf32, #tpu.memory_space<vmem>>, vector<1x24xf32>
    %11 = arith.addf %9, %10 : vector<1x24xf32>
    %cst_8 = arith.constant 0.000000e+00 : f32
    %12 = vector.broadcast %cst_8 : f32 to vector<1x24xf32>
    %13 = arith.maximumf %11, %12 : vector<1x24xf32>
    %14 = arith.truncf %13 : vector<1x24xf32> to vector<1x24xbf16>
    %c0_9 = arith.constant 0 : index
    %c0_10 = arith.constant 0 : index
    %15 = vector.load %arg4[%c0_9, %c0_10] : memref<24x96xbf16, #tpu.memory_space<vmem>>, vector<24x96xbf16>
    %cst_11 = arith.constant dense<0.000000e+00> : vector<1x96xf32>
    %16 = tpu.matmul %14, %15, %cst_11 {dimension_numbers = #tpu.dot_dimension_numbers<[1], [0], [0], [1], [0, 0, 1, 1], [], []>} : vector<1x24xbf16>, vector<24x96xbf16>, vector<1x96xf32> -> vector<1x96xf32>
    %c0_12 = arith.constant 0 : index
    %c0_13 = arith.constant 0 : index
    %17 = vector.load %arg5[%c0_12, %c0_13] : memref<1x96xf32, #tpu.memory_space<vmem>>, vector<1x96xf32>
    %18 = arith.addf %16, %17 : vector<1x96xf32>
    %cst_14 = arith.constant 3.000000e+00 : f32
    %19 = vector.broadcast %cst_14 : f32 to vector<1x96xf32>
    %20 = arith.addf %18, %19 : vector<1x96xf32>
    %cst_15 = arith.constant 0.000000e+00 : f32
    %cst_16 = arith.constant 6.000000e+00 : f32
    %21 = vector.broadcast %cst_15 : f32 to vector<1x96xf32>
    %22 = arith.maximumf %21, %20 : vector<1x96xf32>
    %23 = vector.broadcast %cst_16 : f32 to vector<1x96xf32>
    %24 = arith.minimumf %23, %22 : vector<1x96xf32>
    %cst_17 = arith.constant 0.166666672 : f32
    %25 = vector.broadcast %cst_17 : f32 to vector<1x96xf32>
    %26 = arith.mulf %24, %25 : vector<1x96xf32>
    %c0_18 = arith.constant 0 : index
    %c0_19 = arith.constant 0 : index
    %c0_20 = arith.constant 0 : index
    %27 = vector.load %arg6[%c0_18, %c0_19, %c0_20] : memref<1x1x96xf32, #tpu.memory_space<vmem>>, vector<1x1x96xf32>
    %28 = vector.shape_cast %27 : vector<1x1x96xf32> to vector<1x96xf32>
    %29 = vector.shape_cast %26 : vector<1x96xf32> to vector<1x1x96xf32>
    tpu.vector_store %arg6[%c0_18, %c0_19, %c0_20], %29 {strides = array<i32>} : memref<1x1x96xf32, #tpu.memory_space<vmem>>, vector<1x1x96xf32>,
    return
  }
  func.func @transform_0(%arg0: i32) -> (i32, i32, i32) {
    %c0_i32 = arith.constant 0 : i32
    %c0_i32_0 = arith.constant 0 : i32
    %c0_i32_1 = arith.constant 0 : i32
    return %arg0, %c0_i32, %c0_i32_0 : i32, i32, i32
  }
  func.func @transform_1(%arg0: i32) -> (i32, i32) {
    %c0_i32 = arith.constant 0 : i32
    %c0_i32_0 = arith.constant 0 : i32
    %c0_i32_1 = arith.constant 0 : i32
    return %c0_i32, %c0_i32_0 : i32, i32
  }
  func.func @transform_2(%arg0: i32) -> (i32, i32) {
    %c0_i32 = arith.constant 0 : i32
    %c0_i32_0 = arith.constant 0 : i32
    %c0_i32_1 = arith.constant 0 : i32
    return %c0_i32, %c0_i32_0 : i32, i32
  }
  func.func @transform_3(%arg0: i32) -> (i32, i32) {
    %c0_i32 = arith.constant 0 : i32
    %c0_i32_0 = arith.constant 0 : i32
    %c0_i32_1 = arith.constant 0 : i32
    return %c0_i32, %c0_i32_0 : i32, i32
  }
  func.func @transform_4(%arg0: i32) -> (i32, i32) {
    %c0_i32 = arith.constant 0 : i32
    %c0_i32_0 = arith.constant 0 : i32
    %c0_i32_1 = arith.constant 0 : i32
    return %c0_i32, %c0_i32_0 : i32, i32
  }
  func.func @transform_5(%arg0: i32) -> (i32, i32, i32) {
    %c0_i32 = arith.constant 0 : i32
    %c0_i32_0 = arith.constant 0 : i32
    %c0_i32_1 = arith.constant 0 : i32
    return %arg0, %c0_i32, %c0_i32_0 : i32, i32, i32
  }
}

module attributes {stable_mosaic.version = 11 : i64} {
  func.func @_mm_scaled_kernel(%arg0: i32, %arg1: i32, %arg2: memref<1x4x96xbf16, #tpu.memory_space<vmem>>, %arg3: memref<1x1x96xf32, #tpu.memory_space<vmem>>, %arg4: memref<96x40xbf16, #tpu.memory_space<vmem>>, %arg5: memref<2x40xf32, #tpu.memory_space<vmem>>, %arg6: memref<1x4x40xbf16, #tpu.memory_space<vmem>>) attributes {dimension_semantics = [#tpu.dimension_semantics<parallel>, #tpu.dimension_semantics<parallel>], iteration_bounds = array<i64: 2, 1>, scalar_prefetch = 0 : i64, scratch_operands = 0 : i64, tpu.core_type = #tpu.core_type<tc>, window_params = [{transform_indices = @transform_0, window_bounds = array<i64: 1, 4, 96>}, {transform_indices = @transform_1, window_bounds = array<i64: 1, 1, 96>}, {transform_indices = @transform_2, window_bounds = array<i64: 96, 40>}, {transform_indices = @transform_3, window_bounds = array<i64: 2, 40>}, {transform_indices = @transform_4, window_bounds = array<i64: 1, 4, 40>}]} {
    %c0 = arith.constant 0 : index
    %c0_0 = arith.constant 0 : index
    %c0_1 = arith.constant 0 : index
    %0 = vector.load %arg2[%c0, %c0_0, %c0_1] : memref<1x4x96xbf16, #tpu.memory_space<vmem>>, vector<1x4x96xbf16>
    %1 = vector.shape_cast %0 : vector<1x4x96xbf16> to vector<4x96xbf16>
    %2 = arith.extf %1 : vector<4x96xbf16> to vector<4x96xf32>
    %c0_2 = arith.constant 0 : index
    %c0_3 = arith.constant 0 : index
    %c0_4 = arith.constant 0 : index
    %3 = vector.load %arg3[%c0_2, %c0_3, %c0_4] : memref<1x1x96xf32, #tpu.memory_space<vmem>>, vector<1x1x96xf32>
    %4 = vector.shape_cast %3 : vector<1x1x96xf32> to vector<1x96xf32>
    %5 = vector.broadcast %4 : vector<1x96xf32> to vector<4x96xf32>
    %6 = arith.mulf %2, %5 : vector<4x96xf32>
    %7 = arith.truncf %6 : vector<4x96xf32> to vector<4x96xbf16>
    %c0_5 = arith.constant 0 : index
    %c0_6 = arith.constant 0 : index
    %8 = vector.load %arg4[%c0_5, %c0_6] : memref<96x40xbf16, #tpu.memory_space<vmem>>, vector<96x40xbf16>
    %cst = arith.constant dense<0.000000e+00> : vector<4x40xf32>
    %9 = tpu.matmul %7, %8, %cst {dimension_numbers = #tpu.dot_dimension_numbers<[1], [0], [0], [1], [0, 0, 1, 1], [], []>} : vector<4x96xbf16>, vector<96x40xbf16>, vector<4x40xf32> -> vector<4x40xf32>
    %c0_7 = arith.constant 0 : index
    %c0_8 = arith.constant 0 : index
    %10 = vector.load %arg5[%c0_7, %c0_8] : memref<2x40xf32, #tpu.memory_space<vmem>>, vector<1x40xf32>
    %11 = vector.broadcast %10 : vector<1x40xf32> to vector<4x40xf32>
    %12 = arith.mulf %9, %11 : vector<4x40xf32>
    %c1 = arith.constant 1 : index
    %c0_9 = arith.constant 0 : index
    %13 = vector.load %arg5[%c1, %c0_9] : memref<2x40xf32, #tpu.memory_space<vmem>>, vector<1x40xf32>
    %14 = vector.broadcast %13 : vector<1x40xf32> to vector<4x40xf32>
    %15 = arith.addf %12, %14 : vector<4x40xf32>
    %16 = arith.truncf %15 : vector<4x40xf32> to vector<4x40xbf16>
    %c0_10 = arith.constant 0 : index
    %c0_11 = arith.constant 0 : index
    %c0_12 = arith.constant 0 : index
    %17 = vector.load %arg6[%c0_10, %c0_11, %c0_12] : memref<1x4x40xbf16, #tpu.memory_space<vmem>>, vector<1x4x40xbf16>
    %18 = vector.shape_cast %17 : vector<1x4x40xbf16> to vector<4x40xbf16>
    %19 = vector.shape_cast %16 : vector<4x40xbf16> to vector<1x4x40xbf16>
    tpu.vector_store %arg6[%c0_10, %c0_11, %c0_12], %19 {strides = array<i32>} : memref<1x4x40xbf16, #tpu.memory_space<vmem>>, vector<1x4x40xbf16>,
    return
  }
  func.func @transform_0(%arg0: i32, %arg1: i32) -> (i32, i32, i32) {
    %c0_i32 = arith.constant 0 : i32
    %c0_i32_0 = arith.constant 0 : i32
    %c0_i32_1 = arith.constant 0 : i32
    return %arg0, %c0_i32, %c0_i32_0 : i32, i32, i32
  }
  func.func @transform_1(%arg0: i32, %arg1: i32) -> (i32, i32, i32) {
    %c0_i32 = arith.constant 0 : i32
    %c0_i32_0 = arith.constant 0 : i32
    %c0_i32_1 = arith.constant 0 : i32
    return %arg0, %c0_i32, %c0_i32_0 : i32, i32, i32
  }
  func.func @transform_2(%arg0: i32, %arg1: i32) -> (i32, i32) {
    %c0_i32 = arith.constant 0 : i32
    %c0_i32_0 = arith.constant 0 : i32
    return %c0_i32, %arg1 : i32, i32
  }
  func.func @transform_3(%arg0: i32, %arg1: i32) -> (i32, i32) {
    %c0_i32 = arith.constant 0 : i32
    %c0_i32_0 = arith.constant 0 : i32
    return %c0_i32, %arg1 : i32, i32
  }
  func.func @transform_4(%arg0: i32, %arg1: i32) -> (i32, i32, i32) {
    %c0_i32 = arith.constant 0 : i32
    %c0_i32_0 = arith.constant 0 : i32
    return %arg0, %c0_i32, %arg1 : i32, i32, i32
  }
}

module attributes {stable_mosaic.version = 11 : i64} {
  func.func @_mm_kernel(%arg0: i32, %arg1: i32, %arg2: memref<16x40xbf16, #tpu.memory_space<vmem>>, %arg3: memref<40x120xbf16, #tpu.memory_space<vmem>>, %arg4: memref<2x120xf32, #tpu.memory_space<vmem>>, %arg5: memref<16x120xbf16, #tpu.memory_space<vmem>>) attributes {dimension_semantics = [#tpu.dimension_semantics<parallel>, #tpu.dimension_semantics<parallel>], iteration_bounds = array<i64: 1, 1>, scalar_prefetch = 0 : i64, scratch_operands = 0 : i64, tpu.core_type = #tpu.core_type<tc>, window_params = [{transform_indices = @transform_0, window_bounds = array<i64: 16, 40>}, {transform_indices = @transform_1, window_bounds = array<i64: 40, 120>}, {transform_indices = @transform_2, window_bounds = array<i64: 2, 120>}, {transform_indices = @transform_3, window_bounds = array<i64: 16, 120>}]} {
    %c0 = arith.constant 0 : index
    %c0_0 = arith.constant 0 : index
    %0 = vector.load %arg2[%c0, %c0_0] : memref<16x40xbf16, #tpu.memory_space<vmem>>, vector<16x40xbf16>
    %c0_1 = arith.constant 0 : index
    %c0_2 = arith.constant 0 : index
    %1 = vector.load %arg3[%c0_1, %c0_2] : memref<40x120xbf16, #tpu.memory_space<vmem>>, vector<40x120xbf16>
    %cst = arith.constant dense<0.000000e+00> : vector<16x120xf32>
    %2 = tpu.matmul %0, %1, %cst {dimension_numbers = #tpu.dot_dimension_numbers<[1], [0], [0], [1], [0, 0, 1, 1], [], []>} : vector<16x40xbf16>, vector<40x120xbf16>, vector<16x120xf32> -> vector<16x120xf32>
    %c0_3 = arith.constant 0 : index
    %c0_4 = arith.constant 0 : index
    %3 = vector.load %arg4[%c0_3, %c0_4] : memref<2x120xf32, #tpu.memory_space<vmem>>, vector<1x120xf32>
    %4 = vector.broadcast %3 : vector<1x120xf32> to vector<16x120xf32>
    %5 = arith.mulf %2, %4 : vector<16x120xf32>
    %c1 = arith.constant 1 : index
    %c0_5 = arith.constant 0 : index
    %6 = vector.load %arg4[%c1, %c0_5] : memref<2x120xf32, #tpu.memory_space<vmem>>, vector<1x120xf32>
    %7 = vector.broadcast %6 : vector<1x120xf32> to vector<16x120xf32>
    %8 = arith.addf %5, %7 : vector<16x120xf32>
    %cst_6 = arith.constant 3.000000e+00 : f32
    %9 = vector.broadcast %cst_6 : f32 to vector<16x120xf32>
    %10 = arith.addf %8, %9 : vector<16x120xf32>
    %cst_7 = arith.constant 0.000000e+00 : f32
    %cst_8 = arith.constant 6.000000e+00 : f32
    %11 = vector.broadcast %cst_7 : f32 to vector<16x120xf32>
    %12 = arith.maximumf %11, %10 : vector<16x120xf32>
    %13 = vector.broadcast %cst_8 : f32 to vector<16x120xf32>
    %14 = arith.minimumf %13, %12 : vector<16x120xf32>
    %cst_9 = arith.constant 0.166666672 : f32
    %15 = vector.broadcast %cst_9 : f32 to vector<16x120xf32>
    %16 = arith.mulf %14, %15 : vector<16x120xf32>
    %17 = arith.mulf %8, %16 : vector<16x120xf32>
    %18 = arith.truncf %17 : vector<16x120xf32> to vector<16x120xbf16>
    %c0_10 = arith.constant 0 : index
    %c0_11 = arith.constant 0 : index
    %19 = vector.load %arg5[%c0_10, %c0_11] : memref<16x120xbf16, #tpu.memory_space<vmem>>, vector<16x120xbf16>
    tpu.vector_store %arg5[%c0_10, %c0_11], %18 {strides = array<i32>} : memref<16x120xbf16, #tpu.memory_space<vmem>>, vector<16x120xbf16>,
    return
  }
  func.func @transform_0(%arg0: i32, %arg1: i32) -> (i32, i32) {
    %c0_i32 = arith.constant 0 : i32
    %c0_i32_0 = arith.constant 0 : i32
    return %arg1, %c0_i32 : i32, i32
  }
  func.func @transform_1(%arg0: i32, %arg1: i32) -> (i32, i32) {
    %c0_i32 = arith.constant 0 : i32
    %c0_i32_0 = arith.constant 0 : i32
    return %c0_i32, %arg0 : i32, i32
  }
  func.func @transform_2(%arg0: i32, %arg1: i32) -> (i32, i32) {
    %c0_i32 = arith.constant 0 : i32
    %c0_i32_0 = arith.constant 0 : i32
    return %c0_i32, %arg0 : i32, i32
  }
  func.func @transform_3(%arg0: i32, %arg1: i32) -> (i32, i32) {
    %c0_i32 = arith.constant 0 : i32
    return %arg1, %arg0 : i32, i32
  }
}

module attributes {stable_mosaic.version = 11 : i64} {
  func.func @_dw_kernel(%arg0: i32, %arg1: memref<1x1x6x6x120xbf16, #tpu.memory_space<vmem>>, %arg2: memref<25x120xbf16, #tpu.memory_space<vmem>>, %arg3: memref<2x120xf32, #tpu.memory_space<vmem>>, %arg4: memref<1x2x2x120xbf16, #tpu.memory_space<vmem>>) attributes {dimension_semantics = [#tpu.dimension_semantics<parallel>], iteration_bounds = array<i64: 2>, scalar_prefetch = 0 : i64, scratch_operands = 0 : i64, tpu.core_type = #tpu.core_type<tc>, window_params = [{transform_indices = @transform_0, window_bounds = array<i64: 1, 1, 6, 6, 120>}, {pipeline_mode = #tpu.pipeline_mode<synchronous>, transform_indices = @transform_1, window_bounds = array<i64: 25, 120>}, {pipeline_mode = #tpu.pipeline_mode<synchronous>, transform_indices = @transform_2, window_bounds = array<i64: 2, 120>}, {transform_indices = @transform_3, window_bounds = array<i64: 1, 2, 2, 120>}]} {
    %c0 = arith.constant 0 : index
    %c0_0 = arith.constant 0 : index
    %0 = vector.load %arg2[%c0, %c0_0] : memref<25x120xbf16, #tpu.memory_space<vmem>>, vector<25x120xbf16>
    %1 = arith.extf %0 : vector<25x120xbf16> to vector<25x120xf32>
    %cst = arith.constant 0.000000e+00 : f32
    %2 = vector.broadcast %cst : f32 to vector<2x2x120xf32>
    %c0_1 = arith.constant 0 : index
    %c0_2 = arith.constant 0 : index
    %c0_3 = arith.constant 0 : index
    %c0_4 = arith.constant 0 : index
    %c0_5 = arith.constant 0 : index
    %3 = vector.load %arg1[%c0_1, %c0_2, %c0_3, %c0_4, %c0_5] : memref<1x1x6x6x120xbf16, #tpu.memory_space<vmem>>, vector<1x1x6x2x120xbf16>
    %4 = vector.shape_cast %3 : vector<1x1x6x2x120xbf16> to vector<6x2x120xbf16>
    %5 = arith.extf %4 : vector<6x2x120xbf16> to vector<6x2x120xf32>
    %6 = vector.extract_strided_slice %5 {offsets = [0, 0, 0], sizes = [2, 2, 120], strides = [1, 1, 1]} : vector<6x2x120xf32> to vector<2x2x120xf32>
    %7 = vector.extract_strided_slice %1 {offsets = [0, 0], sizes = [1, 120], strides = [1, 1]} : vector<25x120xf32> to vector<1x120xf32>
    %8 = vector.shape_cast %7 : vector<1x120xf32> to vector<120xf32>
    %9 = vector.shape_cast %8 : vector<120xf32> to vector<1x1x120xf32>
    %10 = vector.broadcast %9 : vector<1x1x120xf32> to vector<2x2x120xf32>
    %11 = arith.mulf %6, %10 : vector<2x2x120xf32>
    %12 = arith.addf %2, %11 : vector<2x2x120xf32>
    %13 = vector.extract_strided_slice %5 {offsets = [1, 0, 0], sizes = [2, 2, 120], strides = [1, 1, 1]} : vector<6x2x120xf32> to vector<2x2x120xf32>
    %14 = vector.extract_strided_slice %1 {offsets = [5, 0], sizes = [1, 120], strides = [1, 1]} : vector<25x120xf32> to vector<1x120xf32>
    %15 = vector.shape_cast %14 : vector<1x120xf32> to vector<120xf32>
    %16 = vector.shape_cast %15 : vector<120xf32> to vector<1x1x120xf32>
    %17 = vector.broadcast %16 : vector<1x1x120xf32> to vector<2x2x120xf32>
    %18 = arith.mulf %13, %17 : vector<2x2x120xf32>
    %19 = arith.addf %12, %18 : vector<2x2x120xf32>
    %20 = vector.extract_strided_slice %5 {offsets = [2, 0, 0], sizes = [2, 2, 120], strides = [1, 1, 1]} : vector<6x2x120xf32> to vector<2x2x120xf32>
    %21 = vector.extract_strided_slice %1 {offsets = [10, 0], sizes = [1, 120], strides = [1, 1]} : vector<25x120xf32> to vector<1x120xf32>
    %22 = vector.shape_cast %21 : vector<1x120xf32> to vector<120xf32>
    %23 = vector.shape_cast %22 : vector<120xf32> to vector<1x1x120xf32>
    %24 = vector.broadcast %23 : vector<1x1x120xf32> to vector<2x2x120xf32>
    %25 = arith.mulf %20, %24 : vector<2x2x120xf32>
    %26 = arith.addf %19, %25 : vector<2x2x120xf32>
    %27 = vector.extract_strided_slice %5 {offsets = [3, 0, 0], sizes = [2, 2, 120], strides = [1, 1, 1]} : vector<6x2x120xf32> to vector<2x2x120xf32>
    %28 = vector.extract_strided_slice %1 {offsets = [15, 0], sizes = [1, 120], strides = [1, 1]} : vector<25x120xf32> to vector<1x120xf32>
    %29 = vector.shape_cast %28 : vector<1x120xf32> to vector<120xf32>
    %30 = vector.shape_cast %29 : vector<120xf32> to vector<1x1x120xf32>
    %31 = vector.broadcast %30 : vector<1x1x120xf32> to vector<2x2x120xf32>
    %32 = arith.mulf %27, %31 : vector<2x2x120xf32>
    %33 = arith.addf %26, %32 : vector<2x2x120xf32>
    %34 = vector.extract_strided_slice %5 {offsets = [4, 0, 0], sizes = [2, 2, 120], strides = [1, 1, 1]} : vector<6x2x120xf32> to vector<2x2x120xf32>
    %35 = vector.extract_strided_slice %1 {offsets = [20, 0], sizes = [1, 120], strides = [1, 1]} : vector<25x120xf32> to vector<1x120xf32>
    %36 = vector.shape_cast %35 : vector<1x120xf32> to vector<120xf32>
    %37 = vector.shape_cast %36 : vector<120xf32> to vector<1x1x120xf32>
    %38 = vector.broadcast %37 : vector<1x1x120xf32> to vector<2x2x120xf32>
    %39 = arith.mulf %34, %38 : vector<2x2x120xf32>
    %40 = arith.addf %33, %39 : vector<2x2x120xf32>
    %c0_6 = arith.constant 0 : index
    %c0_7 = arith.constant 0 : index
    %c0_8 = arith.constant 0 : index
    %c1 = arith.constant 1 : index
    %c0_9 = arith.constant 0 : index
    %41 = vector.load %arg1[%c0_6, %c0_7, %c0_8, %c1, %c0_9] : memref<1x1x6x6x120xbf16, #tpu.memory_space<vmem>>, vector<1x1x6x2x120xbf16>
    %42 = vector.shape_cast %41 : vector<1x1x6x2x120xbf16> to vector<6x2x120xbf16>
    %43 = arith.extf %42 : vector<6x2x120xbf16> to vector<6x2x120xf32>
    %44 = vector.extract_strided_slice %43 {offsets = [0, 0, 0], sizes = [2, 2, 120], strides = [1, 1, 1]} : vector<6x2x120xf32> to vector<2x2x120xf32>
    %45 = vector.extract_strided_slice %1 {offsets = [1, 0], sizes = [1, 120], strides = [1, 1]} : vector<25x120xf32> to vector<1x120xf32>
    %46 = vector.shape_cast %45 : vector<1x120xf32> to vector<120xf32>
    %47 = vector.shape_cast %46 : vector<120xf32> to vector<1x1x120xf32>
    %48 = vector.broadcast %47 : vector<1x1x120xf32> to vector<2x2x120xf32>
    %49 = arith.mulf %44, %48 : vector<2x2x120xf32>
    %50 = arith.addf %40, %49 : vector<2x2x120xf32>
    %51 = vector.extract_strided_slice %43 {offsets = [1, 0, 0], sizes = [2, 2, 120], strides = [1, 1, 1]} : vector<6x2x120xf32> to vector<2x2x120xf32>
    %52 = vector.extract_strided_slice %1 {offsets = [6, 0], sizes = [1, 120], strides = [1, 1]} : vector<25x120xf32> to vector<1x120xf32>
    %53 = vector.shape_cast %52 : vector<1x120xf32> to vector<120xf32>
    %54 = vector.shape_cast %53 : vector<120xf32> to vector<1x1x120xf32>
    %55 = vector.broadcast %54 : vector<1x1x120xf32> to vector<2x2x120xf32>
    %56 = arith.mulf %51, %55 : vector<2x2x120xf32>
    %57 = arith.addf %50, %56 : vector<2x2x120xf32>
    %58 = vector.extract_strided_slice %43 {offsets = [2, 0, 0], sizes = [2, 2, 120], strides = [1, 1, 1]} : vector<6x2x120xf32> to vector<2x2x120xf32>
    %59 = vector.extract_strided_slice %1 {offsets = [11, 0], sizes = [1, 120], strides = [1, 1]} : vector<25x120xf32> to vector<1x120xf32>
    %60 = vector.shape_cast %59 : vector<1x120xf32> to vector<120xf32>
    %61 = vector.shape_cast %60 : vector<120xf32> to vector<1x1x120xf32>
    %62 = vector.broadcast %61 : vector<1x1x120xf32> to vector<2x2x120xf32>
    %63 = arith.mulf %58, %62 : vector<2x2x120xf32>
    %64 = arith.addf %57, %63 : vector<2x2x120xf32>
    %65 = vector.extract_strided_slice %43 {offsets = [3, 0, 0], sizes = [2, 2, 120], strides = [1, 1, 1]} : vector<6x2x120xf32> to vector<2x2x120xf32>
    %66 = vector.extract_strided_slice %1 {offsets = [16, 0], sizes = [1, 120], strides = [1, 1]} : vector<25x120xf32> to vector<1x120xf32>
    %67 = vector.shape_cast %66 : vector<1x120xf32> to vector<120xf32>
    %68 = vector.shape_cast %67 : vector<120xf32> to vector<1x1x120xf32>
    %69 = vector.broadcast %68 : vector<1x1x120xf32> to vector<2x2x120xf32>
    %70 = arith.mulf %65, %69 : vector<2x2x120xf32>
    %71 = arith.addf %64, %70 : vector<2x2x120xf32>
    %72 = vector.extract_strided_slice %43 {offsets = [4, 0, 0], sizes = [2, 2, 120], strides = [1, 1, 1]} : vector<6x2x120xf32> to vector<2x2x120xf32>
    %73 = vector.extract_strided_slice %1 {offsets = [21, 0], sizes = [1, 120], strides = [1, 1]} : vector<25x120xf32> to vector<1x120xf32>
    %74 = vector.shape_cast %73 : vector<1x120xf32> to vector<120xf32>
    %75 = vector.shape_cast %74 : vector<120xf32> to vector<1x1x120xf32>
    %76 = vector.broadcast %75 : vector<1x1x120xf32> to vector<2x2x120xf32>
    %77 = arith.mulf %72, %76 : vector<2x2x120xf32>
    %78 = arith.addf %71, %77 : vector<2x2x120xf32>
    %c0_10 = arith.constant 0 : index
    %c0_11 = arith.constant 0 : index
    %c0_12 = arith.constant 0 : index
    %c2 = arith.constant 2 : index
    %c0_13 = arith.constant 0 : index
    %79 = vector.load %arg1[%c0_10, %c0_11, %c0_12, %c2, %c0_13] : memref<1x1x6x6x120xbf16, #tpu.memory_space<vmem>>, vector<1x1x6x2x120xbf16>
    %80 = vector.shape_cast %79 : vector<1x1x6x2x120xbf16> to vector<6x2x120xbf16>
    %81 = arith.extf %80 : vector<6x2x120xbf16> to vector<6x2x120xf32>
    %82 = vector.extract_strided_slice %81 {offsets = [0, 0, 0], sizes = [2, 2, 120], strides = [1, 1, 1]} : vector<6x2x120xf32> to vector<2x2x120xf32>
    %83 = vector.extract_strided_slice %1 {offsets = [2, 0], sizes = [1, 120], strides = [1, 1]} : vector<25x120xf32> to vector<1x120xf32>
    %84 = vector.shape_cast %83 : vector<1x120xf32> to vector<120xf32>
    %85 = vector.shape_cast %84 : vector<120xf32> to vector<1x1x120xf32>
    %86 = vector.broadcast %85 : vector<1x1x120xf32> to vector<2x2x120xf32>
    %87 = arith.mulf %82, %86 : vector<2x2x120xf32>
    %88 = arith.addf %78, %87 : vector<2x2x120xf32>
    %89 = vector.extract_strided_slice %81 {offsets = [1, 0, 0], sizes = [2, 2, 120], strides = [1, 1, 1]} : vector<6x2x120xf32> to vector<2x2x120xf32>
    %90 = vector.extract_strided_slice %1 {offsets = [7, 0], sizes = [1, 120], strides = [1, 1]} : vector<25x120xf32> to vector<1x120xf32>
    %91 = vector.shape_cast %90 : vector<1x120xf32> to vector<120xf32>
    %92 = vector.shape_cast %91 : vector<120xf32> to vector<1x1x120xf32>
    %93 = vector.broadcast %92 : vector<1x1x120xf32> to vector<2x2x120xf32>
    %94 = arith.mulf %89, %93 : vector<2x2x120xf32>
    %95 = arith.addf %88, %94 : vector<2x2x120xf32>
    %96 = vector.extract_strided_slice %81 {offsets = [2, 0, 0], sizes = [2, 2, 120], strides = [1, 1, 1]} : vector<6x2x120xf32> to vector<2x2x120xf32>
    %97 = vector.extract_strided_slice %1 {offsets = [12, 0], sizes = [1, 120], strides = [1, 1]} : vector<25x120xf32> to vector<1x120xf32>
    %98 = vector.shape_cast %97 : vector<1x120xf32> to vector<120xf32>
    %99 = vector.shape_cast %98 : vector<120xf32> to vector<1x1x120xf32>
    %100 = vector.broadcast %99 : vector<1x1x120xf32> to vector<2x2x120xf32>
    %101 = arith.mulf %96, %100 : vector<2x2x120xf32>
    %102 = arith.addf %95, %101 : vector<2x2x120xf32>
    %103 = vector.extract_strided_slice %81 {offsets = [3, 0, 0], sizes = [2, 2, 120], strides = [1, 1, 1]} : vector<6x2x120xf32> to vector<2x2x120xf32>
    %104 = vector.extract_strided_slice %1 {offsets = [17, 0], sizes = [1, 120], strides = [1, 1]} : vector<25x120xf32> to vector<1x120xf32>
    %105 = vector.shape_cast %104 : vector<1x120xf32> to vector<120xf32>
    %106 = vector.shape_cast %105 : vector<120xf32> to vector<1x1x120xf32>
    %107 = vector.broadcast %106 : vector<1x1x120xf32> to vector<2x2x120xf32>
    %108 = arith.mulf %103, %107 : vector<2x2x120xf32>
    %109 = arith.addf %102, %108 : vector<2x2x120xf32>
    %110 = vector.extract_strided_slice %81 {offsets = [4, 0, 0], sizes = [2, 2, 120], strides = [1, 1, 1]} : vector<6x2x120xf32> to vector<2x2x120xf32>
    %111 = vector.extract_strided_slice %1 {offsets = [22, 0], sizes = [1, 120], strides = [1, 1]} : vector<25x120xf32> to vector<1x120xf32>
    %112 = vector.shape_cast %111 : vector<1x120xf32> to vector<120xf32>
    %113 = vector.shape_cast %112 : vector<120xf32> to vector<1x1x120xf32>
    %114 = vector.broadcast %113 : vector<1x1x120xf32> to vector<2x2x120xf32>
    %115 = arith.mulf %110, %114 : vector<2x2x120xf32>
    %116 = arith.addf %109, %115 : vector<2x2x120xf32>
    %c0_14 = arith.constant 0 : index
    %c0_15 = arith.constant 0 : index
    %c0_16 = arith.constant 0 : index
    %c3 = arith.constant 3 : index
    %c0_17 = arith.constant 0 : index
    %117 = vector.load %arg1[%c0_14, %c0_15, %c0_16, %c3, %c0_17] : memref<1x1x6x6x120xbf16, #tpu.memory_space<vmem>>, vector<1x1x6x2x120xbf16>
    %118 = vector.shape_cast %117 : vector<1x1x6x2x120xbf16> to vector<6x2x120xbf16>
    %119 = arith.extf %118 : vector<6x2x120xbf16> to vector<6x2x120xf32>
    %120 = vector.extract_strided_slice %119 {offsets = [0, 0, 0], sizes = [2, 2, 120], strides = [1, 1, 1]} : vector<6x2x120xf32> to vector<2x2x120xf32>
    %121 = vector.extract_strided_slice %1 {offsets = [3, 0], sizes = [1, 120], strides = [1, 1]} : vector<25x120xf32> to vector<1x120xf32>
    %122 = vector.shape_cast %121 : vector<1x120xf32> to vector<120xf32>
    %123 = vector.shape_cast %122 : vector<120xf32> to vector<1x1x120xf32>
    %124 = vector.broadcast %123 : vector<1x1x120xf32> to vector<2x2x120xf32>
    %125 = arith.mulf %120, %124 : vector<2x2x120xf32>
    %126 = arith.addf %116, %125 : vector<2x2x120xf32>
    %127 = vector.extract_strided_slice %119 {offsets = [1, 0, 0], sizes = [2, 2, 120], strides = [1, 1, 1]} : vector<6x2x120xf32> to vector<2x2x120xf32>
    %128 = vector.extract_strided_slice %1 {offsets = [8, 0], sizes = [1, 120], strides = [1, 1]} : vector<25x120xf32> to vector<1x120xf32>
    %129 = vector.shape_cast %128 : vector<1x120xf32> to vector<120xf32>
    %130 = vector.shape_cast %129 : vector<120xf32> to vector<1x1x120xf32>
    %131 = vector.broadcast %130 : vector<1x1x120xf32> to vector<2x2x120xf32>
    %132 = arith.mulf %127, %131 : vector<2x2x120xf32>
    %133 = arith.addf %126, %132 : vector<2x2x120xf32>
    %134 = vector.extract_strided_slice %119 {offsets = [2, 0, 0], sizes = [2, 2, 120], strides = [1, 1, 1]} : vector<6x2x120xf32> to vector<2x2x120xf32>
    %135 = vector.extract_strided_slice %1 {offsets = [13, 0], sizes = [1, 120], strides = [1, 1]} : vector<25x120xf32> to vector<1x120xf32>
    %136 = vector.shape_cast %135 : vector<1x120xf32> to vector<120xf32>
    %137 = vector.shape_cast %136 : vector<120xf32> to vector<1x1x120xf32>
    %138 = vector.broadcast %137 : vector<1x1x120xf32> to vector<2x2x120xf32>
    %139 = arith.mulf %134, %138 : vector<2x2x120xf32>
    %140 = arith.addf %133, %139 : vector<2x2x120xf32>
    %141 = vector.extract_strided_slice %119 {offsets = [3, 0, 0], sizes = [2, 2, 120], strides = [1, 1, 1]} : vector<6x2x120xf32> to vector<2x2x120xf32>
    %142 = vector.extract_strided_slice %1 {offsets = [18, 0], sizes = [1, 120], strides = [1, 1]} : vector<25x120xf32> to vector<1x120xf32>
    %143 = vector.shape_cast %142 : vector<1x120xf32> to vector<120xf32>
    %144 = vector.shape_cast %143 : vector<120xf32> to vector<1x1x120xf32>
    %145 = vector.broadcast %144 : vector<1x1x120xf32> to vector<2x2x120xf32>
    %146 = arith.mulf %141, %145 : vector<2x2x120xf32>
    %147 = arith.addf %140, %146 : vector<2x2x120xf32>
    %148 = vector.extract_strided_slice %119 {offsets = [4, 0, 0], sizes = [2, 2, 120], strides = [1, 1, 1]} : vector<6x2x120xf32> to vector<2x2x120xf32>
    %149 = vector.extract_strided_slice %1 {offsets = [23, 0], sizes = [1, 120], strides = [1, 1]} : vector<25x120xf32> to vector<1x120xf32>
    %150 = vector.shape_cast %149 : vector<1x120xf32> to vector<120xf32>
    %151 = vector.shape_cast %150 : vector<120xf32> to vector<1x1x120xf32>
    %152 = vector.broadcast %151 : vector<1x1x120xf32> to vector<2x2x120xf32>
    %153 = arith.mulf %148, %152 : vector<2x2x120xf32>
    %154 = arith.addf %147, %153 : vector<2x2x120xf32>
    %c0_18 = arith.constant 0 : index
    %c0_19 = arith.constant 0 : index
    %c0_20 = arith.constant 0 : index
    %c4 = arith.constant 4 : index
    %c0_21 = arith.constant 0 : index
    %155 = vector.load %arg1[%c0_18, %c0_19, %c0_20, %c4, %c0_21] : memref<1x1x6x6x120xbf16, #tpu.memory_space<vmem>>, vector<1x1x6x2x120xbf16>
    %156 = vector.shape_cast %155 : vector<1x1x6x2x120xbf16> to vector<6x2x120xbf16>
    %157 = arith.extf %156 : vector<6x2x120xbf16> to vector<6x2x120xf32>
    %158 = vector.extract_strided_slice %157 {offsets = [0, 0, 0], sizes = [2, 2, 120], strides = [1, 1, 1]} : vector<6x2x120xf32> to vector<2x2x120xf32>
    %159 = vector.extract_strided_slice %1 {offsets = [4, 0], sizes = [1, 120], strides = [1, 1]} : vector<25x120xf32> to vector<1x120xf32>
    %160 = vector.shape_cast %159 : vector<1x120xf32> to vector<120xf32>
    %161 = vector.shape_cast %160 : vector<120xf32> to vector<1x1x120xf32>
    %162 = vector.broadcast %161 : vector<1x1x120xf32> to vector<2x2x120xf32>
    %163 = arith.mulf %158, %162 : vector<2x2x120xf32>
    %164 = arith.addf %154, %163 : vector<2x2x120xf32>
    %165 = vector.extract_strided_slice %157 {offsets = [1, 0, 0], sizes = [2, 2, 120], strides = [1, 1, 1]} : vector<6x2x120xf32> to vector<2x2x120xf32>
    %166 = vector.extract_strided_slice %1 {offsets = [9, 0], sizes = [1, 120], strides = [1, 1]} : vector<25x120xf32> to vector<1x120xf32>
    %167 = vector.shape_cast %166 : vector<1x120xf32> to vector<120xf32>
    %168 = vector.shape_cast %167 : vector<120xf32> to vector<1x1x120xf32>
    %169 = vector.broadcast %168 : vector<1x1x120xf32> to vector<2x2x120xf32>
    %170 = arith.mulf %165, %169 : vector<2x2x120xf32>
    %171 = arith.addf %164, %170 : vector<2x2x120xf32>
    %172 = vector.extract_strided_slice %157 {offsets = [2, 0, 0], sizes = [2, 2, 120], strides = [1, 1, 1]} : vector<6x2x120xf32> to vector<2x2x120xf32>
    %173 = vector.extract_strided_slice %1 {offsets = [14, 0], sizes = [1, 120], strides = [1, 1]} : vector<25x120xf32> to vector<1x120xf32>
    %174 = vector.shape_cast %173 : vector<1x120xf32> to vector<120xf32>
    %175 = vector.shape_cast %174 : vector<120xf32> to vector<1x1x120xf32>
    %176 = vector.broadcast %175 : vector<1x1x120xf32> to vector<2x2x120xf32>
    %177 = arith.mulf %172, %176 : vector<2x2x120xf32>
    %178 = arith.addf %171, %177 : vector<2x2x120xf32>
    %179 = vector.extract_strided_slice %157 {offsets = [3, 0, 0], sizes = [2, 2, 120], strides = [1, 1, 1]} : vector<6x2x120xf32> to vector<2x2x120xf32>
    %180 = vector.extract_strided_slice %1 {offsets = [19, 0], sizes = [1, 120], strides = [1, 1]} : vector<25x120xf32> to vector<1x120xf32>
    %181 = vector.shape_cast %180 : vector<1x120xf32> to vector<120xf32>
    %182 = vector.shape_cast %181 : vector<120xf32> to vector<1x1x120xf32>
    %183 = vector.broadcast %182 : vector<1x1x120xf32> to vector<2x2x120xf32>
    %184 = arith.mulf %179, %183 : vector<2x2x120xf32>
    %185 = arith.addf %178, %184 : vector<2x2x120xf32>
    %186 = vector.extract_strided_slice %157 {offsets = [4, 0, 0], sizes = [2, 2, 120], strides = [1, 1, 1]} : vector<6x2x120xf32> to vector<2x2x120xf32>
    %187 = vector.extract_strided_slice %1 {offsets = [24, 0], sizes = [1, 120], strides = [1, 1]} : vector<25x120xf32> to vector<1x120xf32>
    %188 = vector.shape_cast %187 : vector<1x120xf32> to vector<120xf32>
    %189 = vector.shape_cast %188 : vector<120xf32> to vector<1x1x120xf32>
    %190 = vector.broadcast %189 : vector<1x1x120xf32> to vector<2x2x120xf32>
    %191 = arith.mulf %186, %190 : vector<2x2x120xf32>
    %192 = arith.addf %185, %191 : vector<2x2x120xf32>
    %c0_22 = arith.constant 0 : index
    %c0_23 = arith.constant 0 : index
    %193 = vector.load %arg3[%c0_22, %c0_23] : memref<2x120xf32, #tpu.memory_space<vmem>>, vector<1x120xf32>
    %194 = vector.shape_cast %193 : vector<1x120xf32> to vector<1x1x120xf32>
    %195 = vector.broadcast %194 : vector<1x1x120xf32> to vector<2x2x120xf32>
    %196 = arith.mulf %192, %195 : vector<2x2x120xf32>
    %c1_24 = arith.constant 1 : index
    %c0_25 = arith.constant 0 : index
    %197 = vector.load %arg3[%c1_24, %c0_25] : memref<2x120xf32, #tpu.memory_space<vmem>>, vector<1x120xf32>
    %198 = vector.shape_cast %197 : vector<1x120xf32> to vector<1x1x120xf32>
    %199 = vector.broadcast %198 : vector<1x1x120xf32> to vector<2x2x120xf32>
    %200 = arith.addf %196, %199 : vector<2x2x120xf32>
    %cst_26 = arith.constant 3.000000e+00 : f32
    %201 = vector.broadcast %cst_26 : f32 to vector<2x2x120xf32>
    %202 = arith.addf %200, %201 : vector<2x2x120xf32>
    %cst_27 = arith.constant 0.000000e+00 : f32
    %cst_28 = arith.constant 6.000000e+00 : f32
    %203 = vector.broadcast %cst_27 : f32 to vector<2x2x120xf32>
    %204 = arith.maximumf %203, %202 : vector<2x2x120xf32>
    %205 = vector.broadcast %cst_28 : f32 to vector<2x2x120xf32>
    %206 = arith.minimumf %205, %204 : vector<2x2x120xf32>
    %cst_29 = arith.constant 0.166666672 : f32
    %207 = vector.broadcast %cst_29 : f32 to vector<2x2x120xf32>
    %208 = arith.mulf %206, %207 : vector<2x2x120xf32>
    %209 = arith.mulf %200, %208 : vector<2x2x120xf32>
    %210 = arith.truncf %209 : vector<2x2x120xf32> to vector<2x2x120xbf16>
    %c0_30 = arith.constant 0 : index
    %c0_31 = arith.constant 0 : index
    %c0_32 = arith.constant 0 : index
    %c0_33 = arith.constant 0 : index
    %211 = vector.load %arg4[%c0_30, %c0_31, %c0_32, %c0_33] : memref<1x2x2x120xbf16, #tpu.memory_space<vmem>>, vector<1x2x2x120xbf16>
    %212 = vector.shape_cast %211 : vector<1x2x2x120xbf16> to vector<2x2x120xbf16>
    %213 = vector.shape_cast %210 : vector<2x2x120xbf16> to vector<1x2x2x120xbf16>
    tpu.vector_store %arg4[%c0_30, %c0_31, %c0_32, %c0_33], %213 {strides = array<i32>} : memref<1x2x2x120xbf16, #tpu.memory_space<vmem>>, vector<1x2x2x120xbf16>,
    return
  }
  func.func @transform_0(%arg0: i32) -> (i32, i32, i32, i32, i32) {
    %c0_i32 = arith.constant 0 : i32
    %c0_i32_0 = arith.constant 0 : i32
    %c0_i32_1 = arith.constant 0 : i32
    %c0_i32_2 = arith.constant 0 : i32
    %c0_i32_3 = arith.constant 0 : i32
    return %c0_i32, %arg0, %c0_i32_0, %c0_i32_1, %c0_i32_2 : i32, i32, i32, i32, i32
  }
  func.func @transform_1(%arg0: i32) -> (i32, i32) {
    %c0_i32 = arith.constant 0 : i32
    %c0_i32_0 = arith.constant 0 : i32
    %c0_i32_1 = arith.constant 0 : i32
    return %c0_i32, %c0_i32_0 : i32, i32
  }
  func.func @transform_2(%arg0: i32) -> (i32, i32) {
    %c0_i32 = arith.constant 0 : i32
    %c0_i32_0 = arith.constant 0 : i32
    %c0_i32_1 = arith.constant 0 : i32
    return %c0_i32, %c0_i32_0 : i32, i32
  }
  func.func @transform_3(%arg0: i32) -> (i32, i32, i32, i32) {
    %c0_i32 = arith.constant 0 : i32
    %c0_i32_0 = arith.constant 0 : i32
    %c0_i32_1 = arith.constant 0 : i32
    %c0_i32_2 = arith.constant 0 : i32
    return %arg0, %c0_i32, %c0_i32_0, %c0_i32_1 : i32, i32, i32, i32
  }
}

module attributes {stable_mosaic.version = 11 : i64} {
  func.func @_mm_scaled_res_kernel(%arg0: i32, %arg1: i32, %arg2: memref<1x4x120xbf16, #tpu.memory_space<vmem>>, %arg3: memref<1x1x120xf32, #tpu.memory_space<vmem>>, %arg4: memref<120x40xbf16, #tpu.memory_space<vmem>>, %arg5: memref<2x40xf32, #tpu.memory_space<vmem>>, %arg6: memref<1x4x40xbf16, #tpu.memory_space<vmem>>, %arg7: memref<1x4x40xbf16, #tpu.memory_space<vmem>>) attributes {dimension_semantics = [#tpu.dimension_semantics<parallel>, #tpu.dimension_semantics<parallel>], iteration_bounds = array<i64: 2, 1>, scalar_prefetch = 0 : i64, scratch_operands = 0 : i64, tpu.core_type = #tpu.core_type<tc>, window_params = [{transform_indices = @transform_0, window_bounds = array<i64: 1, 4, 120>}, {transform_indices = @transform_1, window_bounds = array<i64: 1, 1, 120>}, {transform_indices = @transform_2, window_bounds = array<i64: 120, 40>}, {transform_indices = @transform_3, window_bounds = array<i64: 2, 40>}, {transform_indices = @transform_4, window_bounds = array<i64: 1, 4, 40>}, {transform_indices = @transform_5, window_bounds = array<i64: 1, 4, 40>}]} {
    %c0 = arith.constant 0 : index
    %c0_0 = arith.constant 0 : index
    %c0_1 = arith.constant 0 : index
    %0 = vector.load %arg2[%c0, %c0_0, %c0_1] : memref<1x4x120xbf16, #tpu.memory_space<vmem>>, vector<1x4x120xbf16>
    %1 = vector.shape_cast %0 : vector<1x4x120xbf16> to vector<4x120xbf16>
    %2 = arith.extf %1 : vector<4x120xbf16> to vector<4x120xf32>
    %c0_2 = arith.constant 0 : index
    %c0_3 = arith.constant 0 : index
    %c0_4 = arith.constant 0 : index
    %3 = vector.load %arg3[%c0_2, %c0_3, %c0_4] : memref<1x1x120xf32, #tpu.memory_space<vmem>>, vector<1x1x120xf32>
    %4 = vector.shape_cast %3 : vector<1x1x120xf32> to vector<1x120xf32>
    %5 = vector.broadcast %4 : vector<1x120xf32> to vector<4x120xf32>
    %6 = arith.mulf %2, %5 : vector<4x120xf32>
    %7 = arith.truncf %6 : vector<4x120xf32> to vector<4x120xbf16>
    %c0_5 = arith.constant 0 : index
    %c0_6 = arith.constant 0 : index
    %8 = vector.load %arg4[%c0_5, %c0_6] : memref<120x40xbf16, #tpu.memory_space<vmem>>, vector<120x40xbf16>
    %cst = arith.constant dense<0.000000e+00> : vector<4x40xf32>
    %9 = tpu.matmul %7, %8, %cst {dimension_numbers = #tpu.dot_dimension_numbers<[1], [0], [0], [1], [0, 0, 1, 1], [], []>} : vector<4x120xbf16>, vector<120x40xbf16>, vector<4x40xf32> -> vector<4x40xf32>
    %c0_7 = arith.constant 0 : index
    %c0_8 = arith.constant 0 : index
    %10 = vector.load %arg5[%c0_7, %c0_8] : memref<2x40xf32, #tpu.memory_space<vmem>>, vector<1x40xf32>
    %11 = vector.broadcast %10 : vector<1x40xf32> to vector<4x40xf32>
    %12 = arith.mulf %9, %11 : vector<4x40xf32>
    %c1 = arith.constant 1 : index
    %c0_9 = arith.constant 0 : index
    %13 = vector.load %arg5[%c1, %c0_9] : memref<2x40xf32, #tpu.memory_space<vmem>>, vector<1x40xf32>
    %14 = vector.broadcast %13 : vector<1x40xf32> to vector<4x40xf32>
    %15 = arith.addf %12, %14 : vector<4x40xf32>
    %c0_10 = arith.constant 0 : index
    %c0_11 = arith.constant 0 : index
    %c0_12 = arith.constant 0 : index
    %16 = vector.load %arg6[%c0_10, %c0_11, %c0_12] : memref<1x4x40xbf16, #tpu.memory_space<vmem>>, vector<1x4x40xbf16>
    %17 = vector.shape_cast %16 : vector<1x4x40xbf16> to vector<4x40xbf16>
    %18 = arith.extf %17 : vector<4x40xbf16> to vector<4x40xf32>
    %19 = arith.addf %15, %18 : vector<4x40xf32>
    %20 = arith.truncf %19 : vector<4x40xf32> to vector<4x40xbf16>
    %c0_13 = arith.constant 0 : index
    %c0_14 = arith.constant 0 : index
    %c0_15 = arith.constant 0 : index
    %21 = vector.load %arg7[%c0_13, %c0_14, %c0_15] : memref<1x4x40xbf16, #tpu.memory_space<vmem>>, vector<1x4x40xbf16>
    %22 = vector.shape_cast %21 : vector<1x4x40xbf16> to vector<4x40xbf16>
    %23 = vector.shape_cast %20 : vector<4x40xbf16> to vector<1x4x40xbf16>
    tpu.vector_store %arg7[%c0_13, %c0_14, %c0_15], %23 {strides = array<i32>} : memref<1x4x40xbf16, #tpu.memory_space<vmem>>, vector<1x4x40xbf16>,
    return
  }
  func.func @transform_0(%arg0: i32, %arg1: i32) -> (i32, i32, i32) {
    %c0_i32 = arith.constant 0 : i32
    %c0_i32_0 = arith.constant 0 : i32
    %c0_i32_1 = arith.constant 0 : i32
    return %arg0, %c0_i32, %c0_i32_0 : i32, i32, i32
  }
  func.func @transform_1(%arg0: i32, %arg1: i32) -> (i32, i32, i32) {
    %c0_i32 = arith.constant 0 : i32
    %c0_i32_0 = arith.constant 0 : i32
    %c0_i32_1 = arith.constant 0 : i32
    return %arg0, %c0_i32, %c0_i32_0 : i32, i32, i32
  }
  func.func @transform_2(%arg0: i32, %arg1: i32) -> (i32, i32) {
    %c0_i32 = arith.constant 0 : i32
    %c0_i32_0 = arith.constant 0 : i32
    return %c0_i32, %arg1 : i32, i32
  }
  func.func @transform_3(%arg0: i32, %arg1: i32) -> (i32, i32) {
    %c0_i32 = arith.constant 0 : i32
    %c0_i32_0 = arith.constant 0 : i32
    return %c0_i32, %arg1 : i32, i32
  }
  func.func @transform_4(%arg0: i32, %arg1: i32) -> (i32, i32, i32) {
    %c0_i32 = arith.constant 0 : i32
    %c0_i32_0 = arith.constant 0 : i32
    return %arg0, %c0_i32, %arg1 : i32, i32, i32
  }
  func.func @transform_5(%arg0: i32, %arg1: i32) -> (i32, i32, i32) {
    %c0_i32 = arith.constant 0 : i32
    %c0_i32_0 = arith.constant 0 : i32
    return %arg0, %c0_i32, %arg1 : i32, i32, i32
  }
}

module attributes {stable_mosaic.version = 11 : i64} {
  func.func @_se_scale_kernel(%arg0: i32, %arg1: memref<1x4x120xbf16, #tpu.memory_space<vmem>>, %arg2: memref<120x32xbf16, #tpu.memory_space<vmem>>, %arg3: memref<1x32xf32, #tpu.memory_space<vmem>>, %arg4: memref<32x120xbf16, #tpu.memory_space<vmem>>, %arg5: memref<1x120xf32, #tpu.memory_space<vmem>>, %arg6: memref<1x1x120xf32, #tpu.memory_space<vmem>>) attributes {dimension_semantics = [#tpu.dimension_semantics<parallel>], iteration_bounds = array<i64: 2>, scalar_prefetch = 0 : i64, scratch_operands = 0 : i64, tpu.core_type = #tpu.core_type<tc>, window_params = [{transform_indices = @transform_0, window_bounds = array<i64: 1, 4, 120>}, {pipeline_mode = #tpu.pipeline_mode<synchronous>, transform_indices = @transform_1, window_bounds = array<i64: 120, 32>}, {pipeline_mode = #tpu.pipeline_mode<synchronous>, transform_indices = @transform_2, window_bounds = array<i64: 1, 32>}, {pipeline_mode = #tpu.pipeline_mode<synchronous>, transform_indices = @transform_3, window_bounds = array<i64: 32, 120>}, {pipeline_mode = #tpu.pipeline_mode<synchronous>, transform_indices = @transform_4, window_bounds = array<i64: 1, 120>}, {transform_indices = @transform_5, window_bounds = array<i64: 1, 1, 120>}]} {
    %c0 = arith.constant 0 : index
    %c0_0 = arith.constant 0 : index
    %c0_1 = arith.constant 0 : index
    %0 = vector.load %arg1[%c0, %c0_0, %c0_1] : memref<1x4x120xbf16, #tpu.memory_space<vmem>>, vector<1x4x120xbf16>
    %1 = vector.shape_cast %0 : vector<1x4x120xbf16> to vector<4x120xbf16>
    %2 = arith.extf %1 : vector<4x120xbf16> to vector<4x120xf32>
    %cst = arith.constant dense<0.000000e+00> : vector<120xf32>
    %3 = vector.multi_reduction <add>, %2, %cst [0] : vector<4x120xf32> to vector<120xf32>
    %4 = vector.shape_cast %3 : vector<120xf32> to vector<1x120xf32>
    %cst_2 = arith.constant 2.500000e-01 : f32
    %5 = vector.broadcast %cst_2 : f32 to vector<1x120xf32>
    %6 = arith.mulf %4, %5 : vector<1x120xf32>
    %7 = arith.truncf %6 : vector<1x120xf32> to vector<1x120xbf16>
    %c0_3 = arith.constant 0 : index
    %c0_4 = arith.constant 0 : index
    %8 = vector.load %arg2[%c0_3, %c0_4] : memref<120x32xbf16, #tpu.memory_space<vmem>>, vector<120x32xbf16>
    %cst_5 = arith.constant dense<0.000000e+00> : vector<1x32xf32>
    %9 = tpu.matmul %7, %8, %cst_5 {dimension_numbers = #tpu.dot_dimension_numbers<[1], [0], [0], [1], [0, 0, 1, 1], [], []>} : vector<1x120xbf16>, vector<120x32xbf16>, vector<1x32xf32> -> vector<1x32xf32>
    %c0_6 = arith.constant 0 : index
    %c0_7 = arith.constant 0 : index
    %10 = vector.load %arg3[%c0_6, %c0_7] : memref<1x32xf32, #tpu.memory_space<vmem>>, vector<1x32xf32>
    %11 = arith.addf %9, %10 : vector<1x32xf32>
    %cst_8 = arith.constant 0.000000e+00 : f32
    %12 = vector.broadcast %cst_8 : f32 to vector<1x32xf32>
    %13 = arith.maximumf %11, %12 : vector<1x32xf32>
    %14 = arith.truncf %13 : vector<1x32xf32> to vector<1x32xbf16>
    %c0_9 = arith.constant 0 : index
    %c0_10 = arith.constant 0 : index
    %15 = vector.load %arg4[%c0_9, %c0_10] : memref<32x120xbf16, #tpu.memory_space<vmem>>, vector<32x120xbf16>
    %cst_11 = arith.constant dense<0.000000e+00> : vector<1x120xf32>
    %16 = tpu.matmul %14, %15, %cst_11 {dimension_numbers = #tpu.dot_dimension_numbers<[1], [0], [0], [1], [0, 0, 1, 1], [], []>} : vector<1x32xbf16>, vector<32x120xbf16>, vector<1x120xf32> -> vector<1x120xf32>
    %c0_12 = arith.constant 0 : index
    %c0_13 = arith.constant 0 : index
    %17 = vector.load %arg5[%c0_12, %c0_13] : memref<1x120xf32, #tpu.memory_space<vmem>>, vector<1x120xf32>
    %18 = arith.addf %16, %17 : vector<1x120xf32>
    %cst_14 = arith.constant 3.000000e+00 : f32
    %19 = vector.broadcast %cst_14 : f32 to vector<1x120xf32>
    %20 = arith.addf %18, %19 : vector<1x120xf32>
    %cst_15 = arith.constant 0.000000e+00 : f32
    %cst_16 = arith.constant 6.000000e+00 : f32
    %21 = vector.broadcast %cst_15 : f32 to vector<1x120xf32>
    %22 = arith.maximumf %21, %20 : vector<1x120xf32>
    %23 = vector.broadcast %cst_16 : f32 to vector<1x120xf32>
    %24 = arith.minimumf %23, %22 : vector<1x120xf32>
    %cst_17 = arith.constant 0.166666672 : f32
    %25 = vector.broadcast %cst_17 : f32 to vector<1x120xf32>
    %26 = arith.mulf %24, %25 : vector<1x120xf32>
    %c0_18 = arith.constant 0 : index
    %c0_19 = arith.constant 0 : index
    %c0_20 = arith.constant 0 : index
    %27 = vector.load %arg6[%c0_18, %c0_19, %c0_20] : memref<1x1x120xf32, #tpu.memory_space<vmem>>, vector<1x1x120xf32>
    %28 = vector.shape_cast %27 : vector<1x1x120xf32> to vector<1x120xf32>
    %29 = vector.shape_cast %26 : vector<1x120xf32> to vector<1x1x120xf32>
    tpu.vector_store %arg6[%c0_18, %c0_19, %c0_20], %29 {strides = array<i32>} : memref<1x1x120xf32, #tpu.memory_space<vmem>>, vector<1x1x120xf32>,
    return
  }
  func.func @transform_0(%arg0: i32) -> (i32, i32, i32) {
    %c0_i32 = arith.constant 0 : i32
    %c0_i32_0 = arith.constant 0 : i32
    %c0_i32_1 = arith.constant 0 : i32
    return %arg0, %c0_i32, %c0_i32_0 : i32, i32, i32
  }
  func.func @transform_1(%arg0: i32) -> (i32, i32) {
    %c0_i32 = arith.constant 0 : i32
    %c0_i32_0 = arith.constant 0 : i32
    %c0_i32_1 = arith.constant 0 : i32
    return %c0_i32, %c0_i32_0 : i32, i32
  }
  func.func @transform_2(%arg0: i32) -> (i32, i32) {
    %c0_i32 = arith.constant 0 : i32
    %c0_i32_0 = arith.constant 0 : i32
    %c0_i32_1 = arith.constant 0 : i32
    return %c0_i32, %c0_i32_0 : i32, i32
  }
  func.func @transform_3(%arg0: i32) -> (i32, i32) {
    %c0_i32 = arith.constant 0 : i32
    %c0_i32_0 = arith.constant 0 : i32
    %c0_i32_1 = arith.constant 0 : i32
    return %c0_i32, %c0_i32_0 : i32, i32
  }
  func.func @transform_4(%arg0: i32) -> (i32, i32) {
    %c0_i32 = arith.constant 0 : i32
    %c0_i32_0 = arith.constant 0 : i32
    %c0_i32_1 = arith.constant 0 : i32
    return %c0_i32, %c0_i32_0 : i32, i32
  }
  func.func @transform_5(%arg0: i32) -> (i32, i32, i32) {
    %c0_i32 = arith.constant 0 : i32
    %c0_i32_0 = arith.constant 0 : i32
    %c0_i32_1 = arith.constant 0 : i32
    return %arg0, %c0_i32, %c0_i32_0 : i32, i32, i32
  }
}

module attributes {stable_mosaic.version = 11 : i64} {
  func.func @_mm_kernel(%arg0: i32, %arg1: i32, %arg2: memref<16x40xbf16, #tpu.memory_space<vmem>>, %arg3: memref<40x256xbf16, #tpu.memory_space<vmem>>, %arg4: memref<2x256xf32, #tpu.memory_space<vmem>>, %arg5: memref<16x256xbf16, #tpu.memory_space<vmem>>) attributes {dimension_semantics = [#tpu.dimension_semantics<parallel>, #tpu.dimension_semantics<parallel>], iteration_bounds = array<i64: 1, 1>, scalar_prefetch = 0 : i64, scratch_operands = 0 : i64, tpu.core_type = #tpu.core_type<tc>, window_params = [{transform_indices = @transform_0, window_bounds = array<i64: 16, 40>}, {transform_indices = @transform_1, window_bounds = array<i64: 40, 256>}, {transform_indices = @transform_2, window_bounds = array<i64: 2, 256>}, {transform_indices = @transform_3, window_bounds = array<i64: 16, 256>}]} {
    %c0 = arith.constant 0 : index
    %c0_0 = arith.constant 0 : index
    %0 = vector.load %arg2[%c0, %c0_0] : memref<16x40xbf16, #tpu.memory_space<vmem>>, vector<16x40xbf16>
    %c0_1 = arith.constant 0 : index
    %c0_2 = arith.constant 0 : index
    %1 = vector.load %arg3[%c0_1, %c0_2] : memref<40x256xbf16, #tpu.memory_space<vmem>>, vector<40x256xbf16>
    %cst = arith.constant dense<0.000000e+00> : vector<16x256xf32>
    %2 = tpu.matmul %0, %1, %cst {dimension_numbers = #tpu.dot_dimension_numbers<[1], [0], [0], [1], [0, 0, 1, 1], [], []>} : vector<16x40xbf16>, vector<40x256xbf16>, vector<16x256xf32> -> vector<16x256xf32>
    %c0_3 = arith.constant 0 : index
    %c0_4 = arith.constant 0 : index
    %3 = vector.load %arg4[%c0_3, %c0_4] : memref<2x256xf32, #tpu.memory_space<vmem>>, vector<1x256xf32>
    %4 = vector.broadcast %3 : vector<1x256xf32> to vector<16x256xf32>
    %5 = arith.mulf %2, %4 : vector<16x256xf32>
    %c1 = arith.constant 1 : index
    %c0_5 = arith.constant 0 : index
    %6 = vector.load %arg4[%c1, %c0_5] : memref<2x256xf32, #tpu.memory_space<vmem>>, vector<1x256xf32>
    %7 = vector.broadcast %6 : vector<1x256xf32> to vector<16x256xf32>
    %8 = arith.addf %5, %7 : vector<16x256xf32>
    %cst_6 = arith.constant 3.000000e+00 : f32
    %9 = vector.broadcast %cst_6 : f32 to vector<16x256xf32>
    %10 = arith.addf %8, %9 : vector<16x256xf32>
    %cst_7 = arith.constant 0.000000e+00 : f32
    %cst_8 = arith.constant 6.000000e+00 : f32
    %11 = vector.broadcast %cst_7 : f32 to vector<16x256xf32>
    %12 = arith.maximumf %11, %10 : vector<16x256xf32>
    %13 = vector.broadcast %cst_8 : f32 to vector<16x256xf32>
    %14 = arith.minimumf %13, %12 : vector<16x256xf32>
    %cst_9 = arith.constant 0.166666672 : f32
    %15 = vector.broadcast %cst_9 : f32 to vector<16x256xf32>
    %16 = arith.mulf %14, %15 : vector<16x256xf32>
    %17 = arith.mulf %8, %16 : vector<16x256xf32>
    %18 = arith.truncf %17 : vector<16x256xf32> to vector<16x256xbf16>
    %c0_10 = arith.constant 0 : index
    %c0_11 = arith.constant 0 : index
    %19 = vector.load %arg5[%c0_10, %c0_11] : memref<16x256xbf16, #tpu.memory_space<vmem>>, vector<16x256xbf16>
    tpu.vector_store %arg5[%c0_10, %c0_11], %18 {strides = array<i32>} : memref<16x256xbf16, #tpu.memory_space<vmem>>, vector<16x256xbf16>,
    return
  }
  func.func @transform_0(%arg0: i32, %arg1: i32) -> (i32, i32) {
    %c0_i32 = arith.constant 0 : i32
    %c0_i32_0 = arith.constant 0 : i32
    return %arg1, %c0_i32 : i32, i32
  }
  func.func @transform_1(%arg0: i32, %arg1: i32) -> (i32, i32) {
    %c0_i32 = arith.constant 0 : i32
    %c0_i32_0 = arith.constant 0 : i32
    return %c0_i32, %arg0 : i32, i32
  }
  func.func @transform_2(%arg0: i32, %arg1: i32) -> (i32, i32) {
    %c0_i32 = arith.constant 0 : i32
    %c0_i32_0 = arith.constant 0 : i32
    return %c0_i32, %arg0 : i32, i32
  }
  func.func @transform_3(%arg0: i32, %arg1: i32) -> (i32, i32) {
    %c0_i32 = arith.constant 0 : i32
    return %arg1, %arg0 : i32, i32
  }
}

module attributes {stable_mosaic.version = 11 : i64} {
  func.func @_pool_classifier_kernel(%arg0: i32, %arg1: memref<1x4x256xbf16, #tpu.memory_space<vmem>>, %arg2: memref<256x64xbf16, #tpu.memory_space<vmem>>, %arg3: memref<1x64xf32, #tpu.memory_space<vmem>>, %arg4: memref<64x10xbf16, #tpu.memory_space<vmem>>, %arg5: memref<1x10xf32, #tpu.memory_space<vmem>>, %arg6: memref<1x1x10xf32, #tpu.memory_space<vmem>>) attributes {dimension_semantics = [#tpu.dimension_semantics<parallel>], iteration_bounds = array<i64: 2>, scalar_prefetch = 0 : i64, scratch_operands = 0 : i64, tpu.core_type = #tpu.core_type<tc>, window_params = [{transform_indices = @transform_0, window_bounds = array<i64: 1, 4, 256>}, {pipeline_mode = #tpu.pipeline_mode<synchronous>, transform_indices = @transform_1, window_bounds = array<i64: 256, 64>}, {pipeline_mode = #tpu.pipeline_mode<synchronous>, transform_indices = @transform_2, window_bounds = array<i64: 1, 64>}, {pipeline_mode = #tpu.pipeline_mode<synchronous>, transform_indices = @transform_3, window_bounds = array<i64: 64, 10>}, {pipeline_mode = #tpu.pipeline_mode<synchronous>, transform_indices = @transform_4, window_bounds = array<i64: 1, 10>}, {transform_indices = @transform_5, window_bounds = array<i64: 1, 1, 10>}]} {
    %c0 = arith.constant 0 : index
    %c0_0 = arith.constant 0 : index
    %c0_1 = arith.constant 0 : index
    %0 = vector.load %arg1[%c0, %c0_0, %c0_1] : memref<1x4x256xbf16, #tpu.memory_space<vmem>>, vector<1x4x256xbf16>
    %1 = vector.shape_cast %0 : vector<1x4x256xbf16> to vector<4x256xbf16>
    %2 = arith.extf %1 : vector<4x256xbf16> to vector<4x256xf32>
    %cst = arith.constant dense<0.000000e+00> : vector<256xf32>
    %3 = vector.multi_reduction <add>, %2, %cst [0] : vector<4x256xf32> to vector<256xf32>
    %4 = vector.shape_cast %3 : vector<256xf32> to vector<1x256xf32>
    %cst_2 = arith.constant 2.500000e-01 : f32
    %5 = vector.broadcast %cst_2 : f32 to vector<1x256xf32>
    %6 = arith.mulf %4, %5 : vector<1x256xf32>
    %7 = arith.truncf %6 : vector<1x256xf32> to vector<1x256xbf16>
    %c0_3 = arith.constant 0 : index
    %c0_4 = arith.constant 0 : index
    %8 = vector.load %arg2[%c0_3, %c0_4] : memref<256x64xbf16, #tpu.memory_space<vmem>>, vector<256x64xbf16>
    %cst_5 = arith.constant dense<0.000000e+00> : vector<1x64xf32>
    %9 = tpu.matmul %7, %8, %cst_5 {dimension_numbers = #tpu.dot_dimension_numbers<[1], [0], [0], [1], [0, 0, 1, 1], [], []>} : vector<1x256xbf16>, vector<256x64xbf16>, vector<1x64xf32> -> vector<1x64xf32>
    %c0_6 = arith.constant 0 : index
    %c0_7 = arith.constant 0 : index
    %10 = vector.load %arg3[%c0_6, %c0_7] : memref<1x64xf32, #tpu.memory_space<vmem>>, vector<1x64xf32>
    %11 = arith.addf %9, %10 : vector<1x64xf32>
    %cst_8 = arith.constant 3.000000e+00 : f32
    %12 = vector.broadcast %cst_8 : f32 to vector<1x64xf32>
    %13 = arith.addf %11, %12 : vector<1x64xf32>
    %cst_9 = arith.constant 0.000000e+00 : f32
    %cst_10 = arith.constant 6.000000e+00 : f32
    %14 = vector.broadcast %cst_9 : f32 to vector<1x64xf32>
    %15 = arith.maximumf %14, %13 : vector<1x64xf32>
    %16 = vector.broadcast %cst_10 : f32 to vector<1x64xf32>
    %17 = arith.minimumf %16, %15 : vector<1x64xf32>
    %cst_11 = arith.constant 0.166666672 : f32
    %18 = vector.broadcast %cst_11 : f32 to vector<1x64xf32>
    %19 = arith.mulf %17, %18 : vector<1x64xf32>
    %20 = arith.mulf %11, %19 : vector<1x64xf32>
    %21 = arith.truncf %20 : vector<1x64xf32> to vector<1x64xbf16>
    %c0_12 = arith.constant 0 : index
    %c0_13 = arith.constant 0 : index
    %22 = vector.load %arg4[%c0_12, %c0_13] : memref<64x10xbf16, #tpu.memory_space<vmem>>, vector<64x10xbf16>
    %cst_14 = arith.constant dense<0.000000e+00> : vector<1x10xf32>
    %23 = tpu.matmul %21, %22, %cst_14 {dimension_numbers = #tpu.dot_dimension_numbers<[1], [0], [0], [1], [0, 0, 1, 1], [], []>} : vector<1x64xbf16>, vector<64x10xbf16>, vector<1x10xf32> -> vector<1x10xf32>
    %c0_15 = arith.constant 0 : index
    %c0_16 = arith.constant 0 : index
    %24 = vector.load %arg5[%c0_15, %c0_16] : memref<1x10xf32, #tpu.memory_space<vmem>>, vector<1x10xf32>
    %25 = arith.addf %23, %24 : vector<1x10xf32>
    %c0_17 = arith.constant 0 : index
    %c0_18 = arith.constant 0 : index
    %c0_19 = arith.constant 0 : index
    %26 = vector.load %arg6[%c0_17, %c0_18, %c0_19] : memref<1x1x10xf32, #tpu.memory_space<vmem>>, vector<1x1x10xf32>
    %27 = vector.shape_cast %26 : vector<1x1x10xf32> to vector<1x10xf32>
    %28 = vector.shape_cast %25 : vector<1x10xf32> to vector<1x1x10xf32>
    tpu.vector_store %arg6[%c0_17, %c0_18, %c0_19], %28 {strides = array<i32>} : memref<1x1x10xf32, #tpu.memory_space<vmem>>, vector<1x1x10xf32>,
    return
  }
  func.func @transform_0(%arg0: i32) -> (i32, i32, i32) {
    %c0_i32 = arith.constant 0 : i32
    %c0_i32_0 = arith.constant 0 : i32
    %c0_i32_1 = arith.constant 0 : i32
    return %arg0, %c0_i32, %c0_i32_0 : i32, i32, i32
  }
  func.func @transform_1(%arg0: i32) -> (i32, i32) {
    %c0_i32 = arith.constant 0 : i32
    %c0_i32_0 = arith.constant 0 : i32
    %c0_i32_1 = arith.constant 0 : i32
    return %c0_i32, %c0_i32_0 : i32, i32
  }
  func.func @transform_2(%arg0: i32) -> (i32, i32) {
    %c0_i32 = arith.constant 0 : i32
    %c0_i32_0 = arith.constant 0 : i32
    %c0_i32_1 = arith.constant 0 : i32
    return %c0_i32, %c0_i32_0 : i32, i32
  }
  func.func @transform_3(%arg0: i32) -> (i32, i32) {
    %c0_i32 = arith.constant 0 : i32
    %c0_i32_0 = arith.constant 0 : i32
    %c0_i32_1 = arith.constant 0 : i32
    return %c0_i32, %c0_i32_0 : i32, i32
  }
  func.func @transform_4(%arg0: i32) -> (i32, i32) {
    %c0_i32 = arith.constant 0 : i32
    %c0_i32_0 = arith.constant 0 : i32
    %c0_i32_1 = arith.constant 0 : i32
    return %c0_i32, %c0_i32_0 : i32, i32
  }
  func.func @transform_5(%arg0: i32) -> (i32, i32, i32) {
    %c0_i32 = arith.constant 0 : i32
    %c0_i32_0 = arith.constant 0 : i32
    %c0_i32_1 = arith.constant 0 : i32
    return %arg0, %c0_i32, %c0_i32_0 : i32, i32, i32
  }
}

</mosaic_0001>

<bundles_post_ra>
// kernel: _lambda_.19
= control target key start
LH: loop header
LB: loop body
LE: loop exit
PB: predicated region body
PF: predicated region fallthrough
CT: control target
= control target key end

     0   :  { %s408_s18 = smov 0   ;;  %s441_s0 = inlined_call_operand.vmem [shape: bf16[2,16,16], index: 0, kind: input, shape index: {}]   ;;  %s442_s1 = inlined_call_operand.vmem [shape: bf16[16,8], index: 1, kind: input, shape index: {}]   ;;  %s443_s2 = inlined_call_operand.vmem [shape: f32[1,8], index: 2, kind: input, shape index: {}]   ;;  %s444_s3 = inlined_call_operand.vmem [shape: bf16[8,16], index: 3, kind: input, shape index: {}]   ;;  %s445_s4 = inlined_call_operand.vmem [shape: f32[1,16], index: 4, kind: input, shape index: {}]   ;;  %s446_s5 = inlined_call_operand.vmem [shape: f32[2,1,16], index: 5, kind: output, shape index: {}]  }
   0x1 LB: > { %s341_s19 = sadd.s32 4294967295, %s376_s18   ;;  %p345_p0 = scmp.ge.s32.totalorder %s376_s18, 1  ;;  %s376_s18 = sphi %s408_s18, %s15_s18  }
   0x2   : > { %p187_p1 = scmp.lt.s32.totalorder %s376_s18, 3 }
   0x4   : > { %p188_p2 = pnand %p345_p0, %p187_p1 }
   0x5   : > { %p213_p3 = scmp.lt.s32.totalorder (!%p188_p2), %s341_s19, 1 }
   0x6   : > { %191 = sbr.rel (%p188_p2) target bundleno = 305 (0x131), region = 40 }
   0xb   : > { %v357_v0 = vld [vmem:[%s442_s1] sm:$0xff]  ;;  %s448_s19 = smov (!%p213_p3, %s341_s19), 1  ;;  %vm226_vm0 = vcmask 130048   ;;  %vm271_vm1 = vcmask 1043456   ;;  %vm267_vm2 = vcmask 64512   ;;  %vm292_vm3 = vcmask 122880  }
   0xc   : > { %257 = vmatpush.bf16.msra.mxu0 %v357_v0  ;;  %s356_s22 = sshll.u32 %s448_s19, 3  ;;  %v265_v15 = vld [vmem:[%s444_s3] sm:$0xf]  ;;  %s220_s9 = scalar_lea.vmem %s446_s5, %s448_s19 }
   0xd   : > { %s217_s25 = scalar_lea.vmem %s441_s0, %s356_s22  ;;  %v273_v16 = vsel %vm271_vm1, %v265_v15, 0  ;;  %v240_v17 = vld [vmem:[%s443_s2] sm:$0x1] }
   0xe   : > { %v359_v1 = vld [vmem:[%s217_s25] sm:$0xff]   ;;  %282 = vmatpush.bf16.msra.mxu1 %v273_v16 }
   0xf   : > { %v360_v2 = vunpack.c.l.bf16 %v359_v1  ;;  %v361_v3 = vunpack.c.h.bf16 %v359_v1  ;;  %v266_v23 = vld [vmem:[%s445_s4] sm:$0x1] }
  0x11   : > { %v227_v4 = vsel %vm226_vm0, %v360_v2, 0.0  ;;  %v228_v5 = vsel %vm226_vm0, %v361_v3, 0.0 }
  0x12   : > { %v229_v6 = vadd.f32 %v228_v5, %v227_v4 }
  0x14   : > { %v230_v7 = vrot.slane %v229_v6, 4 }
  0x16   : > { %v231_v8 = vadd.f32 %v230_v7, %v229_v6 }
  0x18   : > { %v232_v9 = vrot.slane %v231_v8, 2 }
  0x1a   : > { %v233_v10 = vadd.f32 %v232_v9, %v231_v8 }
  0x1c   : > { %v234_v11 = vrot.slane %v233_v10, 1 }
  0x1e   : > { %v235_v12 = vadd.f32 %v234_v11, %v233_v10 }
  0x20   : > { %v236_v13 = vmul.f32 0.0625, %v235_v12 }
  0x22   : > { %v237_v14 = vpack.c.bf16 %v236_v13, %v236_v13 }
  0x24   : > { %352 = vmatmul.msk.bf16.vlgmr.msra.gmra.mxu0 %vm226_vm0, %v237_v14 }
  0xa1   : > { %v259_v18 = vpop.f32.mrf.mxu0 }
  0xa2   : > { %v260_v19 = vadd.f32 %v259_v18, %v240_v17 }
  0xa4   : > { %v263_v20 = vmax.f32 %v260_v19, 0.0 }
  0xa6   : > { %v264_v21 = vpack.c.bf16 %v263_v20, %v263_v20 }
  0xa8   : > { %353 = vmatmul.msk.bf16.vlgmr.msra.gmra.mxu1 %vm267_vm2, %v264_v21 }
  0xa9   : > { %v261_v22 = vpop.f32.mrf.mxu0 }
 0x125   : > { %v284_v24 = vpop.f32.mrf.mxu1 }
 0x126   : > { %v285_v25 = vadd.f32 %v284_v24, %v266_v23 }
 0x128   : > { %v288_v26 = vadd.f32 3.0, %v285_v25 }
 0x12a   : > { %v289_v27 = vmax.f32 %v288_v26, 0.0 }
 0x12c   : > { %v290_v28 = vmin.f32 %v289_v27, 6.0 }
 0x12d   : > { %v286_v29 = vpop.f32.mrf.mxu1 }
 0x12e   : > { %v291_v30 = vmul.f32 0.16666667, %v290_v28 }
 0x130   : > { %293 = vst.msk [vmem:[%s220_s9] sm:$0x1] %vm292_vm3, %v291_v30 }
 0x131 PF: > { %s15_s18 = sadd.s32 1, %s376_s18  }
 0x132   : > { %p12_p4 = scmp.ge.s32.totalorder %s15_s18, 4  }
 0x134   :  { %14 = sbr.rel (!%p12_p4) target bundleno = 1 (0x1), region = 70 }

// kernel: _lambda_.18
= control target key start
LH: loop header
LB: loop body
LE: loop exit
PB: predicated region body
PF: predicated region fallthrough
CT: control target
= control target key end

     0   :  { %s656_s12 = smov 0   ;;  %s658_s13 = smov 0   ;;  %s833_s0 = inlined_call_operand.vmem [shape: bf16[4,2,5,5,16], index: 0, kind: input, shape index: {}]   ;;  %s834_s1 = inlined_call_operand.vmem [shape: bf16[9,16], index: 1, kind: input, shape index: {}]   ;;  %s835_s2 = inlined_call_operand.vmem [shape: f32[2,16], index: 2, kind: input, shape index: {}]   ;;  %s836_s3 = inlined_call_operand.vmem [shape: bf16[2,4,4,16], index: 3, kind: output, shape index: {}]  }
   0x1   :  { %s660_s14 = smov 0  }
   0x2 LB: > { %s555_s15 = sadd.s32 4294967295, %s634_s14   ;;  %s673_s16 = sadd.s32 1, %s634_s14   ;;  %s634_s14 = sphi %s660_s14, %s840_s14   ;;  %s630_s13 = sphi %s658_s13, %s839_s13   ;;  %s626_s12 = sphi %s656_s12, %s838_s12  }
   0x3   : > { %s17_s17 = ssub.s32 %s634_s14, %s673_s16  ;;  %s20_s18 = sadd.s32 1, %s630_s13 }
   0x4   : > { %p18_p0 = scmp.eq.s32.totalorder %s17_s17, 0  ;;  %p27_p1 = scmp.ne.s32.totalorder %s630_s13, %s626_s12 }
   0x5   : > { %p28_p2 = scmp.eq.s32.totalorder %s634_s14, 0  ;;  %p558_p4 = scmp.ge.s32.totalorder %s634_s14, 2 }
   0x6   : > { %s682_s19 = scalar_select %p18_p0, %s630_s13, %s20_s18  }
   0x7   : > { %p29_p3 = por %p28_p2, %p27_p1  ;;  %127 = sbr.rel (%p558_p4) target bundleno = 29 (0x1d), region = 24 }
   0xc   : > { %130 = sbr.rel (!%p29_p3) target bundleno = 29 (0x1d), region = 28  ;;  %s132_s20 = sand.u32 (%p29_p3), 1, %s630_s13  }
   0xd   : > { %s584_s21 = smul.u32 (%p29_p3), 20, %s634_s14 }
   0xe   : > { %s583_s22 = smul.u32 (%p29_p3), 80, %s132_s20 }
   0xf   : > { %s137_s25 = scalar_lea.vmem (%p29_p3), %s833_s0, %s584_s21 }
  0x10   : > { %v154_v0 = vld [vmem:[%s137_s25] sm:$0xff] (%p29_p3)   ;;  %v158_v1 = vld [vmem:[%s137_s25 + $0x8] sm:$0xff] (%p29_p3)   ;;  %v162_v2 = vld [vmem:[%s137_s25 + $0x10] sm:$0xf] (%p29_p3)  ;;  %s134_s26 = scalar_lea.vmem (%p29_p3), [#allocation2], %s583_s22 }
  0x11   : > { %155 = vst [vmem:[%s134_s26] sm:$0xff] %v154_v0   ;;  %v164_v3 = vld [vmem:[%s137_s25 + $0x28] sm:$0xff]   ;;  %v168_v4 = vld [vmem:[%s137_s25 + $0x30] sm:$0xff]   ;;  %v172_v5 = vld [vmem:[%s137_s25 + $0x38] sm:$0xf] }
  0x12   : > { %159 = vst [vmem:[%s134_s26 + $0x8] sm:$0xff] %v158_v1   ;;  %v174_v6 = vld [vmem:[%s137_s25 + $0x50] sm:$0xff]   ;;  %v178_v7 = vld [vmem:[%s137_s25 + $0x58] sm:$0xff]   ;;  %v182_v8 = vld [vmem:[%s137_s25 + $0x60] sm:$0xf] }
  0x13   : > { %163 = vst [vmem:[%s134_s26 + $0x10] sm:$0xf] %v162_v2  ;;  %v184_v9 = vld [vmem:[%s137_s25 + $0x78] sm:$0xff]   ;;  %v188_v10 = vld [vmem:[%s137_s25 + $0x80] sm:$0xff]   ;;  %v192_v11 = vld [vmem:[%s137_s25 + $0x88] sm:$0xf] }
  0x14   : > { %165 = vst [vmem:[%s134_s26 + $0x14] sm:$0xff] %v164_v3  }
  0x15   : > { %169 = vst [vmem:[%s134_s26 + $0x1c] sm:$0xff] %v168_v4  }
  0x16   : > { %173 = vst [vmem:[%s134_s26 + $0x24] sm:$0xf] %v172_v5 }
  0x17   : > { %175 = vst [vmem:[%s134_s26 + $0x28] sm:$0xff] %v174_v6  }
  0x18   : > { %179 = vst [vmem:[%s134_s26 + $0x30] sm:$0xff] %v178_v7  }
  0x19   : > { %183 = vst [vmem:[%s134_s26 + $0x38] sm:$0xf] %v182_v8 }
  0x1a   : > { %185 = vst [vmem:[%s134_s26 + $0x3c] sm:$0xff] %v184_v9  }
  0x1b   : > { %189 = vst [vmem:[%s134_s26 + $0x44] sm:$0xff] %v188_v10  }
  0x1c   : > { %193 = vst [vmem:[%s134_s26 + $0x4c] sm:$0xf] %v192_v11 }
  0x1d PF: > { %p560_p5 = scmp.ge.s32.totalorder %s634_s14, 1  ;;  %p256_p6 = scmp.lt.s32.totalorder %s634_s14, 3 }
  0x1f   : > { %p257_p7 = pnand %p560_p5, %p256_p6 }
  0x20   : > { %s263_s27 = sand.u32 (!%p257_p7), 1, %s626_s12   ;;  %p766_p8 = scmp.lt.s32.totalorder (!%p257_p7), %s555_s15, 1 }
  0x21   : > { %260 = sbr.rel (%p257_p7) target bundleno = 88 (0x58), region = 69 }
  0x22   : > { %s585_s5 = smul.u32 (!%p257_p7), 80, %s263_s27 }
  0x24   : > { %s703_s6 = scalar_lea.vmem (!%p257_p7), [#allocation2], %s585_s5 }
  0x26   : > { %v291_v12 = vld [vmem:[%s834_s1] sm:$0xf]  ;;  %v292_v13 = vld [vmem:[%s834_s1 + $0x4] sm:$0x1]  ;;  %v564_v29 = vld [vmem:[%s703_s6 + $0x18] sm:$0x3] }
  0x27   : > { %v293_v14 = vunpack.c.l.bf16 %v291_v12  ;;  %v294_v15 = vunpack.c.l.bf16 %v292_v13  ;;  %v295_v18 = vld [vmem:[%s703_s6] sm:$0x3]  ;;  %v296_v19 = vld [vmem:[%s703_s6 + $0x4] sm:$0x3]  ;;  %v563_v26 = vld [vmem:[%s703_s6 + $0x14] sm:$0x3]  ;;  %v382_v40 = vunpack.c.l.bf16 %v564_v29 }
  0x28   : > { %v300_v22 = vunpack.c.l.bf16 %v295_v18  ;;  %v301_v23 = vunpack.c.l.bf16 %v296_v19  ;;  %v323_v24 = vld [vmem:[%s703_s6] sm:$0x7]  ;;  %v324_v25 = vld [vmem:[%s703_s6 + $0x4] sm:$0x7]  ;;  %v381_v30 = vunpack.c.l.bf16 %v563_v26  ;;  %v568_v32 = vld [vmem:[%s703_s6 + $0x28] sm:$0x3] }
  0x29   : > { %v699_v16 = vperm.slane %v293_v14, 0  ;;  %v701_v17 = vperm.slane %v293_v14, 6  ;;  %v707_v20 = vperm.slane %v293_v14, 2  ;;  %v709_v21 = vperm.slane %v294_v15, 0  ;;  %v572_v36 = vld [vmem:[%s703_s6 + $0x28] sm:$0x7] }
  0x2a   : > { %v328_v27 = vunpack.c.l.bf16 %v323_v24  ;;  %v329_v28 = vunpack.c.l.bf16 %v324_v25  ;;  %v715_v31 = vperm.slane %v293_v14, 1  ;;  %v720_v35 = vperm.slane %v293_v14, 7  ;;  %v576_v37 = vld [vmem:[%s703_s6 + $0x3c] sm:$0x3]  ;;  %v297_v42 = vld [vmem:[%s703_s6 + $0x8] sm:$0x3] }
  0x2b   : > { %v306_v33 = vmul.f32 %v699_v16, %v300_v22  ;;  %v315_v34 = vmul.f32 %v701_v17, %v301_v23  ;;  %v409_v41 = vunpack.c.l.bf16 %v568_v32  ;;  %v727_v44 = vperm.slane %v293_v14, 3  ;;  %v325_v47 = vld [vmem:[%s703_s6 + $0x8] sm:$0x7]  ;;  %v565_v52 = vld [vmem:[%s703_s6 + $0x1c] sm:$0x3]  ;;  %s842_s15 = smov (!%p766_p8, %s555_s15), 1 }
  0x2c   : > { %v334_v38 = vmul.f32 %v707_v20, %v328_v27  ;;  %v355_v39 = vmul.f32 %v709_v21, %v329_v28  ;;  %v426_v45 = vunpack.c.l.bf16 %v572_v36  ;;  %v729_v46 = vperm.slane %v293_v14, 5  ;;  %v569_v61 = vld [vmem:[%s703_s6 + $0x2c] sm:$0x3]  ;;  %v577_v63 = vld [vmem:[%s703_s6 + $0x40] sm:$0x3]  ;;  %s582_s12 = sshll.u32 %s842_s15, 3 }
  0x2d   : > { %v319_v43 = vadd.f32 %v315_v34, %v306_v33  ;;  %v387_v50 = vmul.f32 %v715_v31, %v381_v30  ;;  %v456_v51 = vunpack.c.l.bf16 %v576_v37  ;;  %v735_v54 = vperm.slane %v293_v14, 4  ;;  %v573_v62 = vld [vmem:[%s703_s6 + $0x2c] sm:$0x7]  ;;  %v751_v22 = vld [vmem:[%s703_s6 + $0x20] sm:$0x3]  ;;  %s805_s18 = scalar_lea.vmem %s836_s3, %s582_s12 }
  0x2e   : > { %v342_v48 = vrot.slane %v334_v38, 1  ;;  %v363_v49 = vrot.slane %v355_v39, 1  ;;  %v431_v53 = vmul.f32 %v729_v46, %v426_v45  ;;  %v302_v55 = vunpack.c.l.bf16 %v297_v42  ;;  %v298_v4 = vld [vmem:[%s703_s6 + $0xc] sm:$0x3]  ;;  %v570_v32 = vld [vmem:[%s703_s6 + $0x30] sm:$0x3] }
  0x2f   : > { %v307_v56 = vmul.f32 %v699_v16, %v301_v23  ;;  %v396_v58 = vmul.f32 %v720_v35, %v382_v40  ;;  %v330_v59 = vunpack.c.l.bf16 %v325_v47  ;;  %v335_v60 = vmul.f32 %v707_v20, %v329_v28  ;;  %v326_v13 = vld [vmem:[%s703_s6 + $0xc] sm:$0x7]  ;;  %v574_v33 = vld [vmem:[%s703_s6 + $0x30] sm:$0x7]  ;;  %v578_v39 = vld [vmem:[%s703_s6 + $0x44] sm:$0x3] }
  0x30   : > { %v350_v57 = vadd.f32 %v342_v48, %v319_v43  ;;  %v414_v0 = vmul.f32 %v727_v44, %v409_v41  ;;  %v439_v1 = vrot.slane %v431_v53, 1  ;;  %v316_v2 = vmul.f32 %v701_v17, %v302_v55  ;;  %v299_v45 = vld [vmem:[%s703_s6 + $0x10] sm:$0x3] }
  0x31   : > { %v383_v3 = vunpack.c.l.bf16 %v565_v52  ;;  %v461_v6 = vmul.f32 %v735_v54, %v456_v51  ;;  %v343_v7 = vrot.slane %v335_v60, 1  ;;  %v356_v8 = vmul.f32 %v709_v21, %v330_v59  ;;  %v776_v52 = vld [vmem:[%s835_s2] ss:$0 sm:$0xff] }
  0x32   : > { %v371_v5 = vadd.f32 %v363_v49, %v350_v57  ;;  %v320_v9 = vadd.f32 %v316_v2, %v307_v56  ;;  %v410_v10 = vunpack.c.l.bf16 %v569_v61  ;;  %v427_v11 = vunpack.c.l.bf16 %v573_v62  ;;  %v327_v57 = vld [vmem:[%s703_s6 + $0x10] sm:$0x7] }
  0x33   : > { %v457_v12 = vunpack.c.l.bf16 %v577_v63  ;;  %v364_v15 = vrot.slane %v356_v8, 1  ;;  %v303_v18 = vunpack.c.l.bf16 %v298_v4  ;;  %v308_v19 = vmul.f32 %v699_v16, %v302_v55  ;;  %v611_v63 = vld [vmem:[%s835_s2 + $0x1] ss:$0 sm:$0xff] }
  0x34   : > { %v391_v14 = vadd.f32 %v387_v50, %v371_v5  ;;  %v351_v23 = vadd.f32 %v343_v7, %v320_v9  ;;  %v388_v24 = vmul.f32 %v715_v31, %v382_v40  ;;  %v397_v25 = vmul.f32 %v720_v35, %v383_v3 }
  0x35   : > { %v415_v26 = vmul.f32 %v727_v44, %v410_v10  ;;  %v317_v28 = vmul.f32 %v701_v17, %v303_v18  ;;  %v331_v29 = vunpack.c.l.bf16 %v326_v13  ;;  %v336_v30 = vmul.f32 %v707_v20, %v330_v59 }
  0x36   : > { %v400_v27 = vadd.f32 %v396_v58, %v391_v14  ;;  %v372_v34 = vadd.f32 %v364_v15, %v351_v23  ;;  %v432_v36 = vmul.f32 %v729_v46, %v427_v11  ;;  %v462_v37 = vmul.f32 %v735_v54, %v457_v12  ;;  %v575_v12 = vld [vmem:[%s703_s6 + $0x34] sm:$0x7] }
  0x37   : > { %v384_v38 = vunpack.c.l.bf16 %v751_v22  ;;  %v321_v41 = vadd.f32 %v317_v28, %v308_v19  ;;  %v344_v42 = vrot.slane %v336_v30, 1  ;;  %v357_v43 = vmul.f32 %v709_v21, %v331_v29 }
  0x38   : > { %v418_v40 = vadd.f32 %v414_v0, %v400_v27  ;;  %v392_v47 = vadd.f32 %v388_v24, %v372_v34  ;;  %v389_v48 = vmul.f32 %v715_v31, %v383_v3  ;;  %v411_v49 = vunpack.c.l.bf16 %v570_v32  ;;  %v567_v3 = vld [vmem:[%s703_s6 + $0x24] sm:$0x3] }
  0x39   : > { %v428_v50 = vunpack.c.l.bf16 %v574_v33  ;;  %v352_v53 = vadd.f32 %v344_v42, %v321_v41  ;;  %v365_v55 = vrot.slane %v357_v43, 1  ;;  %v458_v56 = vunpack.c.l.bf16 %v578_v39  ;;  %v579_v33 = vld [vmem:[%s703_s6 + $0x48] sm:$0x3] }
  0x3a   : > { %v447_v51 = vadd.f32 %v439_v1, %v418_v40  ;;  %v401_v58 = vadd.f32 %v397_v25, %v392_v47  ;;  %v440_v59 = vrot.slane %v432_v36, 1  ;;  %v398_v60 = vmul.f32 %v720_v35, %v384_v38 }
  0x3b   : > { %v304_v61 = vunpack.c.l.bf16 %v299_v45  ;;  %v373_v0 = vadd.f32 %v365_v55, %v352_v53  ;;  %v433_v1 = vmul.f32 %v729_v46, %v428_v50  ;;  %v309_v2 = vmul.f32 %v699_v16, %v303_v18  ;;  %v571_v18 = vld [vmem:[%s703_s6 + $0x34] sm:$0x3] }
  0x3c   : > { %v465_v62 = vadd.f32 %v461_v6, %v447_v51  ;;  %v419_v4 = vadd.f32 %v415_v26, %v401_v58  ;;  %v416_v5 = vmul.f32 %v727_v44, %v411_v49  ;;  %v332_v8 = vunpack.c.l.bf16 %v327_v57 }
  0x3d   : > { %v318_v7 = vmul.f32 %v701_v17, %v304_v61  ;;  %v393_v9 = vadd.f32 %v389_v48, %v373_v0  ;;  %v463_v10 = vmul.f32 %v735_v54, %v458_v56  ;;  %v337_v11 = vmul.f32 %v707_v20, %v331_v29 }
  0x3e   : > { %v471_v6 = vmul.f32 %v776_v52, %v465_v62  ;;  %v448_v13 = vadd.f32 %v440_v59, %v419_v4  ;;  %v358_v16 = vmul.f32 %v709_v21, %v332_v8  ;;  %v385_v15 = vunpack.c.l.bf16 %v567_v3 }
  0x3f   : > { %v322_v14 = vadd.f32 %v318_v7, %v309_v2  ;;  %v402_v22 = vadd.f32 %v398_v60, %v393_v9  ;;  %v441_v17 = vrot.slane %v433_v1, 1  ;;  %v345_v23 = vrot.slane %v337_v11, 1 }
  0x40   : > { %v477_v19 = vadd.f32 %v611_v63, %v471_v6  ;;  %v466_v24 = vadd.f32 %v462_v37, %v448_v13  ;;  %v366_v25 = vrot.slane %v358_v16, 1  ;;  %v390_v26 = vmul.f32 %v715_v31, %v384_v38 }
  0x41   : > { %v429_v27 = vunpack.c.l.bf16 %v575_v12  ;;  %v420_v20 = vadd.f32 %v416_v5, %v402_v22  ;;  %v353_v29 = vadd.f32 %v345_v23, %v322_v14  ;;  %v412_v30 = vunpack.c.l.bf16 %v571_v18 }
  0x42   : > { %v481_v28 = vmax.f32 %v477_v19, 0.0  ;;  %vm489_vm0 = vcmask 123904   ;;  %v472_v21 = vmul.f32 %v776_v52, %v466_v24  ;;  %v399_v32 = vmul.f32 %v720_v35, %v385_v15 }
  0x43   : > { %v449_v36 = vadd.f32 %v441_v17, %v420_v20  ;;  %v374_v31 = vadd.f32 %v366_v25, %v353_v29  ;;  %v434_v37 = vmul.f32 %v729_v46, %v429_v27  ;;  %v417_v41 = vmul.f32 %v727_v44, %v412_v30 }
  0x44   : > { %v485_v34 = vpack.c.bf16 %v481_v28, %v481_v28  ;;  %v478_v38 = vadd.f32 %v611_v63, %v472_v21  ;;  %v459_v42 = vunpack.c.l.bf16 %v579_v33 }
  0x45   : > { %v467_v39 = vadd.f32 %v463_v10, %v449_v36  ;;  %v394_v40 = vadd.f32 %v390_v26, %v374_v31  ;;  %v442_v47 = vrot.slane %v434_v37, 1 }
  0x46   : > { %490 = vst.msk [vmem:[%s805_s18] sm:$0x3] %vm489_vm0, %v485_v34  ;;  %v482_v43 = vmax.f32 %v478_v38, 0.0  ;;  %v464_v46 = vmul.f32 %v735_v54, %v459_v42 }
  0x47   : > { %v473_v45 = vmul.f32 %v776_v52, %v467_v39  ;;  %v403_v35 = vadd.f32 %v399_v32, %v394_v40 }
  0x48   : > { %v486_v48 = vpack.c.bf16 %v482_v43, %v482_v43 }
  0x49   : > { %v479_v49 = vadd.f32 %v611_v63, %v473_v45  ;;  %v421_v50 = vadd.f32 %v417_v41, %v403_v35 }
  0x4a   : > { %491 = vst.msk [vmem:[%s805_s18 + $0x2] sm:$0x3] %vm489_vm0, %v486_v48 }
  0x4b   : > { %v483_v51 = vmax.f32 %v479_v49, 0.0  ;;  %v450_v53 = vadd.f32 %v442_v47, %v421_v50 }
  0x4d   : > { %v487_v55 = vpack.c.bf16 %v483_v51, %v483_v51  ;;  %v468_v56 = vadd.f32 %v464_v46, %v450_v53 }
  0x4f   : > { %492 = vst.msk [vmem:[%s805_s18 + $0x4] sm:$0x3] %vm489_vm0, %v487_v55  ;;  %v474_v44 = vmul.f32 %v776_v52, %v468_v56 }
  0x51   : > { %v480_v57 = vadd.f32 %v611_v63, %v474_v44 }
  0x53   : > { %v484_v58 = vmax.f32 %v480_v57, 0.0 }
  0x55   : > { %v488_v59 = vpack.c.bf16 %v484_v58, %v484_v58 }
  0x57   : > { %493 = vst.msk [vmem:[%s805_s18 + $0x6] sm:$0x3] %vm489_vm0, %v488_v59 }
  0x58 PF: > { %p10_p9 = scmp.ge.s32.totalorder %s673_s16, 4   ;;  %s838_s12 = smov %s630_s13 }
  0x59   : > { %s839_s13 = smov %s682_s19  ;;  %s840_s14 = smov %s673_s16 }
  0x5a   :  { %12 = sbr.rel (!%p10_p9) target bundleno = 2 (0x2), region = 111 }

// kernel: _lambda_.20
= control target key start
LH: loop header
LB: loop body
LE: loop exit
PB: predicated region body
PF: predicated region fallthrough
CT: control target
= control target key end

     0   :  { %s535_s15 = smov 0   ;;  %s537_s16 = smov 0   ;;  %s580_s0 = inlined_call_operand.vmem [shape: bf16[2,16,16], index: 0, kind: input, shape index: {}]   ;;  %s581_s1 = inlined_call_operand.vmem [shape: f32[2,1,16], index: 1, kind: input, shape index: {}]   ;;  %s582_s2 = inlined_call_operand.vmem [shape: bf16[16,16], index: 2, kind: input, shape index: {}]   ;;  %s583_s3 = inlined_call_operand.vmem [shape: f32[2,16], index: 3, kind: input, shape index: {}]   ;;  %s584_s4 = inlined_call_operand.vmem [shape: bf16[2,16,16], index: 4, kind: output, shape index: {}]  }
   0x1   :  { %s539_s17 = smov 0  }
   0x2 LB: > { %s26_s18 = sadd.s32 1, %s504_s16  ;;  %p440_p0 = scmp.ge.s32.totalorder %s508_s17, 1  ;;  %s508_s17 = sphi %s539_s17, %s14_s17   ;;  %s504_s16 = sphi %s537_s16, %s586_s16   ;;  %s500_s15 = sphi %s535_s15, %s585_s15  }
   0x3   : > { %p28_p1 = scmp.ge.s32.totalorder %s26_s18, 2  ;;  %p202_p2 = scmp.lt.s32.totalorder %s508_s17, 3 }
   0x5   : > { %s588_s18 = smov (%p28_p1, %s26_s18), 0  ;;  %p203_p3 = pnand %p440_p0, %p202_p2 }
   0x6   : > { %p242_p4 = scmp.lt.s32.totalorder (!%p203_p3), %s500_s15, 1 }
   0x7   : > { %206 = sbr.rel (%p203_p3) target bundleno = 163 (0xa3), region = 36 }
   0xc   : > { %v454_v0 = vld [vmem:[%s582_s2] sm:$0xff]  ;;  %s590_s15 = smov (!%p242_p4, %s500_s15), 1  ;;  %vm286_vm0 = vcmask 130048   ;;  %vm314_vm1 = vcmask 125952  }
   0xd   : > { %297 = vmatpush.bf16.msra.mxu0 %v454_v0  ;;  %s452_s21 = sshll.u32 %s590_s15, 3  ;;  %s249_s24 = scalar_lea.vmem %s581_s1, %s590_s15  ;;  %v484_v8 = vld [vmem:[%s583_s3] ss:$0 sm:$0xff]  ;;  %v485_v9 = vld [vmem:[%s583_s3 + $0x1] ss:$0 sm:$0xff] }
   0xe   : > { %s246_s27 = scalar_lea.vmem %s580_s0, %s452_s21  ;;  %v483_v1 = vld [vmem:[%s249_s24] ss:$0 sm:$0xff]  ;;  %s265_s8 = scalar_lea.vmem %s584_s4, %s452_s21 }
   0xf   : > { %v456_v2 = vld [vmem:[%s246_s27] sm:$0xff]  }
  0x10   : > { %v457_v3 = vunpack.c.l.bf16 %v456_v2  ;;  %v458_v4 = vunpack.c.h.bf16 %v456_v2 }
  0x12   : > { %v275_v5 = vmul.f32 %v483_v1, %v457_v3  ;;  %v276_v6 = vmul.f32 %v483_v1, %v458_v4 }
  0x14   : > { %v277_v7 = vpack.c.bf16 %v276_v6, %v275_v5 }
  0x16   : > { %449 = vmatmul.msk.bf16.vlgmr.msra.gmra.mxu0 %vm286_vm0, %v277_v7 }
  0x93   : > { %v299_v10 = vpop.f32.mrf.mxu0 }
  0x94   : > { %v306_v11 = vmul.f32 %v484_v8, %v299_v10 }
  0x96   : > { %v310_v12 = vadd.f32 %v485_v9, %v306_v11 }
  0x98   : > { %v312_v13 = vpack.c.bf16 %v310_v12, %v310_v12 }
  0x9a   : > { %315 = vst.msk [vmem:[%s265_s8] sm:$0xf] %vm314_vm1, %v312_v13 }
  0x9b   : > { %v301_v14 = vpop.f32.mrf.mxu0 }
  0x9c   : > { %v307_v15 = vmul.f32 %v484_v8, %v301_v14 }
  0x9e   : > { %v311_v16 = vadd.f32 %v485_v9, %v307_v15 }
  0xa0   : > { %v313_v17 = vpack.c.bf16 %v311_v16, %v311_v16 }
  0xa2   : > { %316 = vst.msk [vmem:[%s265_s8 + $0x4] sm:$0xf] %vm314_vm1, %v313_v17 }
  0xa3 PF: > { %s14_s17 = sadd.s32 1, %s508_s17   ;;  %s585_s15 = smov %s504_s16 }
  0xa4   : > { %p11_p5 = scmp.ge.s32.totalorder %s14_s17, 4   ;;  %s586_s16 = smov %s588_s18 }
  0xa6   :  { %13 = sbr.rel (!%p11_p5) target bundleno = 2 (0x2), region = 75 }

// kernel: _lambda_.17
= control target key start
LH: loop header
LB: loop body
LE: loop exit
PB: predicated region body
PF: predicated region fallthrough
CT: control target
= control target key end

     0   :  { %vm111_vm0 = vcmask 1044480   ;;  %vm112_vm1 = vcmask 1045504   ;;  %v387_v2 = vmov 65535   ;;  %vm86_vm2 = vcmask 220160   ;;  %s555_s1 = inlined_call_operand.vmem [shape: bf16[27,16], index: 1, kind: input, shape index: {}]   ;;  %s556_s2 = inlined_call_operand.vmem [shape: f32[2,16], index: 2, kind: input, shape index: {}]   ;;  %s557_s0 = inlined_call_operand.vmem [shape: bf16[128,27], index: 0, kind: input, shape index: {}]   ;;  %s558_s3 = inlined_call_operand.vmem [shape: bf16[128,16], index: 3, kind: output, shape index: {}]  }
   0x1   :  { %v358_v0 = vld [vmem:[%s555_s1 + $0x8] sm:$0xf]  ;;  %v377_v1 = vld [vmem:[%s555_s1 + $0x8] sm:$0x30]  ;;  %v113_v3 = vsel %vm111_vm0, 4294967295, %v387_v2  ;;  %v376_v7 = vld [vmem:[%s555_s1] sm:$0xff] }
   0x2   :  { %v359_v4 = vor.u32 %v377_v1, %v358_v0  ;;  %v114_v5 = vsel %vm112_vm1, %v113_v3, 0  ;;  %v368_v8 = vld [vmem:[%s557_s0] sm:$0xff]  ;;  %v370_v9 = vld [vmem:[%s557_s0 + $0x10] sm:$0xff]  ;;  %v369_v12 = vld [vmem:[%s557_s0 + $0x8] sm:$0xff]  ;;  %vm299_vm3 = vcmask 125952  }
   0x3   :  { %v372_v10 = vld [vmem:[%s557_s0 + $0x20] sm:$0xff]  ;;  %v374_v11 = vld [vmem:[%s557_s0 + $0x30] sm:$0xff]  ;;  %v371_v13 = vld [vmem:[%s557_s0 + $0x18] sm:$0xff] }
   0x4   :  { %v116_v6 = vand.u32 %v359_v4, %v114_v5  ;;  %v373_v14 = vld [vmem:[%s557_s0 + $0x28] sm:$0xff]  ;;  %v375_v15 = vld [vmem:[%s557_s0 + $0x38] sm:$0xff]  ;;  %v452_v16 = vld [vmem:[%s556_s2] ss:$0 sm:$0xff] }
   0x5   :  { %v457_v17 = vld [vmem:[%s556_s2 + $0x1] ss:$0 sm:$0xff] }
   0x6   :  { %124 = vmatpush.bf16.msra.mxu0 %v116_v6  ;;  %378 = vmatpush.bf16.msra.mxu1 %v116_v6 }
   0x7   :  { %379 = vmatpush.bf16.msra.mxu2 %v116_v6  ;;  %380 = vmatpush.bf16.msra.mxu3 %v116_v6 }
   0xa   :  { %125 = vmatpush.bf16.msra.mxu0 %v376_v7  ;;  %381 = vmatpush.bf16.msra.mxu1 %v376_v7 }
   0xb   :  { %382 = vmatpush.bf16.msra.mxu2 %v376_v7  ;;  %383 = vmatpush.bf16.msra.mxu3 %v376_v7 }
   0xd   :  { %360 = vmatmul.msk.bf16.vlgmr.msra.gmra.mxu0 %vm86_vm2, %v368_v8  ;;  %362 = vmatmul.msk.bf16.vlgmr.msra.gmra.mxu1 %vm86_vm2, %v370_v9 }
   0xe   :  { %364 = vmatmul.msk.bf16.vlgmr.msra.gmra.mxu2 %vm86_vm2, %v372_v10  ;;  %366 = vmatmul.msk.bf16.vlgmr.msra.gmra.mxu3 %vm86_vm2, %v374_v11 }
  0x1d   :  { %361 = vmatmul.msk.bf16.gmra.mxu0 %vm86_vm2, %v369_v12  ;;  %363 = vmatmul.msk.bf16.gmra.mxu1 %vm86_vm2, %v371_v13 }
  0x1e   :  { %365 = vmatmul.msk.bf16.gmra.mxu2 %vm86_vm2, %v373_v14  ;;  %367 = vmatmul.msk.bf16.gmra.mxu3 %vm86_vm2, %v375_v15 }
  0x8a   :  { %v127_v18 = vpop.f32.mrf.mxu0  ;;  %v137_v19 = vpop.f32.mrf.mxu1 }
  0x8b   :  { %v169_v20 = vmul.f32 %v452_v16, %v127_v18  ;;  %v173_v21 = vmul.f32 %v452_v16, %v137_v19 }
  0x8d   :  { %v187_v22 = vadd.f32 %v457_v17, %v169_v20  ;;  %v191_v23 = vadd.f32 %v457_v17, %v173_v21 }
  0x8f   :  { %v203_v24 = vadd.f32 3.0, %v187_v22  ;;  %v207_v25 = vadd.f32 3.0, %v191_v23 }
  0x91   :  { %v219_v26 = vmax.f32 %v203_v24, 0.0  ;;  %v223_v27 = vmax.f32 %v207_v25, 0.0  ;;  %v147_v28 = vpop.f32.mrf.mxu2  ;;  %v157_v29 = vpop.f32.mrf.mxu3 }
  0x92   :  { %v177_v30 = vmul.f32 %v452_v16, %v147_v28  ;;  %v181_v31 = vmul.f32 %v452_v16, %v157_v29  ;;  %v129_v32 = vpop.f32.mrf.mxu0  ;;  %v139_v33 = vpop.f32.mrf.mxu1 }
  0x93   :  { %v235_v34 = vmin.f32 %v219_v26, 6.0  ;;  %v239_v35 = vmin.f32 %v223_v27, 6.0  ;;  %v170_v36 = vmul.f32 %v452_v16, %v129_v32  ;;  %v174_v37 = vmul.f32 %v452_v16, %v139_v33 }
  0x94   :  { %v195_v38 = vadd.f32 %v457_v17, %v177_v30  ;;  %v199_v39 = vadd.f32 %v457_v17, %v181_v31 }
  0x95   :  { %v251_v40 = vmul.f32 0.16666667, %v235_v34  ;;  %v255_v41 = vmul.f32 0.16666667, %v239_v35  ;;  %v188_v42 = vadd.f32 %v457_v17, %v170_v36  ;;  %v192_v43 = vadd.f32 %v457_v17, %v174_v37 }
  0x96   :  { %v211_v44 = vadd.f32 3.0, %v195_v38  ;;  %v215_v45 = vadd.f32 3.0, %v199_v39 }
  0x97   :  { %v267_v46 = vmul.f32 %v251_v40, %v187_v22  ;;  %v271_v47 = vmul.f32 %v255_v41, %v191_v23  ;;  %v204_v48 = vadd.f32 3.0, %v188_v42  ;;  %v208_v49 = vadd.f32 3.0, %v192_v43 }
  0x98   :  { %v227_v50 = vmax.f32 %v211_v44, 0.0  ;;  %v231_v51 = vmax.f32 %v215_v45, 0.0 }
  0x99   :  { %v283_v52 = vpack.c.bf16 %v267_v46, %v267_v46  ;;  %v287_v53 = vpack.c.bf16 %v271_v47, %v271_v47  ;;  %v220_v54 = vmax.f32 %v204_v48, 0.0  ;;  %v224_v55 = vmax.f32 %v208_v49, 0.0  ;;  %v149_v56 = vpop.f32.mrf.mxu2  ;;  %v159_v57 = vpop.f32.mrf.mxu3 }
  0x9a   :  { %v243_v58 = vmin.f32 %v227_v50, 6.0  ;;  %v247_v59 = vmin.f32 %v231_v51, 6.0  ;;  %v178_v60 = vmul.f32 %v452_v16, %v149_v56  ;;  %v182_v61 = vmul.f32 %v452_v16, %v159_v57  ;;  %v132_v62 = vpop.f32.mrf.mxu0  ;;  %v142_v63 = vpop.f32.mrf.mxu1 }
  0x9b   :  { %300 = vst.msk [vmem:[%s558_s3] sm:$0xf] %vm299_vm3, %v283_v52  ;;  %v236_v0 = vmin.f32 %v220_v54, 6.0  ;;  %v240_v1 = vmin.f32 %v224_v55, 6.0  ;;  %v171_v2 = vmul.f32 %v452_v16, %v132_v62  ;;  %v175_v3 = vmul.f32 %v452_v16, %v142_v63 }
  0x9c   :  { %304 = vst.msk [vmem:[%s558_s3 + $0x10] sm:$0xf] %vm299_vm3, %v287_v53  ;;  %v259_v4 = vmul.f32 0.16666667, %v243_v58  ;;  %v263_v5 = vmul.f32 0.16666667, %v247_v59  ;;  %v196_v6 = vadd.f32 %v457_v17, %v178_v60  ;;  %v200_v7 = vadd.f32 %v457_v17, %v182_v61 }
  0x9d   :  { %v252_v8 = vmul.f32 0.16666667, %v236_v0  ;;  %v256_v9 = vmul.f32 0.16666667, %v240_v1  ;;  %v189_v10 = vadd.f32 %v457_v17, %v171_v2  ;;  %v193_v11 = vadd.f32 %v457_v17, %v175_v3 }
  0x9e   :  { %v275_v12 = vmul.f32 %v259_v4, %v195_v38  ;;  %v279_v13 = vmul.f32 %v263_v5, %v199_v39  ;;  %v212_v14 = vadd.f32 3.0, %v196_v6  ;;  %v216_v15 = vadd.f32 3.0, %v200_v7 }
  0x9f   :  { %v268_v18 = vmul.f32 %v252_v8, %v188_v42  ;;  %v272_v19 = vmul.f32 %v256_v9, %v192_v43  ;;  %v205_v20 = vadd.f32 3.0, %v189_v10  ;;  %v209_v21 = vadd.f32 3.0, %v193_v11 }
  0xa0   :  { %v291_v22 = vpack.c.bf16 %v275_v12, %v275_v12  ;;  %v295_v23 = vpack.c.bf16 %v279_v13, %v279_v13  ;;  %v228_v24 = vmax.f32 %v212_v14, 0.0  ;;  %v232_v25 = vmax.f32 %v216_v15, 0.0 }
  0xa1   :  { %v284_v26 = vpack.c.bf16 %v268_v18, %v268_v18  ;;  %v288_v27 = vpack.c.bf16 %v272_v19, %v272_v19  ;;  %v221_v28 = vmax.f32 %v205_v20, 0.0  ;;  %v225_v29 = vmax.f32 %v209_v21, 0.0  ;;  %v152_v30 = vpop.f32.mrf.mxu2  ;;  %v162_v31 = vpop.f32.mrf.mxu3 }
  0xa2   :  { %308 = vst.msk [vmem:[%s558_s3 + $0x20] sm:$0xf] %vm299_vm3, %v291_v22  ;;  %v244_v32 = vmin.f32 %v228_v24, 6.0  ;;  %v248_v33 = vmin.f32 %v232_v25, 6.0  ;;  %v179_v34 = vmul.f32 %v452_v16, %v152_v30  ;;  %v183_v35 = vmul.f32 %v452_v16, %v162_v31  ;;  %v134_v36 = vpop.f32.mrf.mxu0  ;;  %v144_v37 = vpop.f32.mrf.mxu1 }
  0xa3   :  { %312 = vst.msk [vmem:[%s558_s3 + $0x30] sm:$0xf] %vm299_vm3, %v295_v23  ;;  %v237_v38 = vmin.f32 %v221_v28, 6.0  ;;  %v241_v39 = vmin.f32 %v225_v29, 6.0  ;;  %v172_v40 = vmul.f32 %v452_v16, %v134_v36  ;;  %v176_v41 = vmul.f32 %v452_v16, %v144_v37 }
  0xa4   :  { %301 = vst.msk [vmem:[%s558_s3 + $0x4] sm:$0xf] %vm299_vm3, %v284_v26  ;;  %v260_v42 = vmul.f32 0.16666667, %v244_v32  ;;  %v264_v43 = vmul.f32 0.16666667, %v248_v33  ;;  %v197_v44 = vadd.f32 %v457_v17, %v179_v34  ;;  %v201_v45 = vadd.f32 %v457_v17, %v183_v35 }
  0xa5   :  { %305 = vst.msk [vmem:[%s558_s3 + $0x14] sm:$0xf] %vm299_vm3, %v288_v27  ;;  %v253_v46 = vmul.f32 0.16666667, %v237_v38  ;;  %v257_v47 = vmul.f32 0.16666667, %v241_v39  ;;  %v190_v48 = vadd.f32 %v457_v17, %v172_v40  ;;  %v194_v49 = vadd.f32 %v457_v17, %v176_v41 }
  0xa6   :  { %v276_v50 = vmul.f32 %v260_v42, %v196_v6  ;;  %v280_v51 = vmul.f32 %v264_v43, %v200_v7  ;;  %v213_v52 = vadd.f32 3.0, %v197_v44  ;;  %v217_v53 = vadd.f32 3.0, %v201_v45 }
  0xa7   :  { %v269_v54 = vmul.f32 %v253_v46, %v189_v10  ;;  %v273_v55 = vmul.f32 %v257_v47, %v193_v11  ;;  %v206_v56 = vadd.f32 3.0, %v190_v48  ;;  %v210_v57 = vadd.f32 3.0, %v194_v49 }
  0xa8   :  { %v292_v58 = vpack.c.bf16 %v276_v50, %v276_v50  ;;  %v296_v59 = vpack.c.bf16 %v280_v51, %v280_v51  ;;  %v229_v60 = vmax.f32 %v213_v52, 0.0  ;;  %v233_v61 = vmax.f32 %v217_v53, 0.0 }
  0xa9   :  { %v285_v62 = vpack.c.bf16 %v269_v54, %v269_v54  ;;  %v289_v63 = vpack.c.bf16 %v273_v55, %v273_v55  ;;  %v222_v0 = vmax.f32 %v206_v56, 0.0  ;;  %v226_v1 = vmax.f32 %v210_v57, 0.0  ;;  %v154_v2 = vpop.f32.mrf.mxu2  ;;  %v164_v3 = vpop.f32.mrf.mxu3 }
  0xaa   :  { %309 = vst.msk [vmem:[%s558_s3 + $0x24] sm:$0xf] %vm299_vm3, %v292_v58  ;;  %v245_v4 = vmin.f32 %v229_v60, 6.0  ;;  %v249_v5 = vmin.f32 %v233_v61, 6.0  ;;  %v180_v6 = vmul.f32 %v452_v16, %v154_v2  ;;  %v184_v7 = vmul.f32 %v452_v16, %v164_v3 }
  0xab   :  { %313 = vst.msk [vmem:[%s558_s3 + $0x34] sm:$0xf] %vm299_vm3, %v296_v59  ;;  %v238_v8 = vmin.f32 %v222_v0, 6.0  ;;  %v242_v9 = vmin.f32 %v226_v1, 6.0 }
  0xac   :  { %302 = vst.msk [vmem:[%s558_s3 + $0x8] sm:$0xf] %vm299_vm3, %v285_v62  ;;  %v261_v10 = vmul.f32 0.16666667, %v245_v4  ;;  %v265_v11 = vmul.f32 0.16666667, %v249_v5  ;;  %v198_v12 = vadd.f32 %v457_v17, %v180_v6  ;;  %v202_v13 = vadd.f32 %v457_v17, %v184_v7 }
  0xad   :  { %306 = vst.msk [vmem:[%s558_s3 + $0x18] sm:$0xf] %vm299_vm3, %v289_v63  ;;  %v254_v16 = vmul.f32 0.16666667, %v238_v8  ;;  %v258_v14 = vmul.f32 0.16666667, %v242_v9 }
  0xae   :  { %v277_v15 = vmul.f32 %v261_v10, %v197_v44  ;;  %v281_v18 = vmul.f32 %v265_v11, %v201_v45  ;;  %v214_v19 = vadd.f32 3.0, %v198_v12  ;;  %v218_v20 = vadd.f32 3.0, %v202_v13 }
  0xaf   :  { %v270_v21 = vmul.f32 %v254_v16, %v190_v48  ;;  %v274_v22 = vmul.f32 %v258_v14, %v194_v49 }
  0xb0   :  { %v293_v23 = vpack.c.bf16 %v277_v15, %v277_v15  ;;  %v297_v24 = vpack.c.bf16 %v281_v18, %v281_v18  ;;  %v230_v25 = vmax.f32 %v214_v19, 0.0  ;;  %v234_v26 = vmax.f32 %v218_v20, 0.0 }
  0xb1   :  { %v286_v27 = vpack.c.bf16 %v270_v21, %v270_v21  ;;  %v290_v28 = vpack.c.bf16 %v274_v22, %v274_v22 }
  0xb2   :  { %310 = vst.msk [vmem:[%s558_s3 + $0x28] sm:$0xf] %vm299_vm3, %v293_v23  ;;  %v246_v17 = vmin.f32 %v230_v25, 6.0  ;;  %v250_v29 = vmin.f32 %v234_v26, 6.0 }
  0xb3   :  { %314 = vst.msk [vmem:[%s558_s3 + $0x38] sm:$0xf] %vm299_vm3, %v297_v24 }
  0xb4   :  { %303 = vst.msk [vmem:[%s558_s3 + $0xc] sm:$0xf] %vm299_vm3, %v286_v27  ;;  %v262_v30 = vmul.f32 0.16666667, %v246_v17  ;;  %v266_v31 = vmul.f32 0.16666667, %v250_v29 }
  0xb5   :  { %307 = vst.msk [vmem:[%s558_s3 + $0x1c] sm:$0xf] %vm299_vm3, %v290_v28 }
  0xb6   :  { %v278_v32 = vmul.f32 %v262_v30, %v198_v12  ;;  %v282_v33 = vmul.f32 %v266_v31, %v202_v13 }
  0xb8   :  { %v294_v34 = vpack.c.bf16 %v278_v32, %v278_v32  ;;  %v298_v35 = vpack.c.bf16 %v282_v33, %v282_v33 }
  0xba   :  { %311 = vst.msk [vmem:[%s558_s3 + $0x2c] sm:$0xf] %vm299_vm3, %v294_v34 }
  0xbb   :  { %315 = vst.msk [vmem:[%s558_s3 + $0x3c] sm:$0xf] %vm299_vm3, %v298_v35 }

// kernel: _lambda_.21
= control target key start
LH: loop header
LB: loop body
LE: loop exit
PB: predicated region body
PF: predicated region fallthrough
CT: control target
= control target key end

     0   :  { %vm37_vm0 = vcmask 130048   ;;  %vm83_vm1 = vcmask 584704   ;;  %s163_s1 = inlined_call_operand.vmem [shape: bf16[16,72], index: 1, kind: input, shape index: {}]   ;;  %s164_s0 = inlined_call_operand.vmem [shape: bf16[32,16], index: 0, kind: input, shape index: {}]   ;;  %s165_s2 = inlined_call_operand.vmem [shape: f32[2,72], index: 2, kind: input, shape index: {}]   ;;  %s166_s3 = inlined_call_operand.vmem [shape: bf16[32,72], index: 3, kind: output, shape index: {}]  }
   0x1   :  { %v108_v0 = vld [vmem:[%s163_s1] sm:$0xff]  ;;  %v107_v2 = vld [vmem:[%s164_s0 + $0x8] sm:$0xff] }
   0x2   :  { %v106_v1 = vld [vmem:[%s164_s0] sm:$0xff]  ;;  %51 = vmatpush.bf16.msra.mxu0 %v108_v0  ;;  %109 = vmatpush.bf16.msra.mxu1 %v108_v0 }
   0x3   :  { %v110_v3 = vld [vmem:[%s165_s2] ss:$0 sm:$0xff]  ;;  %v111_v4 = vld [vmem:[%s165_s2 + $0x1] ss:$0 sm:$0xff] }
   0x5   :  { %104 = vmatmul.msk.bf16.vlgmr.msra.gmra.mxu0 %vm37_vm0, %v106_v1  ;;  %105 = vmatmul.msk.bf16.vlgmr.msra.gmra.mxu1 %vm37_vm0, %v107_v2 }
  0x82   :  { %v53_v5 = vpop.f32.mrf.mxu0  ;;  %v58_v6 = vpop.f32.mrf.mxu1 }
  0x83   :  { %v65_v7 = vmul.f32 %v110_v3, %v53_v5  ;;  %v67_v8 = vmul.f32 %v110_v3, %v58_v6 }
  0x85   :  { %v71_v9 = vadd.f32 %v111_v4, %v65_v7  ;;  %v73_v10 = vadd.f32 %v111_v4, %v67_v8 }
  0x87   :  { %v75_v11 = vmax.f32 %v71_v9, 0.0  ;;  %v77_v12 = vmax.f32 %v73_v10, 0.0 }
  0x89   :  { %v79_v13 = vpack.c.bf16 %v75_v11, %v75_v11  ;;  %v81_v14 = vpack.c.bf16 %v77_v12, %v77_v12 }
  0x8a   :  { %v55_v15 = vpop.f32.mrf.mxu0  ;;  %v60_v16 = vpop.f32.mrf.mxu1 }
  0x8b   :  { %84 = vst.msk [vmem:[%s166_s3] sm:$0xf] %vm83_vm1, %v79_v13  ;;  %v66_v17 = vmul.f32 %v110_v3, %v55_v15  ;;  %v68_v18 = vmul.f32 %v110_v3, %v60_v16 }
  0x8c   :  { %86 = vst.msk [vmem:[%s166_s3 + $0x8] sm:$0xf] %vm83_vm1, %v81_v14 }
  0x8d   :  { %v72_v19 = vadd.f32 %v111_v4, %v66_v17  ;;  %v74_v20 = vadd.f32 %v111_v4, %v68_v18 }
  0x8f   :  { %v76_v21 = vmax.f32 %v72_v19, 0.0  ;;  %v78_v22 = vmax.f32 %v74_v20, 0.0 }
  0x91   :  { %v80_v23 = vpack.c.bf16 %v76_v21, %v76_v21  ;;  %v82_v24 = vpack.c.bf16 %v78_v22, %v78_v22 }
  0x93   :  { %85 = vst.msk [vmem:[%s166_s3 + $0x4] sm:$0xf] %vm83_vm1, %v80_v23 }
  0x94   :  { %87 = vst.msk [vmem:[%s166_s3 + $0xc] sm:$0xf] %vm83_vm1, %v82_v24 }

// kernel: _lambda_.24
= control target key start
LH: loop header
LB: loop body
LE: loop exit
PB: predicated region body
PF: predicated region fallthrough
CT: control target
= control target key end

     0   :  { %vm38_vm0 = vcmask 1043456   ;;  %vm34_vm1 = vcmask 195584   ;;  %vm76_vm2 = vcmask 781312   ;;  %s137_s1 = inlined_call_operand.vmem [shape: bf16[24,96], index: 1, kind: input, shape index: {}]   ;;  %s138_s2 = inlined_call_operand.vmem [shape: f32[2,96], index: 2, kind: input, shape index: {}]   ;;  %s139_s0 = inlined_call_operand.vmem [shape: bf16[16,24], index: 0, kind: input, shape index: {}]   ;;  %s140_s3 = inlined_call_operand.vmem [shape: bf16[16,96], index: 3, kind: output, shape index: {}]  }
   0x1   :  { %v19_v0 = vld [vmem:[%s137_s1 + $0x8] sm:$0xf]  ;;  %v93_v4 = vld [vmem:[%s137_s1] sm:$0xff] }
   0x2   :  { %v30_v1 = vunpack.c.l.b16 %v19_v0  ;;  %v92_v5 = vld [vmem:[%s139_s0] sm:$0xff] }
   0x3   :  { %v94_v6 = vld [vmem:[%s138_s2] ss:$0 sm:$0xff]  ;;  %v95_v7 = vld [vmem:[%s138_s2 + $0x1] ss:$0 sm:$0xff] }
   0x4   :  { %v32_v2 = vpack.c.b16 %v30_v1, %v30_v1 }
   0x6   :  { %v40_v3 = vsel %vm38_vm0, %v32_v2, 0 }
   0x7   :  { %48 = vmatpush.bf16.msra.mxu0 %v40_v3 }
   0xb   :  { %49 = vmatpush.bf16.msra.mxu0 %v93_v4 }
   0xe   :  { %91 = vmatmul.msk.bf16.vlgmr.msra.gmra.mxu0 %vm34_vm1, %v92_v5 }
  0x8b   :  { %v51_v8 = vpop.f32.mrf.mxu0 }
  0x8c   :  { %v58_v9 = vmul.f32 %v94_v6, %v51_v8 }
  0x8e   :  { %v62_v10 = vadd.f32 %v95_v7, %v58_v9 }
  0x90   :  { %v64_v11 = vadd.f32 3.0, %v62_v10 }
  0x92   :  { %v66_v12 = vmax.f32 %v64_v11, 0.0 }
  0x93   :  { %v53_v13 = vpop.f32.mrf.mxu0 }
  0x94   :  { %v68_v14 = vmin.f32 %v66_v12, 6.0  ;;  %v59_v15 = vmul.f32 %v94_v6, %v53_v13 }
  0x96   :  { %v70_v16 = vmul.f32 0.16666667, %v68_v14  ;;  %v63_v17 = vadd.f32 %v95_v7, %v59_v15 }
  0x98   :  { %v72_v18 = vmul.f32 %v70_v16, %v62_v10  ;;  %v65_v19 = vadd.f32 3.0, %v63_v17 }
  0x9a   :  { %v74_v20 = vpack.c.bf16 %v72_v18, %v72_v18  ;;  %v67_v21 = vmax.f32 %v65_v19, 0.0 }
  0x9c   :  { %77 = vst.msk [vmem:[%s140_s3] sm:$0xf] %vm76_vm2, %v74_v20  ;;  %v69_v22 = vmin.f32 %v67_v21, 6.0 }
  0x9e   :  { %v71_v23 = vmul.f32 0.16666667, %v69_v22 }
  0xa0   :  { %v73_v24 = vmul.f32 %v71_v23, %v63_v17 }
  0xa2   :  { %v75_v25 = vpack.c.bf16 %v73_v24, %v73_v24 }
  0xa4   :  { %78 = vst.msk [vmem:[%s140_s3 + $0x4] sm:$0xf] %vm76_vm2, %v75_v25 }

// kernel: _lambda_.23
= control target key start
LH: loop header
LB: loop body
LE: loop exit
PB: predicated region body
PF: predicated region fallthrough
CT: control target
= control target key end

     0   :  { %vm62_vm0 = vcmask 1043456   ;;  %vm58_vm1 = vcmask 588800   ;;  %vm90_vm2 = vcmask 191488   ;;  %s175_s1 = inlined_call_operand.vmem [shape: bf16[72,24], index: 1, kind: input, shape index: {}]   ;;  %s176_s2 = inlined_call_operand.vmem [shape: f32[2,24], index: 2, kind: input, shape index: {}]   ;;  %s177_s0 = inlined_call_operand.vmem [shape: bf16[16,72], index: 0, kind: input, shape index: {}]   ;;  %s178_s3 = inlined_call_operand.vmem [shape: bf16[16,24], index: 3, kind: output, shape index: {}]  }
   0x1   :  { %v25_v0 = vld [vmem:[%s175_s1 + $0x20] sm:$0xf]  ;;  %v122_v4 = vld [vmem:[%s175_s1 + $0x18] sm:$0xff]  ;;  %v121_v5 = vld [vmem:[%s175_s1 + $0x10] sm:$0xff] }
   0x2   :  { %v48_v1 = vunpack.c.l.b16 %v25_v0  ;;  %v120_v6 = vld [vmem:[%s175_s1 + $0x8] sm:$0xff]  ;;  %v119_v7 = vld [vmem:[%s175_s1] sm:$0xff] }
   0x3   :  { %v118_v8 = vld [vmem:[%s177_s0] sm:$0xff] }
   0x4   :  { %v53_v2 = vpack.c.b16 %v48_v1, %v48_v1  ;;  %v123_v9 = vld [vmem:[%s176_s2] ss:$0 sm:$0xff]  ;;  %v124_v10 = vld [vmem:[%s176_s2 + $0x1] ss:$0 sm:$0xff] }
   0x6   :  { %v64_v3 = vsel %vm62_vm0, %v53_v2, 0 }
   0x7   :  { %69 = vmatpush.bf16.msra.mxu0 %v64_v3 }
   0xb   :  { %70 = vmatpush.bf16.msra.mxu0 %v122_v4 }
   0xf   :  { %71 = vmatpush.bf16.msra.mxu0 %v121_v5 }
  0x13   :  { %72 = vmatpush.bf16.msra.mxu0 %v120_v6 }
  0x17   :  { %73 = vmatpush.bf16.msra.mxu0 %v119_v7 }
  0x1a   :  { %117 = vmatmul.msk.bf16.vlgmr.msra.gmra.mxu0 %vm58_vm1, %v118_v8 }
  0x97   :  { %v75_v11 = vpop.f32.mrf.mxu0 }
  0x98   :  { %v82_v12 = vmul.f32 %v123_v9, %v75_v11 }
  0x9a   :  { %v86_v13 = vadd.f32 %v124_v10, %v82_v12 }
  0x9c   :  { %v88_v14 = vpack.c.bf16 %v86_v13, %v86_v13 }
  0x9e   :  { %91 = vst.msk [vmem:[%s178_s3] sm:$0xf] %vm90_vm2, %v88_v14 }
  0x9f   :  { %v77_v15 = vpop.f32.mrf.mxu0 }
  0xa0   :  { %v83_v16 = vmul.f32 %v123_v9, %v77_v15 }
  0xa2   :  { %v87_v17 = vadd.f32 %v124_v10, %v83_v16 }
  0xa4   :  { %v89_v18 = vpack.c.bf16 %v87_v17, %v87_v17 }
  0xa6   :  { %92 = vst.msk [vmem:[%s178_s3 + $0x4] sm:$0xf] %vm90_vm2, %v89_v18 }

// kernel: _lambda_.22
= control target key start
LH: loop header
LB: loop body
LE: loop exit
PB: predicated region body
PF: predicated region fallthrough
CT: control target
= control target key end

     0   :  { %s534_s12 = smov 0   ;;  %s536_s13 = smov 0   ;;  %s627_s0 = inlined_call_operand.vmem [shape: bf16[4,2,3,3,72], index: 0, kind: input, shape index: {}]   ;;  %s628_s1 = inlined_call_operand.vmem [shape: bf16[9,72], index: 1, kind: input, shape index: {}]   ;;  %s629_s2 = inlined_call_operand.vmem [shape: f32[2,72], index: 2, kind: input, shape index: {}]   ;;  %s630_s3 = inlined_call_operand.vmem [shape: bf16[2,2,2,72], index: 3, kind: output, shape index: {}]  }
   0x1   :  { %s538_s14 = smov 0  }
   0x2 LB: > { %s437_s15 = sadd.s32 4294967295, %s512_s14   ;;  %s551_s16 = sadd.s32 1, %s512_s14   ;;  %s512_s14 = sphi %s538_s14, %s633_s14   ;;  %s508_s13 = sphi %s536_s13, %s632_s13   ;;  %s504_s12 = sphi %s534_s12, %s631_s12  }
   0x3   : > { %s17_s17 = ssub.s32 %s512_s14, %s551_s16  ;;  %s20_s18 = sadd.s32 1, %s508_s13 }
   0x4   : > { %p18_p0 = scmp.eq.s32.totalorder %s17_s17, 0  ;;  %p27_p1 = scmp.ne.s32.totalorder %s508_s13, %s504_s12 }
   0x5   : > { %p28_p2 = scmp.eq.s32.totalorder %s512_s14, 0  ;;  %p440_p4 = scmp.ge.s32.totalorder %s512_s14, 2 }
   0x6   : > { %s560_s19 = scalar_select %p18_p0, %s508_s13, %s20_s18  }
   0x7   : > { %p29_p3 = por %p28_p2, %p27_p1  ;;  %127 = sbr.rel (%p440_p4) target bundleno = 25 (0x19), region = 24 }
   0xc   : > { %130 = sbr.rel (!%p29_p3) target bundleno = 25 (0x19), region = 28  ;;  %s132_s20 = sand.u32 (%p29_p3), 1, %s508_s13  }
   0xd   : > { %s462_s21 = smul.u32 (%p29_p3), 6, %s512_s14 }
   0xe   : > { %s461_s22 = smul.u32 (%p29_p3), 24, %s132_s20 }
   0xf   : > { %s137_s25 = scalar_lea.vmem (%p29_p3), %s627_s0, %s462_s21 }
  0x10   : > { %v154_v0 = vld [vmem:[%s137_s25] sm:$0xf] (%p29_p3)   ;;  %v158_v1 = vld [vmem:[%s137_s25 + $0x4] sm:$0x3] (%p29_p3)  ;;  %s134_s26 = scalar_lea.vmem (%p29_p3), [#allocation2], %s461_s22 }
  0x11   : > { %155 = vst [vmem:[%s134_s26] sm:$0xf] %v154_v0   ;;  %v160_v2 = vld [vmem:[%s137_s25 + $0xc] sm:$0xf]   ;;  %v164_v3 = vld [vmem:[%s137_s25 + $0x10] sm:$0x3] }
  0x12   : > { %159 = vst [vmem:[%s134_s26 + $0x4] sm:$0x3] %v158_v1  ;;  %v166_v4 = vld [vmem:[%s137_s25 + $0x18] sm:$0xf]   ;;  %v170_v5 = vld [vmem:[%s137_s25 + $0x1c] sm:$0x3] }
  0x13   : > { %161 = vst [vmem:[%s134_s26 + $0x6] sm:$0xf] %v160_v2   ;;  %v172_v6 = vld [vmem:[%s137_s25 + $0x24] sm:$0xf]   ;;  %v176_v7 = vld [vmem:[%s137_s25 + $0x28] sm:$0x3] }
  0x14   : > { %165 = vst [vmem:[%s134_s26 + $0xa] sm:$0x3] %v164_v3 }
  0x15   : > { %167 = vst [vmem:[%s134_s26 + $0xc] sm:$0xf] %v166_v4  }
  0x16   : > { %171 = vst [vmem:[%s134_s26 + $0x10] sm:$0x3] %v170_v5 }
  0x17   : > { %173 = vst [vmem:[%s134_s26 + $0x12] sm:$0xf] %v172_v6  }
  0x18   : > { %177 = vst [vmem:[%s134_s26 + $0x16] sm:$0x3] %v176_v7 }
  0x19 PF: > { %p442_p5 = scmp.ge.s32.totalorder %s512_s14, 1  ;;  %p224_p6 = scmp.lt.s32.totalorder %s512_s14, 3 }
  0x1b   : > { %p225_p7 = pnand %p442_p5, %p224_p6 }
  0x1c   : > { %s231_s27 = sand.u32 (!%p225_p7), 1, %s504_s12   ;;  %p253_p8 = scmp.lt.s32.totalorder (!%p225_p7), %s437_s15, 1 }
  0x1d   : > { %228 = sbr.rel (%p225_p7) target bundleno = 70 (0x46), region = 69 }
  0x1e   : > { %s463_s5 = smul.u32 (!%p225_p7), 24, %s231_s27 }
  0x20   : > { %s581_s6 = scalar_lea.vmem (!%p225_p7), [#allocation2], %s463_s5 }
  0x22   : > { %v257_v8 = vld [vmem:[%s628_s1] sm:$0xf]  ;;  %v258_v9 = vld [vmem:[%s628_s1 + $0x4] sm:$0x1]  ;;  %v448_v22 = vld [vmem:[%s581_s6 + $0x6] sm:$0x1] }
  0x23   : > { %v577_v10 = vunpack.c.l.bf16 %v257_v8  ;;  %v260_v11 = vunpack.c.l.bf16 %v258_v9  ;;  %v261_v14 = vld [vmem:[%s581_s6] sm:$0x1]  ;;  %v262_v15 = vld [vmem:[%s581_s6 + $0x2] sm:$0x1]  ;;  %v449_v25 = vld [vmem:[%s581_s6 + $0x8] sm:$0x1]  ;;  %v313_v31 = vunpack.c.l.bf16 %v448_v22 }
  0x24   : > { %v264_v18 = vunpack.c.l.bf16 %v261_v14  ;;  %v265_v19 = vunpack.c.l.bf16 %v262_v15  ;;  %v277_v20 = vld [vmem:[%s581_s6] sm:$0x3]  ;;  %v278_v21 = vld [vmem:[%s581_s6 + $0x2] sm:$0x3]  ;;  %v453_v28 = vld [vmem:[%s581_s6 + $0xc] sm:$0x3]  ;;  %v314_v36 = vunpack.c.l.bf16 %v449_v25 }
  0x25   : > { %v267_v12 = vperm.slane %v577_v10, 0  ;;  %v272_v13 = vperm.slane %v577_v10, 6  ;;  %v283_v16 = vperm.slane %v577_v10, 2  ;;  %v296_v17 = vperm.slane %v260_v11, 0  ;;  %v451_v33 = vld [vmem:[%s581_s6 + $0xc] sm:$0x1] }
  0x26   : > { %v280_v23 = vunpack.c.l.bf16 %v277_v20  ;;  %v281_v24 = vunpack.c.l.bf16 %v278_v21  ;;  %v316_v32 = vperm.slane %v577_v10, 1  ;;  %v263_v34 = vld [vmem:[%s581_s6 + $0x4] sm:$0x1]  ;;  %v321_v37 = vperm.slane %v577_v10, 7  ;;  %v450_v51 = vld [vmem:[%s581_s6 + $0xa] sm:$0x1] }
  0x27   : > { %v268_v26 = vmul.f32 %v267_v12, %v264_v18  ;;  %v273_v27 = vmul.f32 %v272_v13, %v265_v19  ;;  %v279_v38 = vld [vmem:[%s581_s6 + $0x4] sm:$0x3]  ;;  %v338_v41 = vunpack.c.l.bf16 %v453_v28  ;;  %v340_v42 = vperm.slane %v577_v10, 5  ;;  %v454_v52 = vld [vmem:[%s581_s6 + $0xe] sm:$0x3]  ;;  %s635_s15 = smov (!%p253_p8, %s437_s15), 1 }
  0x28   : > { %v284_v29 = vmul.f32 %v283_v16, %v280_v23  ;;  %v297_v30 = vmul.f32 %v296_v17, %v281_v24  ;;  %v329_v43 = vunpack.c.l.bf16 %v451_v33  ;;  %v331_v44 = vperm.slane %v577_v10, 3  ;;  %v457_v54 = vld [vmem:[%s581_s6 + $0x12] sm:$0x1]  ;;  %v452_v60 = vld [vmem:[%s581_s6 + $0xe] sm:$0x1]  ;;  %s443_s11 = sshll.u32 %s635_s15, 1 }
  0x29   : > { %v275_v35 = vadd.f32 %v273_v27, %v268_v26  ;;  %v266_v45 = vunpack.c.l.bf16 %v263_v34  ;;  %v269_v46 = vmul.f32 %v267_v12, %v265_v19  ;;  %v317_v48 = vmul.f32 %v316_v32, %v313_v31  ;;  %v458_v11 = vld [vmem:[%s581_s6 + $0x14] sm:$0x1]  ;;  %s256_s18 = scalar_lea.vmem %s630_s3, %s443_s11 }
  0x2a   : > { %v444_v39 = vrot.slane %v284_v29, 9  ;;  %v446_v40 = vrot.slane %v297_v30, 9  ;;  %v282_v49 = vunpack.c.l.bf16 %v279_v38  ;;  %v285_v50 = vmul.f32 %v283_v16, %v281_v24  ;;  %v489_v24 = vld [vmem:[%s629_s2 + $0x1] ss:$0 sm:$0xff] }
  0x2b   : > { %v322_v53 = vmul.f32 %v321_v37, %v314_v36  ;;  %v274_v55 = vmul.f32 %v272_v13, %v266_v45  ;;  %v341_v57 = vmul.f32 %v340_v42, %v338_v41  ;;  %v332_v61 = vmul.f32 %v331_v44, %v329_v43 }
  0x2c   : > { %v294_v47 = vadd.f32 %v444_v39, %v275_v35  ;;  %v445_v58 = vrot.slane %v285_v50, 9  ;;  %v298_v59 = vmul.f32 %v296_v17, %v282_v49  ;;  %v315_v63 = vunpack.c.l.bf16 %v450_v51 }
  0x2d   : > { %v276_v62 = vadd.f32 %v274_v55, %v269_v46  ;;  %v339_v0 = vunpack.c.l.bf16 %v454_v52  ;;  %v356_v2 = vunpack.c.l.bf16 %v457_v54  ;;  %v358_v3 = vperm.slane %v577_v10, 4  ;;  %v488_v10 = vld [vmem:[%s629_s2] ss:$0 sm:$0xff] }
  0x2e   : > { %v307_v56 = vadd.f32 %v446_v40, %v294_v47  ;;  %v447_v4 = vrot.slane %v298_v59, 9  ;;  %v318_v6 = vmul.f32 %v316_v32, %v314_v36  ;;  %v330_v7 = vunpack.c.l.bf16 %v452_v60 }
  0x2f   : > { %v295_v5 = vadd.f32 %v445_v58, %v276_v62  ;;  %v455_v9 = vrot.slane %v341_v57, 9  ;;  %v323_v13 = vmul.f32 %v321_v37, %v315_v63  ;;  %v342_v14 = vmul.f32 %v340_v42, %v339_v0 }
  0x30   : > { %v319_v1 = vadd.f32 %v317_v48, %v307_v56  ;;  %v359_v16 = vmul.f32 %v358_v3, %v356_v2  ;;  %v333_v18 = vmul.f32 %v331_v44, %v330_v7  ;;  %v357_v19 = vunpack.c.l.bf16 %v458_v11 }
  0x31   : > { %v308_v12 = vadd.f32 %v447_v4, %v295_v5  ;;  %v456_v22 = vrot.slane %v342_v14, 9  ;;  %vm375_vm0 = vcmask 581632  }
  0x32   : > { %v324_v8 = vadd.f32 %v322_v53, %v319_v1  ;;  %v360_v26 = vmul.f32 %v358_v3, %v357_v19 }
  0x33   : > { %v320_v17 = vadd.f32 %v318_v6, %v308_v12 }
  0x34   : > { %v334_v15 = vadd.f32 %v332_v61, %v324_v8 }
  0x35   : > { %v325_v21 = vadd.f32 %v323_v13, %v320_v17 }
  0x36   : > { %v351_v20 = vadd.f32 %v455_v9, %v334_v15 }
  0x37   : > { %v335_v25 = vadd.f32 %v333_v18, %v325_v21 }
  0x38   : > { %v361_v23 = vadd.f32 %v359_v16, %v351_v20 }
  0x39   : > { %v352_v28 = vadd.f32 %v456_v22, %v335_v25 }
  0x3a   : > { %v365_v27 = vmul.f32 %v488_v10, %v361_v23 }
  0x3b   : > { %v362_v30 = vadd.f32 %v360_v26, %v352_v28 }
  0x3c   : > { %v369_v29 = vadd.f32 %v489_v24, %v365_v27 }
  0x3d   : > { %v366_v32 = vmul.f32 %v488_v10, %v362_v30 }
  0x3e   : > { %v371_v31 = vmax.f32 %v369_v29, 0.0 }
  0x3f   : > { %v370_v34 = vadd.f32 %v489_v24, %v366_v32 }
  0x40   : > { %v373_v33 = vpack.c.bf16 %v371_v31, %v371_v31 }
  0x41   : > { %v372_v35 = vmax.f32 %v370_v34, 0.0 }
  0x42   : > { %376 = vst.msk [vmem:[%s256_s18] sm:$0x1] %vm375_vm0, %v373_v33 }
  0x43   : > { %v374_v36 = vpack.c.bf16 %v372_v35, %v372_v35 }
  0x45   : > { %377 = vst.msk [vmem:[%s256_s18 + $0x1] sm:$0x1] %vm375_vm0, %v374_v36 }
  0x46 PF: > { %p10_p9 = scmp.ge.s32.totalorder %s551_s16, 4   ;;  %s631_s12 = smov %s508_s13 }
  0x47   : > { %s632_s13 = smov %s560_s19  ;;  %s633_s14 = smov %s551_s16 }
  0x48   :  { %12 = sbr.rel (!%p10_p9) target bundleno = 2 (0x2), region = 111 }

// kernel: _lambda_.25
= control target key start
LH: loop header
LB: loop body
LE: loop exit
PB: predicated region body
PF: predicated region fallthrough
CT: control target
= control target key end

     0   :  { %s610_s12 = smov 0   ;;  %s740_s0 = inlined_call_operand.vmem [shape: bf16[1,2,6,6,96], index: 0, kind: input, shape index: {}]   ;;  %s741_s1 = inlined_call_operand.vmem [shape: bf16[25,96], index: 1, kind: input, shape index: {}]   ;;  %s742_s2 = inlined_call_operand.vmem [shape: f32[2,96], index: 2, kind: input, shape index: {}]   ;;  %s743_s3 = inlined_call_operand.vmem [shape: bf16[2,2,2,96], index: 3, kind: output, shape index: {}]  }
   0x1 LB: > { %s558_s13 = sadd.s32 4294967295, %s588_s12   ;;  %p562_p0 = scmp.ge.s32.totalorder %s588_s12, 1  ;;  %s588_s12 = sphi %s610_s12, %s13_s12  }
   0x2   : > { %p137_p1 = scmp.lt.s32.totalorder %s588_s12, 3 }
   0x4   : > { %p138_p2 = pnand %p562_p0, %p137_p1 }
   0x5   : > { %p160_p3 = scmp.lt.s32.totalorder (!%p138_p2), %s558_s13, 1 }
   0x6   : > { %141 = sbr.rel (%p138_p2) target bundleno = 88 (0x58), region = 32 }
   0xb   : > { %v568_v0 = vld [vmem:[%s741_s1] sm:$0xff]   ;;  %v171_v1 = vld [vmem:[%s741_s1 + $0x8] sm:$0xf]  ;;  %s745_s13 = smov (!%p160_p3, %s558_s13), 1  ;;  %vm502_vm0 = vcmask 778240  }
   0xc   : > { %v624_v2 = vunpack.c.l.bf16 %v568_v0  ;;  %v626_v3 = vunpack.c.h.bf16 %v568_v0  ;;  %v628_v4 = vunpack.c.l.bf16 %v171_v1  ;;  %s571_s18 = smul.u32 24, %s745_s13  ;;  %s564_s28 = sshll.u32 %s745_s13, 1 }
   0xd   : > { %s168_s4 = scalar_lea.vmem %s743_s3, %s564_s28 }
   0xe   : > { %v189_v5 = vperm.slane %v624_v2, 0  ;;  %v194_v6 = vperm.slane %v624_v2, 5  ;;  %v199_v7 = vperm.slane %v626_v3, 2  ;;  %v204_v8 = vperm.slane %v626_v3, 7  ;;  %s647_s21 = scalar_lea.vmem %s740_s0, %s571_s18 }
   0xf   : > { %v209_v9 = vperm.slane %v628_v4, 4  ;;  %v226_v10 = vperm.slane %v624_v2, 1  ;;  %v237_v11 = vperm.slane %v624_v2, 6  ;;  %v248_v12 = vperm.slane %v626_v3, 3  ;;  %v177_v20 = vld [vmem:[%s647_s21] sm:$0x1] }
  0x10   : > { %v259_v13 = vperm.slane %v628_v4, 0  ;;  %v270_v14 = vperm.slane %v628_v4, 5  ;;  %v293_v15 = vperm.slane %v624_v2, 2  ;;  %v304_v16 = vperm.slane %v624_v2, 7  ;;  %v178_v21 = vld [vmem:[%s647_s21 + $0x4] sm:$0x1] }
  0x11   : > { %v315_v17 = vperm.slane %v626_v3, 4  ;;  %v326_v18 = vperm.slane %v628_v4, 1  ;;  %v337_v19 = vperm.slane %v628_v4, 6  ;;  %v179_v22 = vld [vmem:[%s647_s21 + $0x8] sm:$0x1]  ;;  %v183_v26 = vunpack.c.l.bf16 %v177_v20 }
  0x12   : > { %v180_v23 = vld [vmem:[%s647_s21 + $0xc] sm:$0x1]  ;;  %v181_v24 = vld [vmem:[%s647_s21 + $0x10] sm:$0x1]  ;;  %v182_v25 = vld [vmem:[%s647_s21 + $0x14] sm:$0x1]  ;;  %v184_v27 = vunpack.c.l.bf16 %v178_v21  ;;  %v185_v28 = vunpack.c.l.bf16 %v179_v22 }
  0x13   : > { %v186_v29 = vunpack.c.l.bf16 %v180_v23  ;;  %v187_v30 = vunpack.c.l.bf16 %v181_v24  ;;  %v188_v31 = vunpack.c.l.bf16 %v182_v25  ;;  %v214_v32 = vld [vmem:[%s647_s21] sm:$0x3]  ;;  %v360_v33 = vperm.slane %v624_v2, 3  ;;  %v215_v38 = vld [vmem:[%s647_s21 + $0x4] sm:$0x3] }
  0x14   : > { %v190_v34 = vmul.f32 %v189_v5, %v183_v26  ;;  %v191_v35 = vmul.f32 %v189_v5, %v184_v27  ;;  %v195_v36 = vmul.f32 %v194_v6, %v184_v27  ;;  %v196_v37 = vmul.f32 %v194_v6, %v185_v28  ;;  %v216_v39 = vld [vmem:[%s647_s21 + $0x8] sm:$0x3]  ;;  %v217_v40 = vld [vmem:[%s647_s21 + $0xc] sm:$0x3]  ;;  %v218_v45 = vld [vmem:[%s647_s21 + $0x10] sm:$0x3] }
  0x15   : > { %v200_v41 = vmul.f32 %v199_v7, %v185_v28  ;;  %v201_v42 = vmul.f32 %v199_v7, %v186_v29  ;;  %v205_v43 = vmul.f32 %v204_v8, %v186_v29  ;;  %v206_v44 = vmul.f32 %v204_v8, %v187_v30  ;;  %v219_v46 = vld [vmem:[%s647_s21 + $0x14] sm:$0x3]  ;;  %v281_v6 = vld [vmem:[%s647_s21] sm:$0x2]  ;;  %v282_v21 = vld [vmem:[%s647_s21 + $0x4] sm:$0x2] }
  0x16   : > { %v197_v47 = vadd.f32 %v195_v36, %v190_v34  ;;  %v198_v48 = vadd.f32 %v196_v37, %v191_v35  ;;  %v210_v49 = vmul.f32 %v209_v9, %v187_v30  ;;  %v211_v50 = vmul.f32 %v209_v9, %v188_v31  ;;  %v283_v27 = vld [vmem:[%s647_s21 + $0x8] sm:$0x2]  ;;  %v284_v28 = vld [vmem:[%s647_s21 + $0xc] sm:$0x2]  ;;  %v285_v31 = vld [vmem:[%s647_s21 + $0x10] sm:$0x2] }
  0x17   : > { %v220_v51 = vunpack.c.l.bf16 %v214_v32  ;;  %v221_v52 = vunpack.c.l.bf16 %v215_v38  ;;  %v222_v53 = vunpack.c.l.bf16 %v216_v39  ;;  %v223_v54 = vunpack.c.l.bf16 %v217_v40  ;;  %v286_v32 = vld [vmem:[%s647_s21 + $0x14] sm:$0x2] }
  0x18   : > { %v202_v55 = vadd.f32 %v200_v41, %v197_v47  ;;  %v203_v56 = vadd.f32 %v201_v42, %v198_v48  ;;  %v224_v57 = vunpack.c.l.bf16 %v218_v45  ;;  %v225_v58 = vunpack.c.l.bf16 %v219_v46 }
  0x19   : > { %v227_v59 = vmul.f32 %v226_v10, %v220_v51  ;;  %v228_v60 = vmul.f32 %v226_v10, %v221_v52  ;;  %v238_v61 = vmul.f32 %v237_v11, %v221_v52  ;;  %v239_v62 = vmul.f32 %v237_v11, %v222_v53 }
  0x1a   : > { %v207_v63 = vadd.f32 %v205_v43, %v202_v55  ;;  %v208_v0 = vadd.f32 %v206_v44, %v203_v56  ;;  %v249_v1 = vmul.f32 %v248_v12, %v222_v53  ;;  %v250_v5 = vmul.f32 %v248_v12, %v223_v54 }
  0x1b   : > { %v231_v7 = vrot.slane %v227_v59, 1  ;;  %v232_v8 = vrot.slane %v228_v60, 1  ;;  %v242_v9 = vrot.slane %v238_v61, 1  ;;  %v243_v20 = vrot.slane %v239_v62, 1  ;;  %v350_v62 = vld [vmem:[%s647_s21 + $0x8] sm:$0x6] }
  0x1c   : > { %v212_v22 = vadd.f32 %v210_v49, %v207_v63  ;;  %v213_v23 = vadd.f32 %v211_v50, %v208_v0  ;;  %v253_v24 = vrot.slane %v249_v1, 1  ;;  %v254_v10 = vrot.slane %v250_v5, 1  ;;  %v351_v5 = vld [vmem:[%s647_s21 + $0xc] sm:$0x6] }
  0x1d   : > { %v260_v11 = vmul.f32 %v259_v13, %v223_v54  ;;  %v261_v25 = vmul.f32 %v259_v13, %v224_v57  ;;  %v271_v12 = vmul.f32 %v270_v14, %v224_v57  ;;  %v272_v26 = vmul.f32 %v270_v14, %v225_v58  ;;  %v348_v57 = vld [vmem:[%s647_s21] sm:$0x6]  ;;  %v349_v58 = vld [vmem:[%s647_s21 + $0x4] sm:$0x6] }
  0x1e   : > { %v235_v29 = vadd.f32 %v231_v7, %v212_v22  ;;  %v236_v30 = vadd.f32 %v232_v8, %v213_v23  ;;  %v287_v34 = vunpack.c.l.bf16 %v281_v6  ;;  %v288_v35 = vunpack.c.l.bf16 %v282_v21  ;;  %v352_v6 = vld [vmem:[%s647_s21 + $0x10] sm:$0x6]  ;;  %v353_v7 = vld [vmem:[%s647_s21 + $0x14] sm:$0x6] }
  0x1f   : > { %v264_v36 = vrot.slane %v260_v11, 1  ;;  %v265_v37 = vrot.slane %v261_v25, 1  ;;  %v275_v38 = vrot.slane %v271_v12, 1  ;;  %v276_v39 = vrot.slane %v272_v26, 1 }
  0x20   : > { %v246_v40 = vadd.f32 %v242_v9, %v235_v29  ;;  %v247_v13 = vadd.f32 %v243_v20, %v236_v30  ;;  %v289_v41 = vunpack.c.l.bf16 %v283_v27  ;;  %v290_v42 = vunpack.c.l.bf16 %v284_v28 }
  0x21   : > { %v291_v43 = vunpack.c.l.bf16 %v285_v31  ;;  %v292_v44 = vunpack.c.l.bf16 %v286_v32  ;;  %v294_v14 = vmul.f32 %v293_v15, %v287_v34  ;;  %v295_v45 = vmul.f32 %v293_v15, %v288_v35  ;;  %v172_v34 = vld [vmem:[%s741_s1 + $0xc] sm:$0x1] }
  0x22   : > { %v257_v46 = vadd.f32 %v253_v24, %v246_v40  ;;  %v258_v47 = vadd.f32 %v254_v10, %v247_v13  ;;  %v305_v48 = vmul.f32 %v304_v16, %v288_v35  ;;  %v306_v49 = vmul.f32 %v304_v16, %v289_v41 }
  0x23   : > { %v298_v50 = vrot.slane %v294_v14, 2  ;;  %v299_v51 = vrot.slane %v295_v45, 2  ;;  %v316_v52 = vmul.f32 %v315_v17, %v289_v41  ;;  %v317_v53 = vmul.f32 %v315_v17, %v290_v42  ;;  %v415_v14 = vld [vmem:[%s647_s21] sm:$0x4]  ;;  %v416_v45 = vld [vmem:[%s647_s21 + $0x4] sm:$0x4] }
  0x24   : > { %v268_v54 = vadd.f32 %v264_v36, %v257_v46  ;;  %v269_v15 = vadd.f32 %v265_v37, %v258_v47  ;;  %v309_v55 = vrot.slane %v305_v48, 2  ;;  %v310_v56 = vrot.slane %v306_v49, 2 }
  0x25   : > { %v320_v59 = vrot.slane %v316_v52, 2  ;;  %v321_v60 = vrot.slane %v317_v53, 2  ;;  %v327_v16 = vmul.f32 %v326_v18, %v290_v42  ;;  %v328_v61 = vmul.f32 %v326_v18, %v291_v43 }
  0x26   : > { %v279_v63 = vadd.f32 %v275_v38, %v268_v54  ;;  %v280_v17 = vadd.f32 %v276_v39, %v269_v15  ;;  %v338_v0 = vmul.f32 %v337_v19, %v291_v43  ;;  %v339_v1 = vmul.f32 %v337_v19, %v292_v44  ;;  %v418_v15 = vld [vmem:[%s647_s21 + $0xc] sm:$0x4] }
  0x27   : > { %v331_v8 = vrot.slane %v327_v16, 2  ;;  %v332_v9 = vrot.slane %v328_v61, 2  ;;  %v354_v20 = vunpack.c.l.bf16 %v348_v57  ;;  %v355_v21 = vunpack.c.l.bf16 %v349_v58  ;;  %v420_v61 = vld [vmem:[%s647_s21 + $0x14] sm:$0x4] }
  0x28   : > { %v302_v22 = vadd.f32 %v298_v50, %v279_v63  ;;  %v303_v23 = vadd.f32 %v299_v51, %v280_v17  ;;  %v342_v24 = vrot.slane %v338_v0, 2  ;;  %v343_v18 = vrot.slane %v339_v1, 2  ;;  %v417_v50 = vld [vmem:[%s647_s21 + $0x8] sm:$0x4] }
  0x29   : > { %v356_v10 = vunpack.c.l.bf16 %v350_v62  ;;  %v357_v11 = vunpack.c.l.bf16 %v351_v5  ;;  %v358_v25 = vunpack.c.l.bf16 %v352_v6  ;;  %v359_v12 = vunpack.c.l.bf16 %v353_v7 }
  0x2a   : > { %v313_v26 = vadd.f32 %v309_v55, %v302_v22  ;;  %v314_v27 = vadd.f32 %v310_v56, %v303_v23  ;;  %v361_v19 = vmul.f32 %v360_v33, %v354_v20  ;;  %v362_v28 = vmul.f32 %v360_v33, %v355_v21  ;;  %v419_v55 = vld [vmem:[%s647_s21 + $0x10] sm:$0x4] }
  0x2b   : > { %v371_v29 = vperm.slane %v626_v3, 0  ;;  %v382_v30 = vperm.slane %v626_v3, 5  ;;  %v393_v31 = vperm.slane %v628_v4, 2  ;;  %v404_v32 = vperm.slane %v628_v4, 7 }
  0x2c   : > { %v324_v35 = vadd.f32 %v320_v59, %v313_v26  ;;  %v325_v36 = vadd.f32 %v321_v60, %v314_v27  ;;  %v365_v37 = vrot.slane %v361_v19, 3  ;;  %v366_v38 = vrot.slane %v362_v28, 3 }
  0x2d   : > { %v372_v33 = vmul.f32 %v371_v29, %v355_v21  ;;  %v373_v39 = vmul.f32 %v371_v29, %v356_v10  ;;  %v383_v40 = vmul.f32 %v382_v30, %v356_v10  ;;  %v384_v13 = vmul.f32 %v382_v30, %v357_v11 }
  0x2e   : > { %v335_v41 = vadd.f32 %v331_v8, %v324_v35  ;;  %v336_v42 = vadd.f32 %v332_v9, %v325_v36  ;;  %v394_v43 = vmul.f32 %v393_v31, %v357_v11  ;;  %v395_v44 = vmul.f32 %v393_v31, %v358_v25 }
  0x2f   : > { %v176_v46 = vunpack.c.l.bf16 %v172_v34  ;;  %v376_v47 = vrot.slane %v372_v33, 3  ;;  %v377_v48 = vrot.slane %v373_v39, 3  ;;  %v387_v49 = vrot.slane %v383_v40, 3 }
  0x30   : > { %v346_v51 = vadd.f32 %v342_v24, %v335_v41  ;;  %v347_v52 = vadd.f32 %v343_v18, %v336_v42  ;;  %v388_v53 = vrot.slane %v384_v13, 3  ;;  %v398_v54 = vrot.slane %v394_v43, 3 }
  0x31   : > { %v399_v56 = vrot.slane %v395_v44, 3  ;;  %v405_v57 = vmul.f32 %v404_v32, %v358_v25  ;;  %v406_v58 = vmul.f32 %v404_v32, %v359_v12  ;;  %v421_v59 = vunpack.c.l.bf16 %v415_v14 }
  0x32   : > { %v369_v60 = vadd.f32 %v365_v37, %v346_v51  ;;  %v370_v16 = vadd.f32 %v366_v38, %v347_v52  ;;  %v422_v62 = vunpack.c.l.bf16 %v416_v45  ;;  %v423_v63 = vunpack.c.l.bf16 %v417_v50  ;;  %v581_v51 = vld [vmem:[%s742_s2 + $0x1] ss:$0 sm:$0xff] }
  0x33   : > { %v409_v17 = vrot.slane %v405_v57, 3  ;;  %v410_v0 = vrot.slane %v406_v58, 3  ;;  %v424_v1 = vunpack.c.l.bf16 %v418_v15  ;;  %v425_v5 = vunpack.c.l.bf16 %v419_v55 }
  0x34   : > { %v380_v6 = vadd.f32 %v376_v47, %v369_v60  ;;  %v381_v7 = vadd.f32 %v377_v48, %v370_v16  ;;  %v427_v8 = vperm.slane %v624_v2, 4  ;;  %v438_v9 = vperm.slane %v626_v3, 1  ;;  %v580_v48 = vld [vmem:[%s742_s2] ss:$0 sm:$0xff] }
  0x35   : > { %v426_v20 = vunpack.c.l.bf16 %v420_v61  ;;  %v449_v21 = vperm.slane %v626_v3, 6  ;;  %v460_v22 = vperm.slane %v628_v4, 3  ;;  %v471_v23 = vperm.slane %v176_v46, 0 }
  0x36   : > { %v391_v24 = vadd.f32 %v387_v49, %v380_v6  ;;  %v392_v18 = vadd.f32 %v388_v53, %v381_v7  ;;  %v428_v10 = vmul.f32 %v427_v8, %v421_v59  ;;  %v429_v11 = vmul.f32 %v427_v8, %v422_v62 }
  0x37   : > { %v439_v25 = vmul.f32 %v438_v9, %v422_v62  ;;  %v440_v12 = vmul.f32 %v438_v9, %v423_v63  ;;  %v450_v26 = vmul.f32 %v449_v21, %v423_v63  ;;  %v451_v27 = vmul.f32 %v449_v21, %v424_v1 }
  0x38   : > { %v402_v19 = vadd.f32 %v398_v54, %v391_v24  ;;  %v403_v28 = vadd.f32 %v399_v56, %v392_v18  ;;  %v432_v29 = vrot.slane %v428_v10, 4  ;;  %v433_v2 = vrot.slane %v429_v11, 4 }
  0x39   : > { %v443_v30 = vrot.slane %v439_v25, 4  ;;  %v444_v31 = vrot.slane %v440_v12, 4  ;;  %v461_v3 = vmul.f32 %v460_v22, %v424_v1  ;;  %v462_v35 = vmul.f32 %v460_v22, %v425_v5 }
  0x3a   : > { %v413_v32 = vadd.f32 %v409_v17, %v402_v19  ;;  %v414_v34 = vadd.f32 %v410_v0, %v403_v28  ;;  %v454_v4 = vrot.slane %v450_v26, 4  ;;  %v455_v36 = vrot.slane %v451_v27, 4 }
  0x3b   : > { %v472_v33 = vmul.f32 %v471_v23, %v425_v5  ;;  %v473_v39 = vmul.f32 %v471_v23, %v426_v20  ;;  %v465_v41 = vrot.slane %v461_v3, 4  ;;  %v466_v42 = vrot.slane %v462_v35, 4 }
  0x3c   : > { %v436_v37 = vadd.f32 %v432_v29, %v413_v32  ;;  %v437_v38 = vadd.f32 %v433_v2, %v414_v34 }
  0x3d   : > { %v476_v14 = vrot.slane %v472_v33, 4  ;;  %v477_v45 = vrot.slane %v473_v39, 4 }
  0x3e   : > { %v447_v40 = vadd.f32 %v443_v30, %v436_v37  ;;  %v448_v13 = vadd.f32 %v444_v31, %v437_v38 }
  0x40   : > { %v458_v43 = vadd.f32 %v454_v4, %v447_v40  ;;  %v459_v44 = vadd.f32 %v455_v36, %v448_v13 }
  0x42   : > { %v469_v46 = vadd.f32 %v465_v41, %v458_v43  ;;  %v470_v47 = vadd.f32 %v466_v42, %v459_v44 }
  0x44   : > { %v480_v49 = vadd.f32 %v476_v14, %v469_v46  ;;  %v481_v50 = vadd.f32 %v477_v45, %v470_v47 }
  0x46   : > { %v484_v52 = vmul.f32 %v580_v48, %v480_v49  ;;  %v485_v53 = vmul.f32 %v580_v48, %v481_v50 }
  0x48   : > { %v488_v54 = vadd.f32 %v581_v51, %v484_v52  ;;  %v489_v15 = vadd.f32 %v581_v51, %v485_v53 }
  0x4a   : > { %v490_v55 = vadd.f32 3.0, %v488_v54  ;;  %v491_v56 = vadd.f32 3.0, %v489_v15 }
  0x4c   : > { %v492_v57 = vmax.f32 %v490_v55, 0.0  ;;  %v493_v58 = vmax.f32 %v491_v56, 0.0 }
  0x4e   : > { %v494_v59 = vmin.f32 %v492_v57, 6.0  ;;  %v495_v60 = vmin.f32 %v493_v58, 6.0 }
  0x50   : > { %v496_v16 = vmul.f32 0.16666667, %v494_v59  ;;  %v497_v61 = vmul.f32 0.16666667, %v495_v60 }
  0x52   : > { %v498_v62 = vmul.f32 %v496_v16, %v488_v54  ;;  %v499_v63 = vmul.f32 %v497_v61, %v489_v15 }
  0x54   : > { %v500_v17 = vpack.c.bf16 %v498_v62, %v498_v62  ;;  %v501_v0 = vpack.c.bf16 %v499_v63, %v499_v63 }
  0x56   : > { %503 = vst.msk [vmem:[%s168_s4] sm:$0x1] %vm502_vm0, %v500_v17 }
  0x57   : > { %504 = vst.msk [vmem:[%s168_s4 + $0x1] sm:$0x1] %vm502_vm0, %v501_v0 }
  0x58 PF: > { %s13_s12 = sadd.s32 1, %s588_s12  }
  0x59   : > { %p10_p4 = scmp.ge.s32.totalorder %s13_s12, 4  }
  0x5b   :  { %12 = sbr.rel (!%p10_p4) target bundleno = 1 (0x1), region = 62 }

// kernel: _lambda_.26
= control target key start
LH: loop header
LB: loop body
LE: loop exit
PB: predicated region body
PF: predicated region fallthrough
CT: control target
= control target key end

     0   :  { %s477_s18 = smov 0   ;;  %s528_s0 = inlined_call_operand.vmem [shape: bf16[2,4,96], index: 0, kind: input, shape index: {}]   ;;  %s529_s1 = inlined_call_operand.vmem [shape: bf16[96,24], index: 1, kind: input, shape index: {}]   ;;  %s530_s2 = inlined_call_operand.vmem [shape: f32[1,24], index: 2, kind: input, shape index: {}]   ;;  %s531_s3 = inlined_call_operand.vmem [shape: bf16[24,96], index: 3, kind: input, shape index: {}]   ;;  %s532_s4 = inlined_call_operand.vmem [shape: f32[1,96], index: 4, kind: input, shape index: {}]   ;;  %s533_s5 = inlined_call_operand.vmem [shape: f32[2,1,96], index: 5, kind: output, shape index: {}]  }
   0x1 LB: > { %s386_s19 = sadd.s32 4294967295, %s445_s18   ;;  %p390_p0 = scmp.ge.s32.totalorder %s445_s18, 1  ;;  %s445_s18 = sphi %s477_s18, %s15_s18  }
   0x2   : > { %p186_p1 = scmp.lt.s32.totalorder %s445_s18, 3 }
   0x4   : > { %p187_p2 = pnand %p390_p0, %p186_p1 }
   0x5   : > { %p211_p3 = scmp.lt.s32.totalorder (!%p187_p2), %s386_s19, 1 }
   0x6   : > { %190 = sbr.rel (%p187_p2) target bundleno = 304 (0x130), region = 40 }
   0xb   : > { %v429_v0 = vld [vmem:[%s529_s1 + $0x28] sm:$0xff]  ;;  %v428_v1 = vld [vmem:[%s529_s1 + $0x20] sm:$0xff]  ;;  %s535_s19 = smov (!%p211_p3, %s386_s19), 1  ;;  %v427_v2 = vld [vmem:[%s529_s1 + $0x18] sm:$0xff]  ;;  %vm221_vm0 = vcmask 781312   ;;  %vm280_vm1 = vcmask 785408  }
   0xc   : > { %286 = vmatpush.bf16.msra.mxu0 %v429_v0  ;;  %s391_s24 = sshll.u32 %s535_s19, 1  ;;  %v426_v6 = vld [vmem:[%s529_s1 + $0x10] sm:$0xff]  ;;  %v425_v9 = vld [vmem:[%s529_s1 + $0x8] sm:$0xff]  ;;  %v424_v12 = vld [vmem:[%s529_s1] sm:$0xff]  ;;  %vm316_vm2 = vcmask 1043456   ;;  %vm312_vm3 = vcmask 195584   ;;  %s217_s23 = scalar_lea.vmem %s533_s5, %s535_s19 }
   0xd   : > { %s214_s27 = scalar_lea.vmem %s528_s0, %s391_s24  ;;  %v301_v17 = vld [vmem:[%s531_s3 + $0x8] sm:$0xf]  ;;  %v430_v21 = vld [vmem:[%s531_s3] sm:$0xff]  ;;  %vm337_vm4 = vcmask 778240  }
   0xe   : > { %v219_v3 = vld [vmem:[%s214_s27] sm:$0x3]  ;;  %v308_v18 = vunpack.c.l.b16 %v301_v17 }
   0xf   : > { %v220_v4 = vunpack.c.l.bf16 %v219_v3  ;;  %v243_v22 = vld [vmem:[%s530_s2] sm:$0x1] }
  0x10   : > { %287 = vmatpush.bf16.msra.mxu0 %v428_v1  ;;  %v310_v19 = vpack.c.b16 %v308_v18, %v308_v18  ;;  %v302_v28 = vld [vmem:[%s532_s4] sm:$0x1] }
  0x11   : > { %v222_v5 = vsel %vm221_vm0, %v220_v4, 0.0 }
  0x12   : > { %v223_v7 = vrot.slane %v222_v5, 4  ;;  %v318_v20 = vsel %vm316_vm2, %v310_v19, 0 }
  0x13   : > { %326 = vmatpush.bf16.msra.mxu1 %v318_v20 }
  0x14   : > { %288 = vmatpush.bf16.msra.mxu0 %v427_v2  ;;  %v224_v8 = vadd.f32 %v223_v7, %v222_v5 }
  0x16   : > { %v225_v10 = vrot.slane %v224_v8, 2 }
  0x17   : > { %327 = vmatpush.bf16.msra.mxu1 %v430_v21 }
  0x18   : > { %289 = vmatpush.bf16.msra.mxu0 %v426_v6  ;;  %v226_v11 = vadd.f32 %v225_v10, %v224_v8 }
  0x1a   : > { %v227_v13 = vrot.slane %v226_v11, 1 }
  0x1c   : > { %290 = vmatpush.bf16.msra.mxu0 %v425_v9  ;;  %v228_v14 = vadd.f32 %v227_v13, %v226_v11 }
  0x1e   : > { %v229_v15 = vmul.f32 0.25, %v228_v14 }
  0x20   : > { %291 = vmatpush.bf16.msra.mxu0 %v424_v12  ;;  %v230_v16 = vpack.c.bf16 %v229_v15, %v229_v15 }
  0x23   : > { %416 = vmatmul.msk.bf16.vlgmr.msra.gmra.mxu0 %vm280_vm1, %v230_v16 }
  0xa0   : > { %v293_v23 = vpop.f32.mrf.mxu0 }
  0xa1   : > { %v294_v24 = vadd.f32 %v293_v23, %v243_v22 }
  0xa3   : > { %v297_v25 = vmax.f32 %v294_v24, 0.0 }
  0xa5   : > { %v298_v26 = vpack.c.bf16 %v297_v25, %v297_v25 }
  0xa7   : > { %421 = vmatmul.msk.bf16.vlgmr.msra.gmra.mxu1 %vm312_vm3, %v298_v26 }
  0xa8   : > { %v295_v27 = vpop.f32.mrf.mxu0 }
 0x124   : > { %v329_v29 = vpop.f32.mrf.mxu1 }
 0x125   : > { %v330_v30 = vadd.f32 %v329_v29, %v302_v28 }
 0x127   : > { %v333_v31 = vadd.f32 3.0, %v330_v30 }
 0x129   : > { %v334_v32 = vmax.f32 %v333_v31, 0.0 }
 0x12b   : > { %v335_v33 = vmin.f32 %v334_v32, 6.0 }
 0x12c   : > { %v331_v34 = vpop.f32.mrf.mxu1 }
 0x12d   : > { %v336_v35 = vmul.f32 0.16666667, %v335_v33 }
 0x12f   : > { %338 = vst.msk [vmem:[%s217_s23] sm:$0x1] %vm337_vm4, %v336_v35 }
 0x130 PF: > { %s15_s18 = sadd.s32 1, %s445_s18  }
 0x131   : > { %p12_p4 = scmp.ge.s32.totalorder %s15_s18, 4  }
 0x133   :  { %14 = sbr.rel (!%p12_p4) target bundleno = 1 (0x1), region = 70 }

// kernel: _lambda_.27
= control target key start
LH: loop header
LB: loop body
LE: loop exit
PB: predicated region body
PF: predicated region fallthrough
CT: control target
= control target key end

     0   :  { %s573_s15 = smov 0   ;;  %s575_s16 = smov 0   ;;  %s633_s0 = inlined_call_operand.vmem [shape: bf16[2,4,96], index: 0, kind: input, shape index: {}]   ;;  %s634_s1 = inlined_call_operand.vmem [shape: f32[2,1,96], index: 1, kind: input, shape index: {}]   ;;  %s635_s2 = inlined_call_operand.vmem [shape: bf16[96,40], index: 2, kind: input, shape index: {}]   ;;  %s636_s3 = inlined_call_operand.vmem [shape: f32[2,40], index: 3, kind: input, shape index: {}]   ;;  %s637_s4 = inlined_call_operand.vmem [shape: bf16[2,4,40], index: 4, kind: output, shape index: {}]  }
   0x1   :  { %s577_s17 = smov 0  }
   0x2 LB: > { %s26_s18 = sadd.s32 1, %s542_s16  ;;  %p461_p0 = scmp.ge.s32.totalorder %s546_s17, 1  ;;  %s546_s17 = sphi %s577_s17, %s14_s17   ;;  %s542_s16 = sphi %s575_s16, %s639_s16   ;;  %s538_s15 = sphi %s573_s15, %s638_s15  }
   0x3   : > { %p28_p1 = scmp.ge.s32.totalorder %s26_s18, 2  ;;  %p201_p2 = scmp.lt.s32.totalorder %s546_s17, 3 }
   0x5   : > { %s641_s18 = smov (%p28_p1, %s26_s18), 0  ;;  %p202_p3 = pnand %p461_p0, %p201_p2 }
   0x6   : > { %p239_p4 = scmp.lt.s32.totalorder (!%p202_p3), %s538_s15, 1 }
   0x7   : > { %205 = sbr.rel (%p202_p3) target bundleno = 170 (0xaa), region = 36 }
   0xc   : > { %v496_v0 = vld [vmem:[%s635_s2 + $0x28] sm:$0xff]  ;;  %v495_v1 = vld [vmem:[%s635_s2 + $0x20] sm:$0xff]  ;;  %s643_s15 = smov (!%p239_p4, %s538_s15), 1  ;;  %v494_v2 = vld [vmem:[%s635_s2 + $0x18] sm:$0xff]  ;;  %vm318_vm0 = vcmask 785408   ;;  %vm342_vm1 = vcmask 320512  }
   0xd   : > { %324 = vmatpush.bf16.msra.mxu0 %v496_v0  ;;  %s462_s23 = sshll.u32 %s643_s15, 1  ;;  %s245_s26 = scalar_lea.vmem %s634_s1, %s643_s15  ;;  %v493_v3 = vld [vmem:[%s635_s2 + $0x10] sm:$0xff]  ;;  %v492_v7 = vld [vmem:[%s635_s2 + $0x8] sm:$0xff]  ;;  %v491_v9 = vld [vmem:[%s635_s2] sm:$0xff] }
   0xe   : > { %s242_s5 = scalar_lea.vmem %s633_s0, %s462_s23  ;;  %v521_v6 = vld [vmem:[%s245_s26] ss:$0 sm:$0xff]  ;;  %v523_v12 = vld [vmem:[%s636_s3 + $0x1] ss:$0 sm:$0xff]  ;;  %s260_s21 = scalar_lea.vmem %s637_s4, %s462_s23 }
   0xf   : > { %v262_v4 = vld [vmem:[%s242_s5] sm:$0x3] }
  0x10   : > { %v263_v5 = vunpack.c.l.bf16 %v262_v4  ;;  %v522_v11 = vld [vmem:[%s636_s3] ss:$0 sm:$0xff] }
  0x11   : > { %325 = vmatpush.bf16.msra.mxu0 %v495_v1 }
  0x12   : > { %v268_v8 = vmul.f32 %v521_v6, %v263_v5 }
  0x14   : > { %v269_v10 = vpack.c.bf16 %v268_v8, %v268_v8 }
  0x15   : > { %326 = vmatpush.bf16.msra.mxu0 %v494_v2 }
  0x19   : > { %327 = vmatpush.bf16.msra.mxu0 %v493_v3 }
  0x1d   : > { %328 = vmatpush.bf16.msra.mxu0 %v492_v7 }
  0x21   : > { %329 = vmatpush.bf16.msra.mxu0 %v491_v9 }
  0x24   : > { %488 = vmatmul.msk.bf16.vlgmr.msra.gmra.mxu0 %vm318_vm0, %v269_v10 }
  0xa1   : > { %v331_v13 = vpop.f32.mrf.mxu0 }
  0xa2   : > { %v337_v14 = vmul.f32 %v522_v11, %v331_v13 }
  0xa4   : > { %v340_v15 = vadd.f32 %v523_v12, %v337_v14 }
  0xa6   : > { %v341_v16 = vpack.c.bf16 %v340_v15, %v340_v15 }
  0xa8   : > { %343 = vst.msk [vmem:[%s260_s21] sm:$0x3] %vm342_vm1, %v341_v16 }
  0xa9   : > { %v333_v17 = vpop.f32.mrf.mxu0 }
  0xaa PF: > { %s14_s17 = sadd.s32 1, %s546_s17   ;;  %s638_s15 = smov %s542_s16 }
  0xab   : > { %p11_p5 = scmp.ge.s32.totalorder %s14_s17, 4   ;;  %s639_s16 = smov %s641_s18 }
  0xad   :  { %13 = sbr.rel (!%p11_p5) target bundleno = 2 (0x2), region = 75 }

// kernel: _lambda_.28
= control target key start
LH: loop header
LB: loop body
LE: loop exit
PB: predicated region body
PF: predicated region fallthrough
CT: control target
= control target key end

     0   :  { %vm46_vm0 = vcmask 1043456   ;;  %vm42_vm1 = vcmask 326656   ;;  %vm84_vm2 = vcmask 977920   ;;  %s153_s1 = inlined_call_operand.vmem [shape: bf16[40,120], index: 1, kind: input, shape index: {}]   ;;  %s154_s2 = inlined_call_operand.vmem [shape: f32[2,120], index: 2, kind: input, shape index: {}]   ;;  %s155_s0 = inlined_call_operand.vmem [shape: bf16[16,40], index: 0, kind: input, shape index: {}]   ;;  %s156_s3 = inlined_call_operand.vmem [shape: bf16[16,120], index: 3, kind: output, shape index: {}]  }
   0x1   :  { %v21_v0 = vld [vmem:[%s153_s1 + $0x10] sm:$0xf]  ;;  %v106_v4 = vld [vmem:[%s153_s1 + $0x8] sm:$0xff]  ;;  %v105_v5 = vld [vmem:[%s153_s1] sm:$0xff] }
   0x2   :  { %v36_v1 = vunpack.c.l.b16 %v21_v0  ;;  %v104_v6 = vld [vmem:[%s155_s0] sm:$0xff] }
   0x3   :  { %v107_v7 = vld [vmem:[%s154_s2] ss:$0 sm:$0xff]  ;;  %v108_v8 = vld [vmem:[%s154_s2 + $0x1] ss:$0 sm:$0xff] }
   0x4   :  { %v39_v2 = vpack.c.b16 %v36_v1, %v36_v1 }
   0x6   :  { %v48_v3 = vsel %vm46_vm0, %v39_v2, 0 }
   0x7   :  { %55 = vmatpush.bf16.msra.mxu0 %v48_v3 }
   0xb   :  { %56 = vmatpush.bf16.msra.mxu0 %v106_v4 }
   0xf   :  { %57 = vmatpush.bf16.msra.mxu0 %v105_v5 }
  0x12   :  { %103 = vmatmul.msk.bf16.vlgmr.msra.gmra.mxu0 %vm42_vm1, %v104_v6 }
  0x8f   :  { %v59_v9 = vpop.f32.mrf.mxu0 }
  0x90   :  { %v66_v10 = vmul.f32 %v107_v7, %v59_v9 }
  0x92   :  { %v70_v11 = vadd.f32 %v108_v8, %v66_v10 }
  0x94   :  { %v72_v12 = vadd.f32 3.0, %v70_v11 }
  0x96   :  { %v74_v13 = vmax.f32 %v72_v12, 0.0 }
  0x97   :  { %v61_v14 = vpop.f32.mrf.mxu0 }
  0x98   :  { %v76_v15 = vmin.f32 %v74_v13, 6.0  ;;  %v67_v16 = vmul.f32 %v107_v7, %v61_v14 }
  0x9a   :  { %v78_v17 = vmul.f32 0.16666667, %v76_v15  ;;  %v71_v18 = vadd.f32 %v108_v8, %v67_v16 }
  0x9c   :  { %v80_v19 = vmul.f32 %v78_v17, %v70_v11  ;;  %v73_v20 = vadd.f32 3.0, %v71_v18 }
  0x9e   :  { %v82_v21 = vpack.c.bf16 %v80_v19, %v80_v19  ;;  %v75_v22 = vmax.f32 %v73_v20, 0.0 }
  0xa0   :  { %85 = vst.msk [vmem:[%s156_s3] sm:$0xf] %vm84_vm2, %v82_v21  ;;  %v77_v23 = vmin.f32 %v75_v22, 6.0 }
  0xa2   :  { %v79_v24 = vmul.f32 0.16666667, %v77_v23 }
  0xa4   :  { %v81_v25 = vmul.f32 %v79_v24, %v71_v18 }
  0xa6   :  { %v83_v26 = vpack.c.bf16 %v81_v25, %v81_v25 }
  0xa8   :  { %86 = vst.msk [vmem:[%s156_s3 + $0x4] sm:$0xf] %vm84_vm2, %v83_v26 }

// kernel: _lambda_.31
= control target key start
LH: loop header
LB: loop body
LE: loop exit
PB: predicated region body
PF: predicated region fallthrough
CT: control target
= control target key end

     0   :  { %s672_s18 = smov 0   ;;  %s674_s19 = smov 0   ;;  %s746_s0 = inlined_call_operand.vmem [shape: bf16[2,4,120], index: 0, kind: input, shape index: {}]   ;;  %s747_s1 = inlined_call_operand.vmem [shape: f32[2,1,120], index: 1, kind: input, shape index: {}]   ;;  %s748_s2 = inlined_call_operand.vmem [shape: bf16[120,40], index: 2, kind: input, shape index: {}]   ;;  %s749_s3 = inlined_call_operand.vmem [shape: f32[2,40], index: 3, kind: input, shape index: {}]   ;;  %s750_s4 = inlined_call_operand.vmem [shape: bf16[2,4,40], index: 4, kind: input, shape index: {}]   ;;  %s751_s5 = inlined_call_operand.vmem [shape: bf16[2,4,40], index: 5, kind: output, shape index: {}]  }
   0x1   :  { %s676_s20 = smov 0  }
   0x2 LB: > { %s27_s21 = sadd.s32 1, %s636_s19  ;;  %p549_p0 = scmp.ge.s32.totalorder %s640_s20, 1  ;;  %s640_s20 = sphi %s676_s20, %s15_s20   ;;  %s636_s19 = sphi %s674_s19, %s753_s19   ;;  %s632_s18 = sphi %s672_s18, %s752_s18  }
   0x3   : > { %p29_p1 = scmp.ge.s32.totalorder %s27_s21, 2  ;;  %p240_p2 = scmp.lt.s32.totalorder %s640_s20, 3 }
   0x5   : > { %s755_s21 = smov (%p29_p1, %s27_s21), 0  ;;  %p241_p3 = pnand %p549_p0, %p240_p2 }
   0x6   : > { %p287_p4 = scmp.lt.s32.totalorder (!%p241_p3), %s632_s18, 1 }
   0x7   : > { %244 = sbr.rel (%p241_p3) target bundleno = 184 (0xb8), region = 40 }
   0xc   : > { %v338_v0 = vld [vmem:[%s748_s2 + $0x38] sm:$0xf]  ;;  %vm388_vm0 = vcmask 1043456   ;;  %s757_s18 = smov (!%p287_p4, %s632_s18), 1  ;;  %v590_v4 = vld [vmem:[%s748_s2 + $0x30] sm:$0xff]  ;;  %v589_v5 = vld [vmem:[%s748_s2 + $0x28] sm:$0xff] }
   0xd   : > { %v368_v1 = vunpack.c.l.b16 %v338_v0  ;;  %s293_s26 = scalar_lea.vmem %s747_s1, %s757_s18  ;;  %v588_v6 = vld [vmem:[%s748_s2 + $0x20] sm:$0xff]  ;;  %s705_s8 = sshll.u32 %s757_s18, 1  ;;  %v587_v7 = vld [vmem:[%s748_s2 + $0x18] sm:$0xff]  ;;  %v586_v8 = vld [vmem:[%s748_s2 + $0x10] sm:$0xff]  ;;  %vm384_vm1 = vcmask 982016   ;;  %vm415_vm2 = vcmask 320512  }
   0xe   : > { %s290_s13 = scalar_lea.vmem %s746_s0, %s705_s8  ;;  %v615_v11 = vld [vmem:[%s293_s26] ss:$0 sm:$0xff]  ;;  %v585_v12 = vld [vmem:[%s748_s2 + $0x8] sm:$0xff]  ;;  %s308_s25 = scalar_lea.vmem %s750_s4, %s705_s8  ;;  %v617_v18 = vld [vmem:[%s749_s3 + $0x1] ss:$0 sm:$0xff] }
   0xf   : > { %v376_v2 = vpack.c.b16 %v368_v1, %v368_v1  ;;  %v316_v9 = vld [vmem:[%s290_s13] sm:$0x3]  ;;  %s315_s7 = scalar_lea.vmem %s751_s5, %s705_s8 }
  0x10   : > { %v317_v10 = vunpack.c.l.bf16 %v316_v9  ;;  %v584_v14 = vld [vmem:[%s748_s2] sm:$0xff] }
  0x11   : > { %v390_v3 = vsel %vm388_vm0, %v376_v2, 0  ;;  %v616_v16 = vld [vmem:[%s749_s3] ss:$0 sm:$0xff] }
  0x12   : > { %392 = vmatpush.bf16.msra.mxu0 %v390_v3  ;;  %v322_v13 = vmul.f32 %v615_v11, %v317_v10  ;;  %v411_v17 = vld [vmem:[%s308_s25] sm:$0x3] }
  0x13   : > { %v412_v21 = vunpack.c.l.bf16 %v411_v17 }
  0x14   : > { %v323_v15 = vpack.c.bf16 %v322_v13, %v322_v13 }
  0x16   : > { %393 = vmatpush.bf16.msra.mxu0 %v590_v4 }
  0x1a   : > { %394 = vmatpush.bf16.msra.mxu0 %v589_v5 }
  0x1e   : > { %395 = vmatpush.bf16.msra.mxu0 %v588_v6 }
  0x22   : > { %396 = vmatpush.bf16.msra.mxu0 %v587_v7 }
  0x26   : > { %397 = vmatpush.bf16.msra.mxu0 %v586_v8 }
  0x2a   : > { %398 = vmatpush.bf16.msra.mxu0 %v585_v12 }
  0x2e   : > { %399 = vmatpush.bf16.msra.mxu0 %v584_v14 }
  0x31   : > { %581 = vmatmul.msk.bf16.vlgmr.msra.gmra.mxu0 %vm384_vm1, %v323_v15 }
  0xae   : > { %v401_v19 = vpop.f32.mrf.mxu0 }
  0xaf   : > { %v407_v20 = vmul.f32 %v616_v16, %v401_v19 }
  0xb1   : > { %v410_v22 = vadd.f32 %v617_v18, %v407_v20 }
  0xb3   : > { %v413_v23 = vadd.f32 %v412_v21, %v410_v22 }
  0xb5   : > { %v414_v24 = vpack.c.bf16 %v413_v23, %v413_v23 }
  0xb6   : > { %v403_v25 = vpop.f32.mrf.mxu0 }
  0xb7   : > { %416 = vst.msk [vmem:[%s315_s7] sm:$0x3] %vm415_vm2, %v414_v24 }
  0xb8 PF: > { %s15_s20 = sadd.s32 1, %s640_s20   ;;  %s752_s18 = smov %s636_s19 }
  0xb9   : > { %p12_p5 = scmp.ge.s32.totalorder %s15_s20, 4   ;;  %s753_s19 = smov %s755_s21 }
  0xbb   :  { %14 = sbr.rel (!%p12_p5) target bundleno = 2 (0x2), region = 82 }

// kernel: _lambda_.29
= control target key start
LH: loop header
LB: loop body
LE: loop exit
PB: predicated region body
PF: predicated region fallthrough
CT: control target
= control target key end

     0   :  { %s610_s12 = smov 0   ;;  %s740_s0 = inlined_call_operand.vmem [shape: bf16[1,2,6,6,120], index: 0, kind: input, shape index: {}]   ;;  %s741_s1 = inlined_call_operand.vmem [shape: bf16[25,120], index: 1, kind: input, shape index: {}]   ;;  %s742_s2 = inlined_call_operand.vmem [shape: f32[2,120], index: 2, kind: input, shape index: {}]   ;;  %s743_s3 = inlined_call_operand.vmem [shape: bf16[2,2,2,120], index: 3, kind: output, shape index: {}]  }
   0x1 LB: > { %s558_s13 = sadd.s32 4294967295, %s588_s12   ;;  %p562_p0 = scmp.ge.s32.totalorder %s588_s12, 1  ;;  %s588_s12 = sphi %s610_s12, %s13_s12  }
   0x2   : > { %p137_p1 = scmp.lt.s32.totalorder %s588_s12, 3 }
   0x4   : > { %p138_p2 = pnand %p562_p0, %p137_p1 }
   0x5   : > { %p160_p3 = scmp.lt.s32.totalorder (!%p138_p2), %s558_s13, 1 }
   0x6   : > { %141 = sbr.rel (%p138_p2) target bundleno = 88 (0x58), region = 32 }
   0xb   : > { %v568_v0 = vld [vmem:[%s741_s1] sm:$0xff]   ;;  %v171_v1 = vld [vmem:[%s741_s1 + $0x8] sm:$0xf]  ;;  %s745_s13 = smov (!%p160_p3, %s558_s13), 1  ;;  %vm502_vm0 = vcmask 974848  }
   0xc   : > { %v624_v2 = vunpack.c.l.bf16 %v568_v0  ;;  %v626_v3 = vunpack.c.h.bf16 %v568_v0  ;;  %v628_v4 = vunpack.c.l.bf16 %v171_v1  ;;  %s571_s18 = smul.u32 24, %s745_s13  ;;  %s564_s28 = sshll.u32 %s745_s13, 1 }
   0xd   : > { %s168_s4 = scalar_lea.vmem %s743_s3, %s564_s28 }
   0xe   : > { %v189_v5 = vperm.slane %v624_v2, 0  ;;  %v194_v6 = vperm.slane %v624_v2, 5  ;;  %v199_v7 = vperm.slane %v626_v3, 2  ;;  %v204_v8 = vperm.slane %v626_v3, 7  ;;  %s647_s21 = scalar_lea.vmem %s740_s0, %s571_s18 }
   0xf   : > { %v209_v9 = vperm.slane %v628_v4, 4  ;;  %v226_v10 = vperm.slane %v624_v2, 1  ;;  %v237_v11 = vperm.slane %v624_v2, 6  ;;  %v248_v12 = vperm.slane %v626_v3, 3  ;;  %v177_v20 = vld [vmem:[%s647_s21] sm:$0x1] }
  0x10   : > { %v259_v13 = vperm.slane %v628_v4, 0  ;;  %v270_v14 = vperm.slane %v628_v4, 5  ;;  %v293_v15 = vperm.slane %v624_v2, 2  ;;  %v304_v16 = vperm.slane %v624_v2, 7  ;;  %v178_v21 = vld [vmem:[%s647_s21 + $0x4] sm:$0x1] }
  0x11   : > { %v315_v17 = vperm.slane %v626_v3, 4  ;;  %v326_v18 = vperm.slane %v628_v4, 1  ;;  %v337_v19 = vperm.slane %v628_v4, 6  ;;  %v179_v22 = vld [vmem:[%s647_s21 + $0x8] sm:$0x1]  ;;  %v183_v26 = vunpack.c.l.bf16 %v177_v20 }
  0x12   : > { %v180_v23 = vld [vmem:[%s647_s21 + $0xc] sm:$0x1]  ;;  %v181_v24 = vld [vmem:[%s647_s21 + $0x10] sm:$0x1]  ;;  %v182_v25 = vld [vmem:[%s647_s21 + $0x14] sm:$0x1]  ;;  %v184_v27 = vunpack.c.l.bf16 %v178_v21  ;;  %v185_v28 = vunpack.c.l.bf16 %v179_v22 }
  0x13   : > { %v186_v29 = vunpack.c.l.bf16 %v180_v23  ;;  %v187_v30 = vunpack.c.l.bf16 %v181_v24  ;;  %v188_v31 = vunpack.c.l.bf16 %v182_v25  ;;  %v214_v32 = vld [vmem:[%s647_s21] sm:$0x3]  ;;  %v360_v33 = vperm.slane %v624_v2, 3  ;;  %v215_v38 = vld [vmem:[%s647_s21 + $0x4] sm:$0x3] }
  0x14   : > { %v190_v34 = vmul.f32 %v189_v5, %v183_v26  ;;  %v191_v35 = vmul.f32 %v189_v5, %v184_v27  ;;  %v195_v36 = vmul.f32 %v194_v6, %v184_v27  ;;  %v196_v37 = vmul.f32 %v194_v6, %v185_v28  ;;  %v216_v39 = vld [vmem:[%s647_s21 + $0x8] sm:$0x3]  ;;  %v217_v40 = vld [vmem:[%s647_s21 + $0xc] sm:$0x3]  ;;  %v218_v45 = vld [vmem:[%s647_s21 + $0x10] sm:$0x3] }
  0x15   : > { %v200_v41 = vmul.f32 %v199_v7, %v185_v28  ;;  %v201_v42 = vmul.f32 %v199_v7, %v186_v29  ;;  %v205_v43 = vmul.f32 %v204_v8, %v186_v29  ;;  %v206_v44 = vmul.f32 %v204_v8, %v187_v30  ;;  %v219_v46 = vld [vmem:[%s647_s21 + $0x14] sm:$0x3]  ;;  %v281_v6 = vld [vmem:[%s647_s21] sm:$0x2]  ;;  %v282_v21 = vld [vmem:[%s647_s21 + $0x4] sm:$0x2] }
  0x16   : > { %v197_v47 = vadd.f32 %v195_v36, %v190_v34  ;;  %v198_v48 = vadd.f32 %v196_v37, %v191_v35  ;;  %v210_v49 = vmul.f32 %v209_v9, %v187_v30  ;;  %v211_v50 = vmul.f32 %v209_v9, %v188_v31  ;;  %v283_v27 = vld [vmem:[%s647_s21 + $0x8] sm:$0x2]  ;;  %v284_v28 = vld [vmem:[%s647_s21 + $0xc] sm:$0x2]  ;;  %v285_v31 = vld [vmem:[%s647_s21 + $0x10] sm:$0x2] }
  0x17   : > { %v220_v51 = vunpack.c.l.bf16 %v214_v32  ;;  %v221_v52 = vunpack.c.l.bf16 %v215_v38  ;;  %v222_v53 = vunpack.c.l.bf16 %v216_v39  ;;  %v223_v54 = vunpack.c.l.bf16 %v217_v40  ;;  %v286_v32 = vld [vmem:[%s647_s21 + $0x14] sm:$0x2] }
  0x18   : > { %v202_v55 = vadd.f32 %v200_v41, %v197_v47  ;;  %v203_v56 = vadd.f32 %v201_v42, %v198_v48  ;;  %v224_v57 = vunpack.c.l.bf16 %v218_v45  ;;  %v225_v58 = vunpack.c.l.bf16 %v219_v46 }
  0x19   : > { %v227_v59 = vmul.f32 %v226_v10, %v220_v51  ;;  %v228_v60 = vmul.f32 %v226_v10, %v221_v52  ;;  %v238_v61 = vmul.f32 %v237_v11, %v221_v52  ;;  %v239_v62 = vmul.f32 %v237_v11, %v222_v53 }
  0x1a   : > { %v207_v63 = vadd.f32 %v205_v43, %v202_v55  ;;  %v208_v0 = vadd.f32 %v206_v44, %v203_v56  ;;  %v249_v1 = vmul.f32 %v248_v12, %v222_v53  ;;  %v250_v5 = vmul.f32 %v248_v12, %v223_v54 }
  0x1b   : > { %v231_v7 = vrot.slane %v227_v59, 1  ;;  %v232_v8 = vrot.slane %v228_v60, 1  ;;  %v242_v9 = vrot.slane %v238_v61, 1  ;;  %v243_v20 = vrot.slane %v239_v62, 1  ;;  %v350_v62 = vld [vmem:[%s647_s21 + $0x8] sm:$0x6] }
  0x1c   : > { %v212_v22 = vadd.f32 %v210_v49, %v207_v63  ;;  %v213_v23 = vadd.f32 %v211_v50, %v208_v0  ;;  %v253_v24 = vrot.slane %v249_v1, 1  ;;  %v254_v10 = vrot.slane %v250_v5, 1  ;;  %v351_v5 = vld [vmem:[%s647_s21 + $0xc] sm:$0x6] }
  0x1d   : > { %v260_v11 = vmul.f32 %v259_v13, %v223_v54  ;;  %v261_v25 = vmul.f32 %v259_v13, %v224_v57  ;;  %v271_v12 = vmul.f32 %v270_v14, %v224_v57  ;;  %v272_v26 = vmul.f32 %v270_v14, %v225_v58  ;;  %v348_v57 = vld [vmem:[%s647_s21] sm:$0x6]  ;;  %v349_v58 = vld [vmem:[%s647_s21 + $0x4] sm:$0x6] }
  0x1e   : > { %v235_v29 = vadd.f32 %v231_v7, %v212_v22  ;;  %v236_v30 = vadd.f32 %v232_v8, %v213_v23  ;;  %v287_v34 = vunpack.c.l.bf16 %v281_v6  ;;  %v288_v35 = vunpack.c.l.bf16 %v282_v21  ;;  %v352_v6 = vld [vmem:[%s647_s21 + $0x10] sm:$0x6]  ;;  %v353_v7 = vld [vmem:[%s647_s21 + $0x14] sm:$0x6] }
  0x1f   : > { %v264_v36 = vrot.slane %v260_v11, 1  ;;  %v265_v37 = vrot.slane %v261_v25, 1  ;;  %v275_v38 = vrot.slane %v271_v12, 1  ;;  %v276_v39 = vrot.slane %v272_v26, 1 }
  0x20   : > { %v246_v40 = vadd.f32 %v242_v9, %v235_v29  ;;  %v247_v13 = vadd.f32 %v243_v20, %v236_v30  ;;  %v289_v41 = vunpack.c.l.bf16 %v283_v27  ;;  %v290_v42 = vunpack.c.l.bf16 %v284_v28 }
  0x21   : > { %v291_v43 = vunpack.c.l.bf16 %v285_v31  ;;  %v292_v44 = vunpack.c.l.bf16 %v286_v32  ;;  %v294_v14 = vmul.f32 %v293_v15, %v287_v34  ;;  %v295_v45 = vmul.f32 %v293_v15, %v288_v35  ;;  %v172_v34 = vld [vmem:[%s741_s1 + $0xc] sm:$0x1] }
  0x22   : > { %v257_v46 = vadd.f32 %v253_v24, %v246_v40  ;;  %v258_v47 = vadd.f32 %v254_v10, %v247_v13  ;;  %v305_v48 = vmul.f32 %v304_v16, %v288_v35  ;;  %v306_v49 = vmul.f32 %v304_v16, %v289_v41 }
  0x23   : > { %v298_v50 = vrot.slane %v294_v14, 2  ;;  %v299_v51 = vrot.slane %v295_v45, 2  ;;  %v316_v52 = vmul.f32 %v315_v17, %v289_v41  ;;  %v317_v53 = vmul.f32 %v315_v17, %v290_v42  ;;  %v415_v14 = vld [vmem:[%s647_s21] sm:$0x4]  ;;  %v416_v45 = vld [vmem:[%s647_s21 + $0x4] sm:$0x4] }
  0x24   : > { %v268_v54 = vadd.f32 %v264_v36, %v257_v46  ;;  %v269_v15 = vadd.f32 %v265_v37, %v258_v47  ;;  %v309_v55 = vrot.slane %v305_v48, 2  ;;  %v310_v56 = vrot.slane %v306_v49, 2 }
  0x25   : > { %v320_v59 = vrot.slane %v316_v52, 2  ;;  %v321_v60 = vrot.slane %v317_v53, 2  ;;  %v327_v16 = vmul.f32 %v326_v18, %v290_v42  ;;  %v328_v61 = vmul.f32 %v326_v18, %v291_v43 }
  0x26   : > { %v279_v63 = vadd.f32 %v275_v38, %v268_v54  ;;  %v280_v17 = vadd.f32 %v276_v39, %v269_v15  ;;  %v338_v0 = vmul.f32 %v337_v19, %v291_v43  ;;  %v339_v1 = vmul.f32 %v337_v19, %v292_v44  ;;  %v418_v15 = vld [vmem:[%s647_s21 + $0xc] sm:$0x4] }
  0x27   : > { %v331_v8 = vrot.slane %v327_v16, 2  ;;  %v332_v9 = vrot.slane %v328_v61, 2  ;;  %v354_v20 = vunpack.c.l.bf16 %v348_v57  ;;  %v355_v21 = vunpack.c.l.bf16 %v349_v58  ;;  %v420_v61 = vld [vmem:[%s647_s21 + $0x14] sm:$0x4] }
  0x28   : > { %v302_v22 = vadd.f32 %v298_v50, %v279_v63  ;;  %v303_v23 = vadd.f32 %v299_v51, %v280_v17  ;;  %v342_v24 = vrot.slane %v338_v0, 2  ;;  %v343_v18 = vrot.slane %v339_v1, 2  ;;  %v417_v50 = vld [vmem:[%s647_s21 + $0x8] sm:$0x4] }
  0x29   : > { %v356_v10 = vunpack.c.l.bf16 %v350_v62  ;;  %v357_v11 = vunpack.c.l.bf16 %v351_v5  ;;  %v358_v25 = vunpack.c.l.bf16 %v352_v6  ;;  %v359_v12 = vunpack.c.l.bf16 %v353_v7 }
  0x2a   : > { %v313_v26 = vadd.f32 %v309_v55, %v302_v22  ;;  %v314_v27 = vadd.f32 %v310_v56, %v303_v23  ;;  %v361_v19 = vmul.f32 %v360_v33, %v354_v20  ;;  %v362_v28 = vmul.f32 %v360_v33, %v355_v21  ;;  %v419_v55 = vld [vmem:[%s647_s21 + $0x10] sm:$0x4] }
  0x2b   : > { %v371_v29 = vperm.slane %v626_v3, 0  ;;  %v382_v30 = vperm.slane %v626_v3, 5  ;;  %v393_v31 = vperm.slane %v628_v4, 2  ;;  %v404_v32 = vperm.slane %v628_v4, 7 }
  0x2c   : > { %v324_v35 = vadd.f32 %v320_v59, %v313_v26  ;;  %v325_v36 = vadd.f32 %v321_v60, %v314_v27  ;;  %v365_v37 = vrot.slane %v361_v19, 3  ;;  %v366_v38 = vrot.slane %v362_v28, 3 }
  0x2d   : > { %v372_v33 = vmul.f32 %v371_v29, %v355_v21  ;;  %v373_v39 = vmul.f32 %v371_v29, %v356_v10  ;;  %v383_v40 = vmul.f32 %v382_v30, %v356_v10  ;;  %v384_v13 = vmul.f32 %v382_v30, %v357_v11 }
  0x2e   : > { %v335_v41 = vadd.f32 %v331_v8, %v324_v35  ;;  %v336_v42 = vadd.f32 %v332_v9, %v325_v36  ;;  %v394_v43 = vmul.f32 %v393_v31, %v357_v11  ;;  %v395_v44 = vmul.f32 %v393_v31, %v358_v25 }
  0x2f   : > { %v176_v46 = vunpack.c.l.bf16 %v172_v34  ;;  %v376_v47 = vrot.slane %v372_v33, 3  ;;  %v377_v48 = vrot.slane %v373_v39, 3  ;;  %v387_v49 = vrot.slane %v383_v40, 3 }
  0x30   : > { %v346_v51 = vadd.f32 %v342_v24, %v335_v41  ;;  %v347_v52 = vadd.f32 %v343_v18, %v336_v42  ;;  %v388_v53 = vrot.slane %v384_v13, 3  ;;  %v398_v54 = vrot.slane %v394_v43, 3 }
  0x31   : > { %v399_v56 = vrot.slane %v395_v44, 3  ;;  %v405_v57 = vmul.f32 %v404_v32, %v358_v25  ;;  %v406_v58 = vmul.f32 %v404_v32, %v359_v12  ;;  %v421_v59 = vunpack.c.l.bf16 %v415_v14 }
  0x32   : > { %v369_v60 = vadd.f32 %v365_v37, %v346_v51  ;;  %v370_v16 = vadd.f32 %v366_v38, %v347_v52  ;;  %v422_v62 = vunpack.c.l.bf16 %v416_v45  ;;  %v423_v63 = vunpack.c.l.bf16 %v417_v50  ;;  %v581_v51 = vld [vmem:[%s742_s2 + $0x1] ss:$0 sm:$0xff] }
  0x33   : > { %v409_v17 = vrot.slane %v405_v57, 3  ;;  %v410_v0 = vrot.slane %v406_v58, 3  ;;  %v424_v1 = vunpack.c.l.bf16 %v418_v15  ;;  %v425_v5 = vunpack.c.l.bf16 %v419_v55 }
  0x34   : > { %v380_v6 = vadd.f32 %v376_v47, %v369_v60  ;;  %v381_v7 = vadd.f32 %v377_v48, %v370_v16  ;;  %v427_v8 = vperm.slane %v624_v2, 4  ;;  %v438_v9 = vperm.slane %v626_v3, 1  ;;  %v580_v48 = vld [vmem:[%s742_s2] ss:$0 sm:$0xff] }
  0x35   : > { %v426_v20 = vunpack.c.l.bf16 %v420_v61  ;;  %v449_v21 = vperm.slane %v626_v3, 6  ;;  %v460_v22 = vperm.slane %v628_v4, 3  ;;  %v471_v23 = vperm.slane %v176_v46, 0 }
  0x36   : > { %v391_v24 = vadd.f32 %v387_v49, %v380_v6  ;;  %v392_v18 = vadd.f32 %v388_v53, %v381_v7  ;;  %v428_v10 = vmul.f32 %v427_v8, %v421_v59  ;;  %v429_v11 = vmul.f32 %v427_v8, %v422_v62 }
  0x37   : > { %v439_v25 = vmul.f32 %v438_v9, %v422_v62  ;;  %v440_v12 = vmul.f32 %v438_v9, %v423_v63  ;;  %v450_v26 = vmul.f32 %v449_v21, %v423_v63  ;;  %v451_v27 = vmul.f32 %v449_v21, %v424_v1 }
  0x38   : > { %v402_v19 = vadd.f32 %v398_v54, %v391_v24  ;;  %v403_v28 = vadd.f32 %v399_v56, %v392_v18  ;;  %v432_v29 = vrot.slane %v428_v10, 4  ;;  %v433_v2 = vrot.slane %v429_v11, 4 }
  0x39   : > { %v443_v30 = vrot.slane %v439_v25, 4  ;;  %v444_v31 = vrot.slane %v440_v12, 4  ;;  %v461_v3 = vmul.f32 %v460_v22, %v424_v1  ;;  %v462_v35 = vmul.f32 %v460_v22, %v425_v5 }
  0x3a   : > { %v413_v32 = vadd.f32 %v409_v17, %v402_v19  ;;  %v414_v34 = vadd.f32 %v410_v0, %v403_v28  ;;  %v454_v4 = vrot.slane %v450_v26, 4  ;;  %v455_v36 = vrot.slane %v451_v27, 4 }
  0x3b   : > { %v472_v33 = vmul.f32 %v471_v23, %v425_v5  ;;  %v473_v39 = vmul.f32 %v471_v23, %v426_v20  ;;  %v465_v41 = vrot.slane %v461_v3, 4  ;;  %v466_v42 = vrot.slane %v462_v35, 4 }
  0x3c   : > { %v436_v37 = vadd.f32 %v432_v29, %v413_v32  ;;  %v437_v38 = vadd.f32 %v433_v2, %v414_v34 }
  0x3d   : > { %v476_v14 = vrot.slane %v472_v33, 4  ;;  %v477_v45 = vrot.slane %v473_v39, 4 }
  0x3e   : > { %v447_v40 = vadd.f32 %v443_v30, %v436_v37  ;;  %v448_v13 = vadd.f32 %v444_v31, %v437_v38 }
  0x40   : > { %v458_v43 = vadd.f32 %v454_v4, %v447_v40  ;;  %v459_v44 = vadd.f32 %v455_v36, %v448_v13 }
  0x42   : > { %v469_v46 = vadd.f32 %v465_v41, %v458_v43  ;;  %v470_v47 = vadd.f32 %v466_v42, %v459_v44 }
  0x44   : > { %v480_v49 = vadd.f32 %v476_v14, %v469_v46  ;;  %v481_v50 = vadd.f32 %v477_v45, %v470_v47 }
  0x46   : > { %v484_v52 = vmul.f32 %v580_v48, %v480_v49  ;;  %v485_v53 = vmul.f32 %v580_v48, %v481_v50 }
  0x48   : > { %v488_v54 = vadd.f32 %v581_v51, %v484_v52  ;;  %v489_v15 = vadd.f32 %v581_v51, %v485_v53 }
  0x4a   : > { %v490_v55 = vadd.f32 3.0, %v488_v54  ;;  %v491_v56 = vadd.f32 3.0, %v489_v15 }
  0x4c   : > { %v492_v57 = vmax.f32 %v490_v55, 0.0  ;;  %v493_v58 = vmax.f32 %v491_v56, 0.0 }
  0x4e   : > { %v494_v59 = vmin.f32 %v492_v57, 6.0  ;;  %v495_v60 = vmin.f32 %v493_v58, 6.0 }
  0x50   : > { %v496_v16 = vmul.f32 0.16666667, %v494_v59  ;;  %v497_v61 = vmul.f32 0.16666667, %v495_v60 }
  0x52   : > { %v498_v62 = vmul.f32 %v496_v16, %v488_v54  ;;  %v499_v63 = vmul.f32 %v497_v61, %v489_v15 }
  0x54   : > { %v500_v17 = vpack.c.bf16 %v498_v62, %v498_v62  ;;  %v501_v0 = vpack.c.bf16 %v499_v63, %v499_v63 }
  0x56   : > { %503 = vst.msk [vmem:[%s168_s4] sm:$0x1] %vm502_vm0, %v500_v17 }
  0x57   : > { %504 = vst.msk [vmem:[%s168_s4 + $0x1] sm:$0x1] %vm502_vm0, %v501_v0 }
  0x58 PF: > { %s13_s12 = sadd.s32 1, %s588_s12  }
  0x59   : > { %p10_p4 = scmp.ge.s32.totalorder %s13_s12, 4  }
  0x5b   :  { %12 = sbr.rel (!%p10_p4) target bundleno = 1 (0x1), region = 62 }

// kernel: _lambda_.30
= control target key start
LH: loop header
LB: loop body
LE: loop exit
PB: predicated region body
PF: predicated region fallthrough
CT: control target
= control target key end

     0   :  { %s503_s18 = smov 0   ;;  %s560_s0 = inlined_call_operand.vmem [shape: bf16[2,4,120], index: 0, kind: input, shape index: {}]   ;;  %s561_s1 = inlined_call_operand.vmem [shape: bf16[120,32], index: 1, kind: input, shape index: {}]   ;;  %s562_s2 = inlined_call_operand.vmem [shape: f32[1,32], index: 2, kind: input, shape index: {}]   ;;  %s563_s3 = inlined_call_operand.vmem [shape: bf16[32,120], index: 3, kind: input, shape index: {}]   ;;  %s564_s4 = inlined_call_operand.vmem [shape: f32[1,120], index: 4, kind: input, shape index: {}]   ;;  %s565_s5 = inlined_call_operand.vmem [shape: f32[2,1,120], index: 5, kind: output, shape index: {}]  }
   0x1 LB: > { %s402_s19 = sadd.s32 4294967295, %s471_s18   ;;  %p406_p0 = scmp.ge.s32.totalorder %s471_s18, 1  ;;  %s471_s18 = sphi %s503_s18, %s15_s18  }
   0x2   : > { %p186_p1 = scmp.lt.s32.totalorder %s471_s18, 3 }
   0x4   : > { %p187_p2 = pnand %p406_p0, %p186_p1 }
   0x5   : > { %p211_p3 = scmp.lt.s32.totalorder (!%p187_p2), %s402_s19, 1 }
   0x6   : > { %190 = sbr.rel (%p187_p2) target bundleno = 317 (0x13d), region = 40 }
   0xb   : > { %v245_v0 = vld [vmem:[%s561_s1 + $0x38] sm:$0xf]  ;;  %vm296_vm0 = vcmask 1043456   ;;  %s567_s19 = smov (!%p211_p3, %s402_s19), 1  ;;  %v454_v4 = vld [vmem:[%s561_s1 + $0x30] sm:$0xff]  ;;  %vm221_vm1 = vcmask 977920  }
   0xc   : > { %v276_v1 = vunpack.c.l.b16 %v245_v0  ;;  %s407_s22 = sshll.u32 %s567_s19, 1  ;;  %v453_v8 = vld [vmem:[%s561_s1 + $0x28] sm:$0xff]  ;;  %v452_v11 = vld [vmem:[%s561_s1 + $0x20] sm:$0xff]  ;;  %v451_v14 = vld [vmem:[%s561_s1 + $0x18] sm:$0xff]  ;;  %vm292_vm2 = vcmask 982016   ;;  %vm332_vm3 = vcmask 261120   ;;  %s217_s27 = scalar_lea.vmem %s565_s5, %s567_s19 }
   0xd   : > { %s214_s25 = scalar_lea.vmem %s560_s0, %s407_s22  ;;  %v450_v16 = vld [vmem:[%s561_s1 + $0x10] sm:$0xff]  ;;  %v449_v18 = vld [vmem:[%s561_s1 + $0x8] sm:$0xff]  ;;  %v448_v20 = vld [vmem:[%s561_s1] sm:$0xff]  ;;  %vm353_vm4 = vcmask 974848  }
   0xe   : > { %v284_v2 = vpack.c.b16 %v276_v1, %v276_v1  ;;  %v219_v5 = vld [vmem:[%s214_s25] sm:$0x3]  ;;  %v456_v22 = vld [vmem:[%s563_s3 + $0x8] sm:$0xff] }
   0xf   : > { %v220_v6 = vunpack.c.l.bf16 %v219_v5  ;;  %342 = vmatpush.bf16.msra.mxu1 %v456_v22  ;;  %v455_v23 = vld [vmem:[%s563_s3] sm:$0xff] }
  0x10   : > { %v298_v3 = vsel %vm296_vm0, %v284_v2, 0  ;;  %v246_v24 = vld [vmem:[%s562_s2] sm:$0x1] }
  0x11   : > { %300 = vmatpush.bf16.msra.mxu0 %v298_v3  ;;  %v222_v7 = vsel %vm221_vm1, %v220_v6, 0.0  ;;  %v319_v30 = vld [vmem:[%s564_s4] sm:$0x1] }
  0x12   : > { %v223_v9 = vrot.slane %v222_v7, 4 }
  0x13   : > { %343 = vmatpush.bf16.msra.mxu1 %v455_v23 }
  0x14   : > { %v224_v10 = vadd.f32 %v223_v9, %v222_v7 }
  0x15   : > { %301 = vmatpush.bf16.msra.mxu0 %v454_v4 }
  0x16   : > { %v225_v12 = vrot.slane %v224_v10, 2 }
  0x18   : > { %v226_v13 = vadd.f32 %v225_v12, %v224_v10 }
  0x19   : > { %302 = vmatpush.bf16.msra.mxu0 %v453_v8 }
  0x1a   : > { %v227_v15 = vrot.slane %v226_v13, 1 }
  0x1c   : > { %v228_v17 = vadd.f32 %v227_v15, %v226_v13 }
  0x1d   : > { %303 = vmatpush.bf16.msra.mxu0 %v452_v11 }
  0x1e   : > { %v229_v19 = vmul.f32 0.25, %v228_v17 }
  0x20   : > { %v230_v21 = vpack.c.bf16 %v229_v19, %v229_v19 }
  0x21   : > { %304 = vmatpush.bf16.msra.mxu0 %v451_v14 }
  0x25   : > { %305 = vmatpush.bf16.msra.mxu0 %v450_v16 }
  0x29   : > { %306 = vmatpush.bf16.msra.mxu0 %v449_v18 }
  0x2d   : > { %307 = vmatpush.bf16.msra.mxu0 %v448_v20 }
  0x30   : > { %436 = vmatmul.msk.bf16.vlgmr.msra.gmra.mxu0 %vm292_vm2, %v230_v21 }
  0xad   : > { %v309_v25 = vpop.f32.mrf.mxu0 }
  0xae   : > { %v310_v26 = vadd.f32 %v309_v25, %v246_v24 }
  0xb0   : > { %v313_v27 = vmax.f32 %v310_v26, 0.0 }
  0xb2   : > { %v314_v28 = vpack.c.bf16 %v313_v27, %v313_v27 }
  0xb4   : > { %445 = vmatmul.msk.bf16.vlgmr.msra.gmra.mxu1 %vm332_vm3, %v314_v28 }
  0xb5   : > { %v311_v29 = vpop.f32.mrf.mxu0 }
 0x131   : > { %v345_v31 = vpop.f32.mrf.mxu1 }
 0x132   : > { %v346_v32 = vadd.f32 %v345_v31, %v319_v30 }
 0x134   : > { %v349_v33 = vadd.f32 3.0, %v346_v32 }
 0x136   : > { %v350_v34 = vmax.f32 %v349_v33, 0.0 }
 0x138   : > { %v351_v35 = vmin.f32 %v350_v34, 6.0 }
 0x139   : > { %v347_v36 = vpop.f32.mrf.mxu1 }
 0x13a   : > { %v352_v37 = vmul.f32 0.16666667, %v351_v35 }
 0x13c   : > { %354 = vst.msk [vmem:[%s217_s27] sm:$0x1] %vm353_vm4, %v352_v37 }
 0x13d PF: > { %s15_s18 = sadd.s32 1, %s471_s18  }
 0x13e   : > { %p12_p4 = scmp.ge.s32.totalorder %s15_s18, 4  }
 0x140   :  { %14 = sbr.rel (!%p12_p4) target bundleno = 1 (0x1), region = 70 }

// kernel: _lambda_.32
= control target key start
LH: loop header
LB: loop body
LE: loop exit
PB: predicated region body
PF: predicated region fallthrough
CT: control target
= control target key end

     0   :  { %vm56_vm0 = vcmask 1043456   ;;  %vm52_vm1 = vcmask 326656   ;;  %s230_s1 = inlined_call_operand.vmem [shape: bf16[40,256], index: 1, kind: input, shape index: {}]   ;;  %s231_s0 = inlined_call_operand.vmem [shape: bf16[16,40], index: 0, kind: input, shape index: {}]   ;;  %s232_s2 = inlined_call_operand.vmem [shape: f32[2,256], index: 2, kind: input, shape index: {}]   ;;  %s233_s3 = inlined_call_operand.vmem [shape: bf16[16,256], index: 3, kind: output, shape index: {}]  }
   0x1   :  { %v21_v0 = vld [vmem:[%s230_s1 + $0x20] sm:$0xff]  ;;  %v154_v3 = vld [vmem:[%s230_s1 + $0x10] sm:$0xf]  ;;  %v167_v6 = vld [vmem:[%s230_s1 + $0x14] sm:$0xf0] }
   0x2   :  { %v40_v1 = vunpack.c.l.b16 %v21_v0  ;;  %v41_v2 = vunpack.c.h.b16 %v21_v0  ;;  %v166_v7 = vld [vmem:[%s230_s1 + $0x14] sm:$0xf]  ;;  %v156_v8 = vld [vmem:[%s230_s1 + $0x18] sm:$0xf0]  ;;  %v155_v11 = vor.u32 %v167_v6, %v154_v3  ;;  %v146_v13 = vld [vmem:[%s230_s1] sm:$0xf] }
   0x3   :  { %v159_v12 = vor.u32 %v166_v7, %v156_v8  ;;  %v165_v14 = vld [vmem:[%s230_s1 + $0x4] sm:$0xf0]  ;;  %v164_v15 = vld [vmem:[%s230_s1 + $0x4] sm:$0xf]  ;;  %v148_v16 = vld [vmem:[%s230_s1 + $0x8] sm:$0xf0] }
   0x4   :  { %v46_v4 = vpack.c.b16 %v40_v1, %v40_v1  ;;  %v47_v5 = vpack.c.b16 %v41_v2, %v41_v2  ;;  %v147_v17 = vor.u32 %v165_v14, %v146_v13  ;;  %v151_v18 = vor.u32 %v164_v15, %v148_v16  ;;  %v163_v19 = vld [vmem:[%s231_s0] sm:$0xff] }
   0x5   :  { %v91_v20 = vld [vmem:[%s232_s2] ss:$2 sm:$0x3]  ;;  %v162_v21 = vld [vmem:[%s232_s2 + $0x1] ss:$2 sm:$0x3] }
   0x6   :  { %v58_v9 = vsel %vm56_vm0, %v46_v4, 0  ;;  %v61_v10 = vsel %vm56_vm0, %v47_v5, 0  ;;  %v93_v22 = vperm.slane %v91_v20, 0  ;;  %v94_v23 = vperm.slane %v91_v20, 1 }
   0x7   :  { %68 = vmatpush.bf16.msra.mxu0 %v58_v9  ;;  %82 = vmatpush.bf16.msra.mxu1 %v61_v10  ;;  %v104_v24 = vperm.slane %v162_v21, 0  ;;  %v105_v25 = vperm.slane %v162_v21, 1 }
   0xb   :  { %69 = vmatpush.bf16.msra.mxu0 %v155_v11  ;;  %83 = vmatpush.bf16.msra.mxu1 %v159_v12 }
   0xf   :  { %70 = vmatpush.bf16.msra.mxu0 %v147_v17  ;;  %84 = vmatpush.bf16.msra.mxu1 %v151_v18 }
  0x12   :  { %160 = vmatmul.msk.bf16.vlgmr.msra.gmra.mxu0 %vm52_vm1, %v163_v19  ;;  %161 = vmatmul.msk.bf16.vlgmr.msra.gmra.mxu1 %vm52_vm1, %v163_v19 }
  0x8f   :  { %v72_v26 = vpop.f32.mrf.mxu0  ;;  %v86_v27 = vpop.f32.mrf.mxu1 }
  0x90   :  { %v97_v28 = vmul.f32 %v93_v22, %v72_v26  ;;  %v98_v29 = vmul.f32 %v94_v23, %v86_v27 }
  0x92   :  { %v108_v30 = vadd.f32 %v104_v24, %v97_v28  ;;  %v109_v31 = vadd.f32 %v105_v25, %v98_v29 }
  0x94   :  { %v112_v32 = vadd.f32 3.0, %v108_v30  ;;  %v113_v33 = vadd.f32 3.0, %v109_v31 }
  0x96   :  { %v116_v34 = vmax.f32 %v112_v32, 0.0  ;;  %v117_v35 = vmax.f32 %v113_v33, 0.0 }
  0x97   :  { %v74_v36 = vpop.f32.mrf.mxu0  ;;  %v88_v37 = vpop.f32.mrf.mxu1 }
  0x98   :  { %v120_v38 = vmin.f32 %v116_v34, 6.0  ;;  %v121_v39 = vmin.f32 %v117_v35, 6.0  ;;  %v99_v40 = vmul.f32 %v93_v22, %v74_v36  ;;  %v100_v41 = vmul.f32 %v94_v23, %v88_v37 }
  0x9a   :  { %v124_v42 = vmul.f32 0.16666667, %v120_v38  ;;  %v125_v43 = vmul.f32 0.16666667, %v121_v39  ;;  %v110_v44 = vadd.f32 %v104_v24, %v99_v40  ;;  %v111_v45 = vadd.f32 %v105_v25, %v100_v41 }
  0x9c   :  { %v128_v46 = vmul.f32 %v124_v42, %v108_v30  ;;  %v129_v47 = vmul.f32 %v125_v43, %v109_v31  ;;  %v114_v48 = vadd.f32 3.0, %v110_v44  ;;  %v115_v49 = vadd.f32 3.0, %v111_v45 }
  0x9e   :  { %v132_v50 = vpack.c.bf16 %v129_v47, %v128_v46  ;;  %v118_v51 = vmax.f32 %v114_v48, 0.0  ;;  %v119_v52 = vmax.f32 %v115_v49, 0.0 }
  0xa0   :  { %134 = vst [vmem:[%s233_s3] sm:$0xff] %v132_v50  ;;  %v122_v53 = vmin.f32 %v118_v51, 6.0  ;;  %v123_v54 = vmin.f32 %v119_v52, 6.0 }
  0xa2   :  { %v126_v55 = vmul.f32 0.16666667, %v122_v53  ;;  %v127_v56 = vmul.f32 0.16666667, %v123_v54 }
  0xa4   :  { %v130_v57 = vmul.f32 %v126_v55, %v110_v44  ;;  %v131_v58 = vmul.f32 %v127_v56, %v111_v45 }
  0xa6   :  { %v133_v59 = vpack.c.bf16 %v131_v58, %v130_v57 }
  0xa8   :  { %135 = vst [vmem:[%s233_s3 + $0x8] sm:$0xff] %v133_v59 }

// kernel: _lambda_.33
= control target key start
LH: loop header
LB: loop body
LE: loop exit
PB: predicated region body
PF: predicated region fallthrough
CT: control target
= control target key end

     0   :  { %10 = vsyncpa [#allocation3], 0  ;;  %s925_s0 = inlined_call_operand.vmem [shape: bf16[2,4,256], index: 0, kind: input, shape index: {}]   ;;  %s926_s1 = inlined_call_operand.vmem [shape: bf16[256,64], index: 1, kind: input, shape index: {}]   ;;  %s927_s2 = inlined_call_operand.vmem [shape: f32[1,64], index: 2, kind: input, shape index: {}]   ;;  %s928_s3 = inlined_call_operand.vmem [shape: bf16[64,10], index: 3, kind: input, shape index: {}]   ;;  %s929_s4 = inlined_call_operand.vmem [shape: f32[1,10], index: 4, kind: input, shape index: {}]   ;;  %s930_s5 = inlined_call_operand.hbm [shape: f32[2,1,10], index: 5, kind: output, shape index: {}]  }
   0x1   :  { %12 = vsyncpa [#allocation3 + $0x1], 0  ;;  %s774_s18 = smov 0   ;;  %s776_s19 = smov 0  }
   0x2   :  { %s778_s20 = smov 0   ;;  %s780_s21 = smov 0  }
   0x3 LB: > { %s795_s22 = sadd.s32 4294967295, %s742_s21   ;;  %s531_s23 = sadd.s32 4294967294, %s742_s21   ;;  %s742_s21 = sphi %s780_s21, %s936_s21   ;;  %s738_s20 = sphi %s778_s20, %s935_s20   ;;  %s734_s19 = sphi %s776_s19, %s934_s19   ;;  %s730_s18 = sphi %s774_s18, %s933_s18  }
   0x4   : > { %s799_s24 = sadd.s32 1, %s742_s21   ;;  %s135_s25 = sadd.s32 1, %s738_s20 }
   0x5   : > { %s132_s26 = ssub.s32 %s742_s21, %s799_s24  ;;  %p145_p0 = scmp.ne.s32.totalorder %s738_s20, %s734_s19 }
   0x6   : > { %p133_p1 = scmp.eq.s32.totalorder %s132_s26, 0  ;;  %p146_p2 = scmp.eq.s32.totalorder %s795_s22, 1 }
   0x7   : > { %p151_p3 = scmp.ne.s32.totalorder %s734_s19, %s730_s18  ;;  %p152_p4 = scmp.eq.s32.totalorder %s531_s23, 1 }
   0x8   : > { %s810_s27 = scalar_select %p133_p1, %s738_s20, %s135_s25  }
   0x9   : > { %p812_p5 = por %p146_p2, %p145_p0  ;;  %p816_p6 = por %p152_p4, %p151_p3 }
   0xa   : > { %p534_p7 = scmp.ge.s32.totalorder %s742_s21, 1  ;;  %p190_p8 = scmp.lt.s32.totalorder %s742_s21, 3 }
   0xc   : > { %p191_p9 = pnand %p534_p7, %p190_p8 }
   0xd   : > { %p217_p10 = scmp.lt.s32.totalorder (!%p191_p9), %s795_s22, 1  ;;  %s215_s26 = sand.u32 (!%p191_p9), 1, %s734_s19  }
   0xe   : > { %194 = sbr.rel (%p191_p9) target bundleno = 333 (0x14d), region = 40  ;;  %s472_s7 = scalar_lea.hbm (!%p191_p9), %s930_s5, %s795_s22 }
   0xf   : > { %s216_s10 = scalar_lea.vmem (!%p191_p9), [#allocation2], %s215_s26  ;;  %s476_s12 = sshll.u32 (!%p191_p9), %s472_s7, 4  ;;  %s477_s12 = int_to_ptr.hbm [resolvable:$true] %s476_s12 }
  0x10   : > { %s474_s11 = sshll.u32 (!%p191_p9), %s216_s10, 4  ;;  %s475_s11 = int_to_ptr.vmem [resolvable:$true] %s474_s11 }
  0x13   : > { %v628_v0 = vld [vmem:[%s926_s1 + $0x38] sm:$0xff]  ;;  %v627_v2 = vld [vmem:[%s926_s1 + $0x30] sm:$0xff]  ;;  %s218_s13 = scalar_select %p217_p10, %s795_s22, 1  ;;  %v626_v4 = vld [vmem:[%s926_s1 + $0x28] sm:$0xff]  ;;  %vm231_vm0 = vcmask 1043456   ;;  %vm444_vm1 = vcmask 523264  }
  0x14   : > { %v636_v1 = vld [vmem:[%s926_s1 + $0x78] sm:$0xff]  ;;  %379 = vmatpush.bf16.msra.mxu0 %v628_v0  ;;  %v635_v3 = vld [vmem:[%s926_s1 + $0x70] sm:$0xff]  ;;  %v634_v5 = vld [vmem:[%s926_s1 + $0x68] sm:$0xff]  ;;  %vm461_vm2 = vcmask 73728  }
  0x15   : > { %392 = vmatpush.bf16.msra.mxu1 %v636_v1  ;;  %s620_s14 = sshll.u32 %s218_s13, 2  ;;  %v625_v8 = vld [vmem:[%s926_s1 + $0x20] sm:$0xff]  ;;  %v624_v10 = vld [vmem:[%s926_s1 + $0x18] sm:$0xff]  ;;  %v623_v16 = vld [vmem:[%s926_s1 + $0x10] sm:$0xff]  ;;  %s464_s13 = scalar_lea.sflag [#allocation3], %s215_s26 }
  0x16   : > { %s221_s17 = scalar_lea.vmem %s925_s0, %s620_s14  ;;  %v633_v9 = vld [vmem:[%s926_s1 + $0x60] sm:$0xff]  ;;  %v632_v11 = vld [vmem:[%s926_s1 + $0x58] sm:$0xff]  ;;  %v631_v17 = vld [vmem:[%s926_s1 + $0x50] sm:$0xff]  ;;  %s694_s14 = sshra.s32 %s477_s12, 4  ;;  %s695_s14 = int_to_ptr.hbm [resolvable:$true] %s694_s14 }
  0x17   : > { %v223_v6 = vld [vmem:[%s221_s17] sm:$0xf]  ;;  %v622_v22 = vld [vmem:[%s926_s1 + $0x8] sm:$0xff]  ;;  %v640_v38 = vld [vmem:[%s928_s3 + $0x18] sm:$0xff]  ;;  %s696_s15 = scalar_lea.hbm %s695_s14, 1  ;;  %s700_s17 = scalar_lea.hbm %s930_s5, 2 }
  0x18   : > { %380 = vmatpush.bf16.msra.mxu0 %v627_v2  ;;  %v224_v7 = vunpack.c.l.bf16 %v223_v6  ;;  %v630_v23 = vld [vmem:[%s926_s1 + $0x48] sm:$0xff]  ;;  %v621_v28 = vld [vmem:[%s926_s1] sm:$0xff]  ;;  %452 = vmatpush.bf16.msra.mxu2 %v640_v38  ;;  %v639_v39 = vld [vmem:[%s928_s3 + $0x10] sm:$0xff]  ;;  %p697_p11 = scmp.ne.s32.totalorder %s695_s14, %s696_s15  ;;  %p701_p0 = scmp.lt.s32.totalorder %s695_s14, %s930_s5 }
  0x19   : > { %393 = vmatpush.bf16.msra.mxu1 %v635_v3  ;;  %v629_v29 = vld [vmem:[%s926_s1 + $0x40] sm:$0xff]  ;;  %v638_v40 = vld [vmem:[%s928_s3 + $0x8] sm:$0xff]  ;;  %p702_p1 = scmp.lt.s32.totalorder %s700_s17, %s696_s15 }
  0x1a   : > { %226 = vst [vmem:[#allocation1] ss:$2 sm:$0xff] %v224_v7  ;;  %v637_v41 = vld [vmem:[%s928_s3] sm:$0xff]  ;;  %p698_p12 = pnand %p697_p11, %p812_p5 }
  0x1b   : > { %v282_v42 = vld [vmem:[%s927_s2] sm:$0x1]  ;;  %p703_p2 = por %p702_p1, %p701_p0 }
  0x1c   : > { %381 = vmatpush.bf16.msra.mxu0 %v626_v4  ;;  %453 = vmatpush.bf16.msra.mxu2 %v639_v39  ;;  %v419_v55 = vld [vmem:[%s929_s4] sm:$0x1]  ;;  %p699_p13 = pneg %p698_p12 }
  0x1d   : > { %394 = vmatpush.bf16.msra.mxu1 %v634_v5 }
  0x1e   : > { %p704_p3 = pnand %p703_p2, %p699_p13 }
  0x20   : > { %382 = vmatpush.bf16.msra.mxu0 %v625_v8  ;;  %454 = vmatpush.bf16.msra.mxu2 %v638_v40 }
  0x21   : > { %395 = vmatpush.bf16.msra.mxu1 %v633_v9  ;;  %v227_v12 = vld.sshfl [vmem:[#allocation1] sm:$0xff pattern:$0x75316420]  ;;  %v228_v13 = vld.sshfl [vmem:[#allocation1 + $0x8] sm:$0xff pattern:$0x75316420] }
  0x22   : > { %v232_v14 = vsel %vm231_vm0, %v227_v12, 0.0  ;;  %v239_v15 = vsel %vm231_vm0, %v228_v13, 0.0 }
  0x23   : > { %v233_v18 = vrot.slane %v232_v14, 4  ;;  %v240_v19 = vrot.slane %v239_v15, 4 }
  0x24   : > { %383 = vmatpush.bf16.msra.mxu0 %v624_v10  ;;  %455 = vmatpush.bf16.msra.mxu2 %v637_v41 }
  0x25   : > { %396 = vmatpush.bf16.msra.mxu1 %v632_v11  ;;  %v234_v20 = vadd.f32 %v233_v18, %v232_v14  ;;  %v241_v21 = vadd.f32 %v240_v19, %v239_v15 }
  0x27   : > { %v235_v24 = vrot.slane %v234_v20, 2  ;;  %v242_v25 = vrot.slane %v241_v21, 2 }
  0x28   : > { %384 = vmatpush.bf16.msra.mxu0 %v623_v16 }
  0x29   : > { %397 = vmatpush.bf16.msra.mxu1 %v631_v17  ;;  %v236_v26 = vadd.f32 %v235_v24, %v234_v20  ;;  %v243_v27 = vadd.f32 %v242_v25, %v241_v21 }
  0x2b   : > { %v237_v30 = vrot.slane %v236_v26, 1  ;;  %v244_v31 = vrot.slane %v243_v27, 1 }
  0x2c   : > { %385 = vmatpush.bf16.msra.mxu0 %v622_v22 }
  0x2d   : > { %398 = vmatpush.bf16.msra.mxu1 %v630_v23  ;;  %v238_v32 = vadd.f32 %v237_v30, %v236_v26  ;;  %v245_v33 = vadd.f32 %v244_v31, %v243_v27 }
  0x2f   : > { %v246_v34 = vmul.f32 0.25, %v238_v32  ;;  %v247_v35 = vmul.f32 0.25, %v245_v33 }
  0x30   : > { %386 = vmatpush.bf16.msra.mxu0 %v621_v28 }
  0x31   : > { %399 = vmatpush.bf16.msra.mxu1 %v629_v29  ;;  %v248_v36 = vpack.c.bf16 %v246_v34, %v246_v34  ;;  %v249_v37 = vpack.c.bf16 %v247_v35, %v247_v35 }
  0x33   : > { %387 = vmatmul.bf16.vlgmr.msra.gmra.mxu0 %v248_v36 }
  0x34   : > { %400 = vmatmul.bf16.vlgmr.msra.gmra.mxu1 %v249_v37 }
  0xb0   : > { %v388_v43 = vpop.f32.mrf.mxu0 }
  0xb1   : > { %v401_v44 = vpop.f32.mrf.mxu1  ;;  %v389_v45 = vadd.f32 %v388_v43, %v282_v42 }
  0xb3   : > { %v402_v46 = vadd.f32 %v401_v44, %v389_v45 }
  0xb5   : > { %v405_v47 = vadd.f32 3.0, %v402_v46 }
  0xb7   : > { %v406_v48 = vmax.f32 %v405_v47, 0.0 }
  0xb8   : > { %v390_v49 = vpop.f32.mrf.mxu0 }
  0xb9   : > { %v403_v50 = vpop.f32.mrf.mxu1  ;;  %v407_v51 = vmin.f32 %v406_v48, 6.0 }
  0xbb   : > { %v408_v52 = vmul.f32 0.16666667, %v407_v51 }
  0xbd   : > { %v409_v53 = vmul.f32 %v408_v52, %v402_v46 }
  0xbf   : > { %v410_v54 = vpack.c.bf16 %v409_v53, %v409_v53 }
  0xc1   : > { %617 = vmatmul.msk.bf16.vlgmr.msra.gmra.mxu2 %vm444_vm1, %v410_v54 }
 0x144   : > { %v457_v56 = vpop.f32.mrf.mxu2 }
 0x145   : > { %v458_v57 = vadd.f32 %v457_v56, %v419_v55 }
 0x147   : > { %462 = vst.msk [vmem:[%s216_s10] sm:$0x1] %vm461_vm2, %v458_v57 }
 0x148   : > { %707 = shalt.err (!%p704_p3)
}
 0x149   : > { %641 = dma.vmem_to_hbm [thread:$0]  (%p812_p5), %s475_s11, 16, %s477_s12, %s464_s13  }
 0x14c   : > { %v459_v58 = vpop.f32.mrf.mxu2 }
 0x14d PF: > { %p647_p4 = scmp.ge.s32.totalorder %s742_s21, 2  ;;  %s488_s26 = sand.u32 1, %s730_s18  }
 0x14e   : > { %s489_s30 = scalar_lea.sflag [#allocation3], %s488_s26 }
 0x14f   : > { %p644_p7 = pnand %p647_p4, %p816_p6 }
 0x151   : > { %p645_p8 = pneg %p644_p7 }
 0x153   : > { %725 = dma.done.wait (%p645_p8), %s489_s30, 16  }
 0x154   : > { %727 = vsyncadd (%p645_p8), %s489_s30, 4294967280  ;;  %p15_p9 = scmp.ge.s32.totalorder %s799_s24, 4   ;;  %s933_s18 = smov %s734_s19 }
 0x155   : > { %s934_s19 = smov %s738_s20  ;;  %s935_s20 = smov %s810_s27 }
 0x156   : > { %s936_s21 = smov %s799_s24  ;;  %17 = sbr.rel (!%p15_p9) target bundleno = 3 (0x3), region = 75 }
 0x15b   :  { %494 = vsyncpa [#allocation3], 1 }
 0x15c   :  { %496 = vsyncpa [#allocation3 + $0x1], 1 }

</bundles_post_ra>
